<compile_context>
chip_gen: v7x
topology: tpu7x:2x2x1
jax: 0.10.0
libtpu: 0.0.40
codegen_flags: <defaults>
</compile_context>

<pallas_src>
import functools
import numpy as np
import jax
import jax.numpy as jnp
from jax import lax
from jax.experimental import pallas as pl
from jax.experimental.pallas import tpu as pltpu


# -----------------------------------------------------------------------------
# Host-side constants
# -----------------------------------------------------------------------------
def _make_channel_mix(W, padding_mode):
    """Fixed (C, C) matrix: grid_sample's align_corners=False bilinear interpolation
    along the W (= channel) axis (that axis has no predicted offsets)."""
    w = np.arange(W, dtype=np.float64)
    xg = w / (W - 1) * 2.0 - 1.0
    ix = ((xg + 1.0) * W - 1.0) / 2.0
    if padding_mode == "border":
        ix = np.clip(ix, 0.0, W - 1.0)
    ix0 = np.floor(ix).astype(np.int64)
    fx = ix - ix0
    ix1 = ix0 + 1
    M = np.zeros((W, W), np.float32)
    for wo in range(W):
        if 0 <= ix0[wo] <= W - 1:
            M[ix0[wo], wo] += (1.0 - fx[wo])
        if 0 <= ix1[wo] <= W - 1:
            M[ix1[wo], wo] += fx[wo]
    return M


def _make_shift_stack(K, Bt, T):
    """Constant (K*G, G) 0/1 matrix.  Row (j*G + b*T + t) selects x[b, t + j - K//2]
    (zero row when that index is outside [0, T-1]); block-diagonal per batch element.
    Folds the offset-conv zero padding + tap shifts into one aligned MXU matmul."""
    hs = K // 2
    G = Bt * T
    D = np.zeros((K * G, G), np.float32)
    for j in range(K):
        s = j - hs
        for b in range(Bt):
            for t in range(T):
                tt = t + s
                if 0 <= tt < T:
                    D[j * G + b * T + t, b * T + tt] = 1.0
    return D


# -----------------------------------------------------------------------------
# Pallas kernel: Bt batch elements per grid step, whole (Bt*T, C) slab in VMEM.
# -----------------------------------------------------------------------------
def _tdeform_kernel(x_ref, rowc_ref, dsh_ref, wcomb_ref, boff_ref, wc_ref,
                    bconv_ref, out_ref, *, K, T, C, OPAD, Bt, padding_mode):
    f32 = jnp.float32
    bf16 = jnp.bfloat16
    hs = K // 2
    G = Bt * T
    H = T

    x2d = x_ref[...].reshape(G, C).astype(f32)             # (G, C)
    rowc = rowc_ref[...]
    t_f = rowc[:, 0:1]                                     # (G, 1) local time index
    base = rowc[:, 1:2]                                    # (G, 1) b*T (row base)

    # ---- all K zero-padded, tap-shifted views stacked on aligned rows ---------
    xsh = jnp.dot(dsh_ref[...], x2d, preferred_element_type=f32)   # (K*G, C)

    # ---- fused offset Conv1d + fixed channel mix:  xw = sum_j xsh_j @ Wcomb_j --
    #      Wcomb_j[:, :C] = channel-mix M (centre tap only), Wcomb_j[:, C:] = woff_j
    xw = jnp.dot(xsh[0:G], wcomb_ref[0], preferred_element_type=f32)
    for j in range(1, K):
        xw = xw + jnp.dot(xsh[j * G:(j + 1) * G], wcomb_ref[j],
                          preferred_element_type=f32)
    xm = xw[:, :C]                                         # (G, C) channel-mixed x
    off = xw[:, C:] + boff_ref[...]                        # (G, K) predicted offsets
    # offset_act == 'none'

    # ---- Z_k = xm @ Wconv_k stacked on rows -> (K*G, OPAD), bf16 operands -------
    xm_b = xm.astype(bf16)
    zbig = jnp.concatenate(
        [jnp.dot(xm_b, wc_ref[k], preferred_element_type=f32).astype(bf16)
         for k in range(K)], axis=0)                       # (K*G, OPAD)

    # ---- time-axis bilinear "triangle" selection matrices, lane-concatenated ---
    col = lax.broadcasted_iota(jnp.int32, (G, G), 1).astype(f32)        # (G, G)
    block_mask = jnp.logical_and(col >= base,
                                 col <= base + float(T - 1)).astype(f32)
    y_base = t_f * (2.0 / (H - 1)) - 1.0
    s_parts = []
    for k in range(K):
        pos = float(k - hs)
        y = y_base + pos * (2.0 / (H - 1)) + off[:, k:k + 1]
        y = jnp.clip(y, -1.0, 1.0)                         # torch clamps h_grid
        iy = ((y + 1.0) * H - 1.0) * 0.5                   # align_corners=False
        if padding_mode == "border":
            iy = jnp.clip(iy, 0.0, float(H - 1))
        p = base + iy                                      # global fractional src row
        w = jnp.maximum(0.0, 1.0 - jnp.abs(p - col)) * block_mask
        s_parts.append(w.astype(bf16))
    sbig = jnp.concatenate(s_parts, axis=1)                # (G, K*G)

    # ---- one wide MXU matmul = deformable sampling + output Conv1d, + bias -----
    acc = jnp.dot(sbig, zbig, preferred_element_type=f32) + bconv_ref[...]
    out_ref[...] = acc.reshape(Bt, T, OPAD).astype(out_ref.dtype)


# -----------------------------------------------------------------------------
# Wrapper
# -----------------------------------------------------------------------------
def temporal_deformable_block(x, woff, boff, wconv, bconv, *, kernel_size,
                              padding_mode="zeros", block_batch=None):
    """x: (B, T, C);  woff: (K, C, K);  boff: (K,);  wconv: (O, C, K);  bconv: (O,)."""
    B, T, C = x.shape
    K = kernel_size
    hs = K // 2
    O = wconv.shape[0]
    OPAD = 128 * pl.cdiv(O, 128)                 # lane-dense output block

    # batch elements per grid step: aim for ~128 rows so sublanes / MXU rows fill.
    if block_batch is None:
        Bt = max(1, min(B, max(1, 128 // T)))
    else:
        Bt = block_batch
    nb = pl.cdiv(B, Bt)
    Bp = nb * Bt
    if Bp != B:
        x = jnp.pad(x, ((0, Bp - B), (0, 0), (0, 0)))
    G = Bt * T

    # ---- host-side constants / weight repacking --------------------------------
    mx = _make_channel_mix(C, padding_mode)                              # (C, C)
    wcomb_np = np.zeros((K, C, C + K), np.float32)
    wcomb_np[hs, :, :C] = mx
    wcomb = jnp.asarray(wcomb_np).at[:, :, C:].set(
        jnp.transpose(woff, (2, 1, 0)).astype(jnp.float32))              # (K, C, C+K)
    boff2 = boff.reshape(1, K).astype(jnp.float32)

    wc = jnp.zeros((K, C, OPAD), jnp.bfloat16).at[:, :, :O].set(
        jnp.transpose(wconv, (2, 1, 0)).astype(jnp.bfloat16))            # (K, C, OPAD)
    bconv2 = jnp.zeros((1, OPAD), jnp.float32).at[0, :O].set(
        bconv.astype(jnp.float32))

    dshift = jnp.asarray(_make_shift_stack(K, Bt, T))                    # (K*G, G)
    g_idx = np.arange(G)
    rowc = jnp.asarray(np.stack([(g_idx % T).astype(np.float32),
                                 ((g_idx // T) * T).astype(np.float32)],
                                axis=1))                                 # (G, 2)

    kernel = functools.partial(_tdeform_kernel, K=K, T=T, C=C, OPAD=OPAD,
                               Bt=Bt, padding_mode=padding_mode)

    flops = nb * (2 * (K * G) * G * C                # tap-shift selection matmul
                  + K * 2 * G * C * (C + K)          # offset conv + channel mix
                  + K * 2 * G * C * OPAD             # Z_k = xm @ Wconv_k
                  + 2 * G * (K * G) * OPAD)          # Sbig @ Zbig
    bytes_accessed = (4 * (Bp * T * C + Bp * T * OPAD + K * G * G + G * 2
                           + K * C * (C + K) + K + OPAD) + 2 * K * C * OPAD)
    cost = pl.CostEstimate(flops=int(flops), transcendentals=0,
                           bytes_accessed=int(bytes_accessed))

    out = pl.pallas_call(
        kernel,
        out_shape=jax.ShapeDtypeStruct((Bp, T, OPAD), x.dtype),
        grid=(nb,),
        in_specs=[
            pl.BlockSpec((Bt, T, C), lambda b: (b, 0, 0)),        # input slab
            pl.BlockSpec((G, 2), lambda b: (0, 0)),               # per-row constants
            pl.BlockSpec((K * G, G), lambda b: (0, 0)),           # tap-shift matrix
            pl.BlockSpec((K, C, C + K), lambda b: (0, 0, 0)),     # fused front W
            pl.BlockSpec((1, K), lambda b: (0, 0)),               # offset-conv bias
            pl.BlockSpec((K, C, OPAD), lambda b: (0, 0, 0)),      # out-conv W (bf16)
            pl.BlockSpec((1, OPAD), lambda b: (0, 0)),            # out-conv bias
        ],
        out_specs=pl.BlockSpec((Bt, T, OPAD), lambda b: (b, 0, 0)),
        compiler_params=pltpu.CompilerParams(
            dimension_semantics=("parallel",)),                   # megacore on v7x
        cost_estimate=cost,
    )(x, rowc, dshift, wcomb, boff2, wc, bconv2)

    # TODO(synk): for very long T the O(T^2) selection matrices should be banded /
    # time-tiled to fit v7x's 64 MiB VMEM; fine at these sequence lengths.
    return out[:B, :, :O]


# -----------------------------------------------------------------------------
# Pure-JAX reference (direct transcription of the torch forward, incl. the
# align_corners=False grid_sample semantics).
# -----------------------------------------------------------------------------
def reference_forward(x, woff, boff, wconv, bconv, *, kernel_size, padding_mode):
    B, T, C = x.shape
    K = kernel_size
    hs = K // 2
    H, W = T, C

    xpad = jnp.pad(x, ((0, 0), (hs, hs), (0, 0)))
    off = jnp.zeros((B, T, K), x.dtype)
    for j in range(K):
        off = off + jnp.einsum("btc,kc->btk", xpad[:, j:j + T], woff[:, :, j])
    off = off + boff[None, None, :]

    h_norm = jnp.arange(H) / (H - 1) * 2.0 - 1.0
    w_norm = jnp.arange(W) / (W - 1) * 2.0 - 1.0
    ix = ((w_norm + 1.0) * W - 1.0) / 2.0
    if padding_mode == "border":
        ix = jnp.clip(ix, 0.0, W - 1.0)
    ix0 = jnp.floor(ix)
    wx1 = ix - ix0
    wx0 = 1.0 - wx1
    ix0i = ix0.astype(jnp.int32)
    ix1i = ix0i + 1

    def gather(iy_i, ix_i):
        inb = (((iy_i >= 0) & (iy_i <= H - 1))[:, :, None]
               & ((ix_i >= 0) & (ix_i <= W - 1))[None, None, :])
        iyc = jnp.clip(iy_i, 0, H - 1)
        ixc = jnp.clip(ix_i, 0, W - 1)
        v = x[jnp.arange(B)[:, None, None], iyc[:, :, None], ixc[None, None, :]]
        return jnp.where(inb, v, 0.0)

    samples = []
    for k in range(K):
        pos = float(k - hs)
        y = h_norm[None, :] + pos * 2.0 / (H - 1) + off[:, :, k]
        y = jnp.clip(y, -1.0, 1.0)
        iy = ((y + 1.0) * H - 1.0) / 2.0
        if padding_mode == "border":
            iy = jnp.clip(iy, 0.0, H - 1.0)
        iy0 = jnp.floor(iy)
        wy1 = iy - iy0
        wy0 = 1.0 - wy1
        iy0i = iy0.astype(jnp.int32)
        iy1i = iy0i + 1
        val = (wy0[:, :, None] * wx0[None, None, :] * gather(iy0i, ix0i)
               + wy0[:, :, None] * wx1[None, None, :] * gather(iy0i, ix1i)
               + wy1[:, :, None] * wx0[None, None, :] * gather(iy1i, ix0i)
               + wy1[:, :, None] * wx1[None, None, :] * gather(iy1i, ix1i))
        samples.append(val)
    sampled = jnp.stack(samples, axis=-1)                        # (B, H, W, K)
    out = jnp.einsum("bhwk,owk->bho", sampled, wconv) + bconv[None, None, :]
    return out


if __name__ == "__main__":
    # Module config (stride must be 1 for the torch forward's reshapes; min_idx /
    # max_idx / clamp_idx unused in forward; use_norm folds into plain weights;
    # offset_act='none').
    B, T, C, O, K = 16, 16, 16, 32, 3

    key = jax.random.PRNGKey(0)
    k1, k2, k3, k4, k5 = jax.random.split(key, 5)
    # NOTE: the module zero-inits the offset conv; use small random weights instead
    # so the deformable path is actually exercised (synthetic weights, same shapes).
    woff = 0.05 * jax.random.normal(k1, (K, C, K), jnp.float32)    # (out=K, in=C, k=K)
    boff = 0.05 * jax.random.normal(k2, (K,), jnp.float32)
    wconv = jax.random.normal(k3, (O, C, K), jnp.float32) / np.sqrt(C * K)
    bconv = 0.01 * jax.random.normal(k4, (O,), jnp.float32)
    x = jax.random.normal(k5, (B, T, C), jnp.float32)              # (B, T, C) layout

    for padding_mode in ("zeros", "border"):
        out = temporal_deformable_block(x, woff, boff, wconv, bconv,
                                        kernel_size=K, padding_mode=padding_mode)
        out = jax.block_until_ready(out)
        ref = reference_forward(x, woff, boff, wconv, bconv,
                                kernel_size=K, padding_mode=padding_mode)
        ref = jax.block_until_ready(ref)
        assert out.shape == (B, T, O)
        assert np.allclose(np.asarray(out), np.asarray(ref),
                           rtol=5e-2, atol=5e-2), padding_mode

    print("KERNEL_OK")
</pallas_src>

<mosaic_0001>
module attributes {stable_mosaic.version = 11 : i64} {
  func.func @_tdeform_kernel(%arg0: i32, %arg1: memref<8x16x16xf32, #tpu.memory_space<vmem>>, %arg2: memref<128x2xf32, #tpu.memory_space<vmem>>, %arg3: memref<384x128xf32, #tpu.memory_space<vmem>>, %arg4: memref<3x16x19xf32, #tpu.memory_space<vmem>>, %arg5: memref<1x3xf32, #tpu.memory_space<vmem>>, %arg6: memref<3x16x128xbf16, #tpu.memory_space<vmem>>, %arg7: memref<1x128xf32, #tpu.memory_space<vmem>>, %arg8: memref<8x16x128xf32, #tpu.memory_space<vmem>>) attributes {dimension_semantics = [#tpu.dimension_semantics<parallel>], iteration_bounds = array<i64: 2>, scalar_prefetch = 0 : i64, scratch_operands = 0 : i64, tpu.core_type = #tpu.core_type<tc>, window_params = [{transform_indices = @transform_0, window_bounds = array<i64: 8, 16, 16>}, {pipeline_mode = #tpu.pipeline_mode<synchronous>, transform_indices = @transform_1, window_bounds = array<i64: 128, 2>}, {pipeline_mode = #tpu.pipeline_mode<synchronous>, transform_indices = @transform_2, window_bounds = array<i64: 384, 128>}, {pipeline_mode = #tpu.pipeline_mode<synchronous>, transform_indices = @transform_3, window_bounds = array<i64: 3, 16, 19>}, {pipeline_mode = #tpu.pipeline_mode<synchronous>, transform_indices = @transform_4, window_bounds = array<i64: 1, 3>}, {pipeline_mode = #tpu.pipeline_mode<synchronous>, transform_indices = @transform_5, window_bounds = array<i64: 3, 16, 128>}, {pipeline_mode = #tpu.pipeline_mode<synchronous>, transform_indices = @transform_6, window_bounds = array<i64: 1, 128>}, {transform_indices = @transform_7, window_bounds = array<i64: 8, 16, 128>}]} {
    %c0 = arith.constant 0 : index
    %c0_0 = arith.constant 0 : index
    %c0_1 = arith.constant 0 : index
    %0 = vector.load %arg1[%c0, %c0_0, %c0_1] : memref<8x16x16xf32, #tpu.memory_space<vmem>>, vector<8x16x16xf32>
    %1 = vector.shape_cast %0 : vector<8x16x16xf32> to vector<128x16xf32>
    %c0_2 = arith.constant 0 : index
    %c0_3 = arith.constant 0 : index
    %2 = vector.load %arg2[%c0_2, %c0_3] : memref<128x2xf32, #tpu.memory_space<vmem>>, vector<128x2xf32>
    %3 = vector.extract_strided_slice %2 {offsets = [0, 0], sizes = [128, 1], strides = [1, 1]} : vector<128x2xf32> to vector<128x1xf32>
    %4 = vector.extract_strided_slice %2 {offsets = [0, 1], sizes = [128, 1], strides = [1, 1]} : vector<128x2xf32> to vector<128x1xf32>
    %c0_4 = arith.constant 0 : index
    %c0_5 = arith.constant 0 : index
    %5 = vector.load %arg3[%c0_4, %c0_5] : memref<384x128xf32, #tpu.memory_space<vmem>>, vector<384x128xf32>
    %cst = arith.constant dense<0.000000e+00> : vector<384x16xf32>
    %6 = tpu.matmul %5, %1, %cst {dimension_numbers = #tpu.dot_dimension_numbers<[1], [0], [0], [1], [0, 0, 1, 1], [], []>} : vector<384x128xf32>, vector<128x16xf32>, vector<384x16xf32> -> vector<384x16xf32>
    %7 = vector.extract_strided_slice %6 {offsets = [0, 0], sizes = [128, 16], strides = [1, 1]} : vector<384x16xf32> to vector<128x16xf32>
    %c0_6 = arith.constant 0 : index
    %c0_7 = arith.constant 0 : index
    %c0_8 = arith.constant 0 : index
    %8 = vector.load %arg4[%c0_6, %c0_7, %c0_8] : memref<3x16x19xf32, #tpu.memory_space<vmem>>, vector<1x16x19xf32>
    %9 = vector.shape_cast %8 : vector<1x16x19xf32> to vector<16x19xf32>
    %cst_9 = arith.constant dense<0.000000e+00> : vector<128x19xf32>
    %10 = tpu.matmul %7, %9, %cst_9 {dimension_numbers = #tpu.dot_dimension_numbers<[1], [0], [0], [1], [0, 0, 1, 1], [], []>} : vector<128x16xf32>, vector<16x19xf32>, vector<128x19xf32> -> vector<128x19xf32>
    %11 = vector.extract_strided_slice %6 {offsets = [128, 0], sizes = [128, 16], strides = [1, 1]} : vector<384x16xf32> to vector<128x16xf32>
    %c1 = arith.constant 1 : index
    %c0_10 = arith.constant 0 : index
    %c0_11 = arith.constant 0 : index
    %12 = vector.load %arg4[%c1, %c0_10, %c0_11] : memref<3x16x19xf32, #tpu.memory_space<vmem>>, vector<1x16x19xf32>
    %13 = vector.shape_cast %12 : vector<1x16x19xf32> to vector<16x19xf32>
    %cst_12 = arith.constant dense<0.000000e+00> : vector<128x19xf32>
    %14 = tpu.matmul %11, %13, %cst_12 {dimension_numbers = #tpu.dot_dimension_numbers<[1], [0], [0], [1], [0, 0, 1, 1], [], []>} : vector<128x16xf32>, vector<16x19xf32>, vector<128x19xf32> -> vector<128x19xf32>
    %15 = arith.addf %10, %14 : vector<128x19xf32>
    %16 = vector.extract_strided_slice %6 {offsets = [256, 0], sizes = [128, 16], strides = [1, 1]} : vector<384x16xf32> to vector<128x16xf32>
    %c2 = arith.constant 2 : index
    %c0_13 = arith.constant 0 : index
    %c0_14 = arith.constant 0 : index
    %17 = vector.load %arg4[%c2, %c0_13, %c0_14] : memref<3x16x19xf32, #tpu.memory_space<vmem>>, vector<1x16x19xf32>
    %18 = vector.shape_cast %17 : vector<1x16x19xf32> to vector<16x19xf32>
    %cst_15 = arith.constant dense<0.000000e+00> : vector<128x19xf32>
    %19 = tpu.matmul %16, %18, %cst_15 {dimension_numbers = #tpu.dot_dimension_numbers<[1], [0], [0], [1], [0, 0, 1, 1], [], []>} : vector<128x16xf32>, vector<16x19xf32>, vector<128x19xf32> -> vector<128x19xf32>
    %20 = arith.addf %15, %19 : vector<128x19xf32>
    %21 = vector.extract_strided_slice %20 {offsets = [0, 0], sizes = [128, 16], strides = [1, 1]} : vector<128x19xf32> to vector<128x16xf32>
    %22 = vector.extract_strided_slice %20 {offsets = [0, 16], sizes = [128, 3], strides = [1, 1]} : vector<128x19xf32> to vector<128x3xf32>
    %c0_16 = arith.constant 0 : index
    %c0_17 = arith.constant 0 : index
    %23 = vector.load %arg5[%c0_16, %c0_17] : memref<1x3xf32, #tpu.memory_space<vmem>>, vector<1x3xf32>
    %24 = vector.broadcast %23 : vector<1x3xf32> to vector<128x3xf32>
    %25 = arith.addf %22, %24 : vector<128x3xf32>
    %26 = arith.truncf %21 : vector<128x16xf32> to vector<128x16xbf16>
    %c0_18 = arith.constant 0 : index
    %c0_19 = arith.constant 0 : index
    %c0_20 = arith.constant 0 : index
    %27 = vector.load %arg6[%c0_18, %c0_19, %c0_20] : memref<3x16x128xbf16, #tpu.memory_space<vmem>>, vector<1x16x128xbf16>
    %28 = vector.shape_cast %27 : vector<1x16x128xbf16> to vector<16x128xbf16>
    %cst_21 = arith.constant dense<0.000000e+00> : vector<128x128xf32>
    %29 = tpu.matmul %26, %28, %cst_21 {dimension_numbers = #tpu.dot_dimension_numbers<[1], [0], [0], [1], [0, 0, 1, 1], [], []>} : vector<128x16xbf16>, vector<16x128xbf16>, vector<128x128xf32> -> vector<128x128xf32>
    %30 = arith.truncf %29 : vector<128x128xf32> to vector<128x128xbf16>
    %c1_22 = arith.constant 1 : index
    %c0_23 = arith.constant 0 : index
    %c0_24 = arith.constant 0 : index
    %31 = vector.load %arg6[%c1_22, %c0_23, %c0_24] : memref<3x16x128xbf16, #tpu.memory_space<vmem>>, vector<1x16x128xbf16>
    %32 = vector.shape_cast %31 : vector<1x16x128xbf16> to vector<16x128xbf16>
    %cst_25 = arith.constant dense<0.000000e+00> : vector<128x128xf32>
    %33 = tpu.matmul %26, %32, %cst_25 {dimension_numbers = #tpu.dot_dimension_numbers<[1], [0], [0], [1], [0, 0, 1, 1], [], []>} : vector<128x16xbf16>, vector<16x128xbf16>, vector<128x128xf32> -> vector<128x128xf32>
    %34 = arith.truncf %33 : vector<128x128xf32> to vector<128x128xbf16>
    %c2_26 = arith.constant 2 : index
    %c0_27 = arith.constant 0 : index
    %c0_28 = arith.constant 0 : index
    %35 = vector.load %arg6[%c2_26, %c0_27, %c0_28] : memref<3x16x128xbf16, #tpu.memory_space<vmem>>, vector<1x16x128xbf16>
    %36 = vector.shape_cast %35 : vector<1x16x128xbf16> to vector<16x128xbf16>
    %cst_29 = arith.constant dense<0.000000e+00> : vector<128x128xf32>
    %37 = tpu.matmul %26, %36, %cst_29 {dimension_numbers = #tpu.dot_dimension_numbers<[1], [0], [0], [1], [0, 0, 1, 1], [], []>} : vector<128x16xbf16>, vector<16x128xbf16>, vector<128x128xf32> -> vector<128x128xf32>
    %38 = arith.truncf %37 : vector<128x128xf32> to vector<128x128xbf16>
    %39 = tpu.concatenate %30, %34, %38 in 0 : vector<128x128xbf16>, vector<128x128xbf16>, vector<128x128xbf16> -> vector<384x128xbf16>
    %40 = tpu.iota {dimensions = array<i32: 1>} : vector<128x128xi32>
    %41 = arith.sitofp %40 : vector<128x128xi32> to vector<128x128xf32>
    %42 = vector.broadcast %4 : vector<128x1xf32> to vector<128x128xf32>
    %43 = arith.cmpf oge, %41, %42 : vector<128x128xf32>
    %cst_30 = arith.constant 1.500000e+01 : f32
    %44 = vector.broadcast %cst_30 : f32 to vector<128x1xf32>
    %45 = arith.addf %4, %44 : vector<128x1xf32>
    %46 = vector.broadcast %45 : vector<128x1xf32> to vector<128x128xf32>
    %47 = arith.cmpf ole, %41, %46 : vector<128x128xf32>
    %48 = arith.andi %43, %47 : vector<128x128xi1>
    %49 = arith.extui %48 : vector<128x128xi1> to vector<128x128xi32>
    %50 = arith.sitofp %49 : vector<128x128xi32> to vector<128x128xf32>
    %cst_31 = arith.constant 0.13333334 : f32
    %51 = vector.broadcast %cst_31 : f32 to vector<128x1xf32>
    %52 = arith.mulf %3, %51 : vector<128x1xf32>
    %cst_32 = arith.constant 1.000000e+00 : f32
    %53 = vector.broadcast %cst_32 : f32 to vector<128x1xf32>
    %54 = arith.subf %52, %53 : vector<128x1xf32>
    %cst_33 = arith.constant -0.13333334 : f32
    %55 = vector.broadcast %cst_33 : f32 to vector<128x1xf32>
    %56 = arith.addf %54, %55 : vector<128x1xf32>
    %57 = vector.extract_strided_slice %25 {offsets = [0, 0], sizes = [128, 1], strides = [1, 1]} : vector<128x3xf32> to vector<128x1xf32>
    %58 = arith.addf %56, %57 : vector<128x1xf32>
    %cst_34 = arith.constant -1.000000e+00 : f32
    %cst_35 = arith.constant 1.000000e+00 : f32
    %59 = vector.broadcast %cst_34 : f32 to vector<128x1xf32>
    %60 = arith.maximumf %59, %58 : vector<128x1xf32>
    %61 = vector.broadcast %cst_35 : f32 to vector<128x1xf32>
    %62 = arith.minimumf %61, %60 : vector<128x1xf32>
    %cst_36 = arith.constant 1.000000e+00 : f32
    %63 = vector.broadcast %cst_36 : f32 to vector<128x1xf32>
    %64 = arith.addf %62, %63 : vector<128x1xf32>
    %cst_37 = arith.constant 1.600000e+01 : f32
    %65 = vector.broadcast %cst_37 : f32 to vector<128x1xf32>
    %66 = arith.mulf %64, %65 : vector<128x1xf32>
    %cst_38 = arith.constant 1.000000e+00 : f32
    %67 = vector.broadcast %cst_38 : f32 to vector<128x1xf32>
    %68 = arith.subf %66, %67 : vector<128x1xf32>
    %cst_39 = arith.constant 5.000000e-01 : f32
    %69 = vector.broadcast %cst_39 : f32 to vector<128x1xf32>
    %70 = arith.mulf %68, %69 : vector<128x1xf32>
    %71 = arith.addf %4, %70 : vector<128x1xf32>
    %72 = vector.broadcast %71 : vector<128x1xf32> to vector<128x128xf32>
    %73 = arith.subf %72, %41 : vector<128x128xf32>
    %74 = math.absf %73 : vector<128x128xf32>
    %cst_40 = arith.constant 1.000000e+00 : f32
    %75 = vector.broadcast %cst_40 : f32 to vector<128x128xf32>
    %76 = arith.subf %75, %74 : vector<128x128xf32>
    %cst_41 = arith.constant 0.000000e+00 : f32
    %77 = vector.broadcast %cst_41 : f32 to vector<128x128xf32>
    %78 = arith.maximumf %77, %76 : vector<128x128xf32>
    %79 = arith.mulf %78, %50 : vector<128x128xf32>
    %80 = arith.truncf %79 : vector<128x128xf32> to vector<128x128xbf16>
    %cst_42 = arith.constant 0.000000e+00 : f32
    %81 = vector.broadcast %cst_42 : f32 to vector<128x1xf32>
    %82 = arith.addf %54, %81 : vector<128x1xf32>
    %83 = vector.extract_strided_slice %25 {offsets = [0, 1], sizes = [128, 1], strides = [1, 1]} : vector<128x3xf32> to vector<128x1xf32>
    %84 = arith.addf %82, %83 : vector<128x1xf32>
    %cst_43 = arith.constant -1.000000e+00 : f32
    %cst_44 = arith.constant 1.000000e+00 : f32
    %85 = vector.broadcast %cst_43 : f32 to vector<128x1xf32>
    %86 = arith.maximumf %85, %84 : vector<128x1xf32>
    %87 = vector.broadcast %cst_44 : f32 to vector<128x1xf32>
    %88 = arith.minimumf %87, %86 : vector<128x1xf32>
    %cst_45 = arith.constant 1.000000e+00 : f32
    %89 = vector.broadcast %cst_45 : f32 to vector<128x1xf32>
    %90 = arith.addf %88, %89 : vector<128x1xf32>
    %cst_46 = arith.constant 1.600000e+01 : f32
    %91 = vector.broadcast %cst_46 : f32 to vector<128x1xf32>
    %92 = arith.mulf %90, %91 : vector<128x1xf32>
    %cst_47 = arith.constant 1.000000e+00 : f32
    %93 = vector.broadcast %cst_47 : f32 to vector<128x1xf32>
    %94 = arith.subf %92, %93 : vector<128x1xf32>
    %cst_48 = arith.constant 5.000000e-01 : f32
    %95 = vector.broadcast %cst_48 : f32 to vector<128x1xf32>
    %96 = arith.mulf %94, %95 : vector<128x1xf32>
    %97 = arith.addf %4, %96 : vector<128x1xf32>
    %98 = vector.broadcast %97 : vector<128x1xf32> to vector<128x128xf32>
    %99 = arith.subf %98, %41 : vector<128x128xf32>
    %100 = math.absf %99 : vector<128x128xf32>
    %cst_49 = arith.constant 1.000000e+00 : f32
    %101 = vector.broadcast %cst_49 : f32 to vector<128x128xf32>
    %102 = arith.subf %101, %100 : vector<128x128xf32>
    %cst_50 = arith.constant 0.000000e+00 : f32
    %103 = vector.broadcast %cst_50 : f32 to vector<128x128xf32>
    %104 = arith.maximumf %103, %102 : vector<128x128xf32>
    %105 = arith.mulf %104, %50 : vector<128x128xf32>
    %106 = arith.truncf %105 : vector<128x128xf32> to vector<128x128xbf16>
    %cst_51 = arith.constant 0.13333334 : f32
    %107 = vector.broadcast %cst_51 : f32 to vector<128x1xf32>
    %108 = arith.addf %54, %107 : vector<128x1xf32>
    %109 = vector.extract_strided_slice %25 {offsets = [0, 2], sizes = [128, 1], strides = [1, 1]} : vector<128x3xf32> to vector<128x1xf32>
    %110 = arith.addf %108, %109 : vector<128x1xf32>
    %cst_52 = arith.constant -1.000000e+00 : f32
    %cst_53 = arith.constant 1.000000e+00 : f32
    %111 = vector.broadcast %cst_52 : f32 to vector<128x1xf32>
    %112 = arith.maximumf %111, %110 : vector<128x1xf32>
    %113 = vector.broadcast %cst_53 : f32 to vector<128x1xf32>
    %114 = arith.minimumf %113, %112 : vector<128x1xf32>
    %cst_54 = arith.constant 1.000000e+00 : f32
    %115 = vector.broadcast %cst_54 : f32 to vector<128x1xf32>
    %116 = arith.addf %114, %115 : vector<128x1xf32>
    %cst_55 = arith.constant 1.600000e+01 : f32
    %117 = vector.broadcast %cst_55 : f32 to vector<128x1xf32>
    %118 = arith.mulf %116, %117 : vector<128x1xf32>
    %cst_56 = arith.constant 1.000000e+00 : f32
    %119 = vector.broadcast %cst_56 : f32 to vector<128x1xf32>
    %120 = arith.subf %118, %119 : vector<128x1xf32>
    %cst_57 = arith.constant 5.000000e-01 : f32
    %121 = vector.broadcast %cst_57 : f32 to vector<128x1xf32>
    %122 = arith.mulf %120, %121 : vector<128x1xf32>
    %123 = arith.addf %4, %122 : vector<128x1xf32>
    %124 = vector.broadcast %123 : vector<128x1xf32> to vector<128x128xf32>
    %125 = arith.subf %124, %41 : vector<128x128xf32>
    %126 = math.absf %125 : vector<128x128xf32>
    %cst_58 = arith.constant 1.000000e+00 : f32
    %127 = vector.broadcast %cst_58 : f32 to vector<128x128xf32>
    %128 = arith.subf %127, %126 : vector<128x128xf32>
    %cst_59 = arith.constant 0.000000e+00 : f32
    %129 = vector.broadcast %cst_59 : f32 to vector<128x128xf32>
    %130 = arith.maximumf %129, %128 : vector<128x128xf32>
    %131 = arith.mulf %130, %50 : vector<128x128xf32>
    %132 = arith.truncf %131 : vector<128x128xf32> to vector<128x128xbf16>
    %133 = tpu.concatenate %80, %106, %132 in 1 : vector<128x128xbf16>, vector<128x128xbf16>, vector<128x128xbf16> -> vector<128x384xbf16>
    %cst_60 = arith.constant dense<0.000000e+00> : vector<128x128xf32>
    %134 = tpu.matmul %133, %39, %cst_60 {dimension_numbers = #tpu.dot_dimension_numbers<[1], [0], [0], [1], [0, 0, 1, 1], [], []>} : vector<128x384xbf16>, vector<384x128xbf16>, vector<128x128xf32> -> vector<128x128xf32>
    %c0_61 = arith.constant 0 : index
    %c0_62 = arith.constant 0 : index
    %135 = vector.load %arg7[%c0_61, %c0_62] : memref<1x128xf32, #tpu.memory_space<vmem>>, vector<1x128xf32>
    %136 = vector.broadcast %135 : vector<1x128xf32> to vector<128x128xf32>
    %137 = arith.addf %134, %136 : vector<128x128xf32>
    %138 = vector.shape_cast %137 : vector<128x128xf32> to vector<8x16x128xf32>
    %c0_63 = arith.constant 0 : index
    %c0_64 = arith.constant 0 : index
    %c0_65 = arith.constant 0 : index
    %139 = vector.load %arg8[%c0_63, %c0_64, %c0_65] : memref<8x16x128xf32, #tpu.memory_space<vmem>>, vector<8x16x128xf32>
    tpu.vector_store %arg8[%c0_63, %c0_64, %c0_65], %138 {strides = array<i32>} : memref<8x16x128xf32, #tpu.memory_space<vmem>>, vector<8x16x128xf32>,
    return
  }
  func.func @transform_0(%arg0: i32) -> (i32, i32, i32) {
    %c0_i32 = arith.constant 0 : i32
    %c0_i32_0 = arith.constant 0 : i32
    %c0_i32_1 = arith.constant 0 : i32
    return %arg0, %c0_i32, %c0_i32_0 : i32, i32, i32
  }
  func.func @transform_1(%arg0: i32) -> (i32, i32) {
    %c0_i32 = arith.constant 0 : i32
    %c0_i32_0 = arith.constant 0 : i32
    %c0_i32_1 = arith.constant 0 : i32
    return %c0_i32, %c0_i32_0 : i32, i32
  }
  func.func @transform_2(%arg0: i32) -> (i32, i32) {
    %c0_i32 = arith.constant 0 : i32
    %c0_i32_0 = arith.constant 0 : i32
    %c0_i32_1 = arith.constant 0 : i32
    return %c0_i32, %c0_i32_0 : i32, i32
  }
  func.func @transform_3(%arg0: i32) -> (i32, i32, i32) {
    %c0_i32 = arith.constant 0 : i32
    %c0_i32_0 = arith.constant 0 : i32
    %c0_i32_1 = arith.constant 0 : i32
    %c0_i32_2 = arith.constant 0 : i32
    return %c0_i32, %c0_i32_0, %c0_i32_1 : i32, i32, i32
  }
  func.func @transform_4(%arg0: i32) -> (i32, i32) {
    %c0_i32 = arith.constant 0 : i32
    %c0_i32_0 = arith.constant 0 : i32
    %c0_i32_1 = arith.constant 0 : i32
    return %c0_i32, %c0_i32_0 : i32, i32
  }
  func.func @transform_5(%arg0: i32) -> (i32, i32, i32) {
    %c0_i32 = arith.constant 0 : i32
    %c0_i32_0 = arith.constant 0 : i32
    %c0_i32_1 = arith.constant 0 : i32
    %c0_i32_2 = arith.constant 0 : i32
    return %c0_i32, %c0_i32_0, %c0_i32_1 : i32, i32, i32
  }
  func.func @transform_6(%arg0: i32) -> (i32, i32) {
    %c0_i32 = arith.constant 0 : i32
    %c0_i32_0 = arith.constant 0 : i32
    %c0_i32_1 = arith.constant 0 : i32
    return %c0_i32, %c0_i32_0 : i32, i32
  }
  func.func @transform_7(%arg0: i32) -> (i32, i32, i32) {
    %c0_i32 = arith.constant 0 : i32
    %c0_i32_0 = arith.constant 0 : i32
    %c0_i32_1 = arith.constant 0 : i32
    return %arg0, %c0_i32, %c0_i32_0 : i32, i32, i32
  }
}

</mosaic_0001>

<bundles_post_ra>
// kernel: tpu_custom_call.1
= control target key start
LH: loop header
LB: loop body
LE: loop exit
PB: predicated region body
PF: predicated region fallthrough
CT: control target
= control target key end

     0   :  { %12 = vsyncpa [#allocation3], 0  ;;  %s5682_s0 = inlined_call_operand.hbm [shape: f32[16,16,16], index: 0, kind: input, shape index: {}]   ;;  %s5683_s1 = inlined_call_operand.vmem [shape: f32[128,2], index: 1, kind: input, shape index: {}]   ;;  %s5684_s2 = inlined_call_operand.hbm [shape: f32[384,128], index: 2, kind: input, shape index: {}]   ;;  %s5685_s3 = inlined_call_operand.vmem [shape: f32[3,16,19], index: 3, kind: input, shape index: {}]   ;;  %s5686_s4 = inlined_call_operand.vmem [shape: f32[1,3], index: 4, kind: input, shape index: {}]   ;;  %s5687_s5 = inlined_call_operand.vmem [shape: bf16[3,16,128], index: 5, kind: input, shape index: {}]   ;;  %s5688_s6 = inlined_call_operand.vmem [shape: f32[1,128], index: 6, kind: input, shape index: {}]   ;;  %s5689_s7 = inlined_call_operand.hbm [shape: f32[16,16,128], index: 7, kind: output, shape index: {}]  }
   0x1   :  { %14 = vsyncpa [#allocation3 + $0x1], 0 }
   0x2   :  { %15 = vsyncpa [#allocation6], 0 }
   0x3   :  { %16 = vsyncpa [#allocation4], 0 }
   0x4   :  { %18 = vsyncpa [#allocation4 + $0x1], 0  ;;  %s4680_s24 = smov 0   ;;  %s4682_s25 = smov 0  }
   0x5   :  { %s4684_s26 = smov 0   ;;  %s4686_s27 = smov 0  }
   0x6 LB: > { %s4701_s28 = sadd.s32 4294967295, %s4624_s27   ;;  %s3597_s29 = sadd.s32 4294967294, %s4624_s27   ;;  %s4624_s27 = sphi %s4686_s27, %s5723_s27   ;;  %s4620_s26 = sphi %s4684_s26, %s5722_s26   ;;  %s4616_s25 = sphi %s4682_s25, %s5721_s25   ;;  %s4612_s24 = sphi %s4680_s24, %s5720_s24  }
   0x7   : > { %p44_p0 = scmp.ne.s32.totalorder %s4616_s25, %s4612_s24  ;;  %p5690_p1 = scmp.eq.s32.totalorder %s4701_s28, 0 }
   0x8   : > { %p200_p3 = scmp.eq.s32.totalorder %s3597_s29, 1  ;;  %p3598_p5 = scmp.ge.s32.totalorder %s4624_s27, 1 }
   0x9   : > { %p4710_p4 = por %p5690_p1, %p44_p0  ;;  %p207_p7 = scmp.lt.s32.totalorder %s4624_s27, 3 }
   0xa   : > { %p4715_p6 = por %p200_p3, %p44_p0  ;;  %s4626_s10 = smov [#allocation5]  }
   0xb   : > { %s5696_s30 = scalar_select %p4710_p4, 1, 0 }
   0xc   : > { %s5697_s8 = scalar_select %p4715_p6, 1, 0 }
   0xd   : > { %p4720_p8 = pnand %p3598_p5, %p207_p7  ;;  %s222_s11 = sshll.u32 %s4626_s10, 4  ;;  %s4724_s11 = int_to_ptr.vmem [resolvable:$true] %s222_s11 }
   0xe   : > { %s4736_s13 = sadd.s32 1, %s4624_s27   ;;  %s31_s14 = sadd.s32 1, %s4620_s26 }
   0xf   : > { %s5698_s9 = scalar_select %p4720_p8, 1, 0 }
  0x10   : > { %p4415_p9 = pneg %p4720_p8  ;;  %s28_s15 = ssub.s32 %s4624_s27, %s4736_s13 }
  0x11   : > { %s4496_s18 = scalar_lea.hbm %s5684_s2, 6144 }
  0x12   : > { %p4731_p11 = pnand %p4415_p9, %p5690_p1  ;;  %p4497_p12 = scmp.ne.s32.totalorder %s5684_s2, %s4496_s18 }
  0x13   : > { %p4503_p5 = scmp.lt.u32.totalorder %s4496_s18, %s5684_s2 }
  0x14   : > { %p4498_p13 = pneg %p4731_p11 }
  0x16   : > { %p4499_p0 = pnand %p4498_p13, %p4497_p12 }
  0x18   : > { %p4500_p3 = pneg %p4499_p0 }
  0x1a   : > { %p4505_p7 = pnand %p4503_p5, %p4500_p3 }
  0x1c   : > { %4508 = shalt.err (!%p4505_p7)
}
  0x1d   : > { %s4509_s23 = scalar_lea.vmem %s4724_s11, 6144  ;;  %p4517_p2 = scmp.lt.s32.totalorder %s4724_s11, %s4724_s11 }
  0x1e   : > { %p4510_p9 = scmp.ne.s32.totalorder %s4724_s11, %s4509_s23  ;;  %p4518_p6 = scmp.lt.s32.totalorder %s4509_s23, %s4509_s23 }
  0x20   : > { %p4512_p10 = pnand %p4510_p9, %p4498_p13  ;;  %p4519_p4 = por %p4518_p6, %p4517_p2 }
  0x22   : > { %p4513_p1 = pneg %p4512_p10 }
  0x24   : > { %p4520_p8 = pnand %p4519_p4, %p4513_p1 }
  0x26   : > { %4523 = shalt.err (!%p4520_p8)
}
  0x27   : > { %s5693_s29 = smov 128   ;;  %s4628_s10 = smov 8  }
  0x28   : > { %4418 = dma.hbm_to_vmem [thread:$0]  (!%p4731_p11), %s5684_s2, 6144, %s4724_s11, [#allocation6], %s5693_s29, %s5693_s29, %s4628_s10  }
  0x29   : > { %p29_p1 = scmp.eq.s32.totalorder %s28_s15, 0  ;;  %p38_p2 = scmp.ne.s32.totalorder %s4620_s26, %s4616_s25 }
  0x2a   : > { %p39_p4 = scmp.eq.s32.totalorder %s4624_s27, 0  ;;  %p4428_p6 = scmp.lt.s32.totalorder %s4624_s27, 2 }
  0x2b   : > { %s4770_s18 = scalar_select %p29_p1, %s4620_s26, %s31_s14  }
  0x2c   : > { %p40_p8 = por %p39_p4, %p38_p2  ;;  %p5700_p10 = scmp.eq.s32.totalorder %s4701_s28, 1 }
  0x2d   : > { %s248_s12 = sand.u32 1, %s4620_s26   ;;  %s3829_s20 = sshll.u32 %s4624_s27, 11 }
  0x2e   : > { %p4774_p12 = por %p5700_p10, %p38_p2  ;;  %s3601_s21 = sshll.u32 %s248_s12, 7 }
  0x2f   : > { %s4783_s16 = scalar_lea.hbm %s5682_s0, %s3829_s20  ;;  %s252_s11 = scalar_lea.vmem [#allocation2], %s3601_s21 }
  0x30   : > { %s260_s14 = sshll.u32 %s252_s11, 4  ;;  %p4785_p11 = pnand %p4428_p6, %p40_p8  ;;  %s4789_s14 = int_to_ptr.vmem [resolvable:$true] %s260_s14 }
  0x31   : > { %s4791_s17 = scalar_lea.sflag [#allocation3], %s248_s12  ;;  %s4524_s29 = scalar_lea.hbm %s4783_s16, 2048 }
  0x32   : > { %p4525_p13 = scmp.ne.s32.totalorder %s4783_s16, %s4524_s29  ;;  %p4526_p0 = pneg %p4785_p11 }
  0x33   : > { %s4529_s22 = scalar_lea.hbm %s5682_s0, 4096  ;;  %p4530_p7 = scmp.lt.u32.totalorder %s4783_s16, %s5682_s0 }
  0x34   : > { %p4527_p3 = pnand %p4526_p0, %p4525_p13  ;;  %p4531_p9 = scmp.lt.u32.totalorder %s4529_s22, %s4524_s29 }
  0x35   : > { %p4533_p2 = scmp.lt.u32.totalorder %s4524_s29, %s4783_s16 }
  0x36   : > { %p4528_p5 = pneg %p4527_p3  ;;  %p4532_p1 = por %p4531_p9, %p4530_p7 }
  0x38   : > { %p4534_p4 = por %p4533_p2, %p4532_p1 }
  0x3a   : > { %p4535_p6 = pnand %p4534_p4, %p4528_p5 }
  0x3c   : > { %4538 = shalt.err (!%p4535_p6)
}
  0x3d   : > { %s4539_s12 = scalar_lea.vmem %s4789_s14, 2048  ;;  %s4629_s20 = smov [#allocation2]  }
  0x3e   : > { %p4540_p8 = scmp.ne.s32.totalorder %s4789_s14, %s4539_s12  ;;  %s4544_s21 = sshll.u32 %s4629_s20, 4  ;;  %s4545_s21 = int_to_ptr.vmem [resolvable:$false] %s4544_s21 }
  0x3f   : > { %s4546_s23 = scalar_lea.vmem %s4545_s21, 4096  ;;  %p4547_p3 = scmp.lt.s32.totalorder %s4789_s14, %s4545_s21 }
  0x40   : > { %p4542_p10 = pnand %p4540_p8, %p4526_p0  ;;  %p4548_p7 = scmp.lt.s32.totalorder %s4546_s23, %s4539_s12 }
  0x42   : > { %p4543_p13 = pneg %p4542_p10  ;;  %p4549_p9 = por %p4548_p7, %p4547_p3 }
  0x44   : > { %p4550_p1 = pnand %p4549_p9, %p4543_p13 }
  0x46   : > { %4553 = shalt.err (!%p4550_p1)
}
  0x47   : > { %s5703_s29 = smov 128   ;;  %p5704_p0 = scmp.ne.s32.totalorder %s5698_s9, 0 }
  0x48   : > { %4422 = dma.hbm_to_vmem [thread:$0]  (!%p4785_p11), %s4783_s16, 2048, %s4789_s14, %s4791_s17, %s5703_s29, %s5703_s29, %s4628_s10  }
  0x49   : > { %272 = sbr.rel (%p5704_p0) target bundleno = 1362 (0x552), region = 48 }
  0x50   : > { %s4825_s22 = sand.u32 1, %s4616_s25   ;;  %p5705_p5 = scmp.ne.s32.totalorder %s5696_s30, 0 }
  0x51   : > { %s3606_s11 = sshll.u32 %s4825_s22, 7  ;;  %s275_s12 = scalar_lea.sflag [#allocation3], %s4825_s22 }
  0x52   : > { %s4831_s15 = scalar_lea.vmem [#allocation2], %s3606_s11 }
  0x53   : > { %4599 = dma.done.wait (%p5705_p5), %s275_s12, 2048  }
  0x54   : > { %4601 = vsyncadd (%p5705_p5), %s275_s12, 4294965248  ;;  %p5706_p11 = scmp.eq.s32.totalorder %s4701_s28, 0 }
  0x56   : > { %4603 = dma.done.wait (%p5706_p11), [#allocation6], 6144   ;;  %p5707_p2 = pmov %p5706_p11 }
  0x57   : > { %v316_v0 = vld [vmem:[%s4831_s15] sm:$0xff]  ;;  %v317_v1 = vld [vmem:[%s4831_s15 + $0x8] sm:$0xff]  ;;  %v318_v2 = vld [vmem:[%s4831_s15 + $0x10] sm:$0xff]  ;;  %s4631_s30 = smov 16   ;;  %vm706_vm0 = vcmask 130048   ;;  %s4632_s17 = smov 111  }
  0x58   : > { %4605 = vsyncadd (%p5707_p2), [#allocation6], 4294961152  ;;  %v4331_v3 = vpack.c.bf16 %v317_v1, %v316_v0  ;;  %v319_v4 = vld [vmem:[%s4831_s15 + $0x18] sm:$0xff]  ;;  %v320_v6 = vld [vmem:[%s4831_s15 + $0x20] sm:$0xff]  ;;  %s4633_s20 = smov 112   ;;  %s4634_s21 = smov 110  }
  0x59   : > { %v4335_v5 = vpack.c.bf16 %v319_v4, %v318_v2  ;;  %v321_v7 = vld [vmem:[%s4831_s15 + $0x28] sm:$0xff]  ;;  %v348_v9 = vld [vmem:[#allocation5] sm:$0xff]  ;;  %v322_v10 = vld [vmem:[%s4831_s15 + $0x30] sm:$0xff]  ;;  %s4635_s23 = smov 1   ;;  %s4637_s9 = smov [#allocation7]  }
  0x5a   : > { %4332 = vmatprep.subr.bf16.mxu0 %v4331_v3  ;;  %v4339_v8 = vpack.c.bf16 %v321_v7, %v320_v6  ;;  %v323_v11 = vld [vmem:[%s4831_s15 + $0x38] sm:$0xff]  ;;  %4089 = vmatprep.mubr.f32.mxu0 %v348_v9  ;;  %v324_v13 = vld [vmem:[%s4831_s15 + $0x40] sm:$0xff]  ;;  %v325_v14 = vld [vmem:[%s4831_s15 + $0x48] sm:$0xff]  ;;  %s4558_s10 = sshll.u32 %s4637_s9, 4  ;;  %s4559_s10 = int_to_ptr.vmem [resolvable:$false] %s4558_s10 }
  0x5b   : > { %4334 = vmatpush3.bf16.msra.mxu0 %v4331_v3  ;;  %v4343_v12 = vpack.c.bf16 %v323_v11, %v322_v10  ;;  %v4347_v15 = vpack.c.bf16 %v325_v14, %v324_v13  ;;  %v326_v16 = vld [vmem:[%s4831_s15 + $0x50] sm:$0xff]  ;;  %v327_v17 = vld [vmem:[%s4831_s15 + $0x58] sm:$0xff]  ;;  %v328_v19 = vld [vmem:[%s4831_s15 + $0x60] sm:$0xff]  ;;  %s4560_s16 = scalar_lea.vmem %s4559_s10, 4096 }
  0x5c   : > { %4336 = vmatprep.subr.bf16.mxu0 %v4335_v5  ;;  %v4351_v18 = vpack.c.bf16 %v327_v17, %v326_v16  ;;  %v329_v20 = vld [vmem:[%s4831_s15 + $0x68] sm:$0xff]  ;;  %v330_v21 = vld [vmem:[%s4831_s15 + $0x70] sm:$0xff]  ;;  %v331_v23 = vld [vmem:[%s4831_s15 + $0x78] sm:$0xff]  ;;  %v4630_v17 = vmov 1  }
  0x5d   : > { %v4355_v22 = vpack.c.bf16 %v329_v20, %v328_v19  ;;  %v4359_v24 = vpack.c.bf16 %v331_v23, %v330_v21  ;;  %v349_v25 = vld [vmem:[#allocation5 + $0x8] sm:$0xff]  ;;  %v350_v26 = vld [vmem:[#allocation5 + $0x10] sm:$0xff]  ;;  %v351_v27 = vld [vmem:[#allocation5 + $0x18] sm:$0xff]  ;;  %4476 = vset.pattern.permute.xlu1 %v4630_v17  ;;  %4475 = vset.pattern.permute.xlu0 %v4630_v17 }
  0x5e   : > { %v352_v28 = vld [vmem:[#allocation5 + $0x20] sm:$0xff]  ;;  %v353_v29 = vld [vmem:[#allocation5 + $0x28] sm:$0xff]  ;;  %v354_v30 = vld [vmem:[#allocation5 + $0x30] sm:$0xff] }
  0x5f   : > { %4338 = vmatpush3.bf16.msra.mxu0 %v4335_v5  ;;  %v355_v31 = vld [vmem:[#allocation5 + $0x38] sm:$0xff]  ;;  %v356_v32 = vld [vmem:[#allocation5 + $0x40] sm:$0xff]  ;;  %v357_v33 = vld [vmem:[#allocation5 + $0x48] sm:$0xff] }
  0x60   : > { %4340 = vmatprep.subr.bf16.mxu0 %v4339_v8  ;;  %v358_v34 = vld [vmem:[#allocation5 + $0x50] sm:$0xff]  ;;  %v359_v35 = vld [vmem:[#allocation5 + $0x58] sm:$0xff]  ;;  %v360_v36 = vld [vmem:[#allocation5 + $0x60] sm:$0xff] }
  0x61   : > { %v361_v37 = vld [vmem:[#allocation5 + $0x68] sm:$0xff]  ;;  %v362_v38 = vld [vmem:[#allocation5 + $0x70] sm:$0xff]  ;;  %v363_v39 = vld [vmem:[#allocation5 + $0x78] sm:$0xff] }
  0x62   : > { %v364_v40 = vld [vmem:[#allocation5 + $0x80] sm:$0xff]  ;;  %v365_v41 = vld [vmem:[#allocation5 + $0x88] sm:$0xff]  ;;  %v366_v42 = vld [vmem:[#allocation5 + $0x90] sm:$0xff] }
  0x63   : > { %4342 = vmatpush3.bf16.msra.mxu0 %v4339_v8  ;;  %v367_v43 = vld [vmem:[#allocation5 + $0x98] sm:$0xff]  ;;  %v368_v44 = vld [vmem:[#allocation5 + $0xa0] sm:$0xff]  ;;  %v369_v45 = vld [vmem:[#allocation5 + $0xa8] sm:$0xff] }
  0x64   : > { %4344 = vmatprep.subr.bf16.mxu0 %v4343_v12  ;;  %v370_v46 = vld [vmem:[#allocation5 + $0xb0] sm:$0xff]  ;;  %v371_v47 = vld [vmem:[#allocation5 + $0xb8] sm:$0xff]  ;;  %v372_v48 = vld [vmem:[#allocation5 + $0xc0] sm:$0xff] }
  0x65   : > { %v373_v49 = vld [vmem:[#allocation5 + $0xc8] sm:$0xff]  ;;  %v374_v50 = vld [vmem:[#allocation5 + $0xd0] sm:$0xff]  ;;  %v375_v51 = vld [vmem:[#allocation5 + $0xd8] sm:$0xff] }
  0x66   : > { %v376_v52 = vld [vmem:[#allocation5 + $0xe0] sm:$0xff]  ;;  %v377_v53 = vld [vmem:[#allocation5 + $0xe8] sm:$0xff]  ;;  %v378_v54 = vld [vmem:[#allocation5 + $0xf0] sm:$0xff] }
  0x67   : > { %4346 = vmatpush3.bf16.msra.mxu0 %v4343_v12  ;;  %v379_v55 = vld [vmem:[#allocation5 + $0xf8] sm:$0xff]  ;;  %v380_v56 = vld [vmem:[#allocation5 + $0x100] sm:$0xff]  ;;  %v381_v57 = vld [vmem:[#allocation5 + $0x108] sm:$0xff] }
  0x68   : > { %4348 = vmatprep.subr.bf16.mxu0 %v4347_v15  ;;  %v382_v58 = vld [vmem:[#allocation5 + $0x110] sm:$0xff]  ;;  %v383_v59 = vld [vmem:[#allocation5 + $0x118] sm:$0xff]  ;;  %v384_v60 = vld [vmem:[#allocation5 + $0x120] sm:$0xff] }
  0x69   : > { %v385_v61 = vld [vmem:[#allocation5 + $0x128] sm:$0xff]  ;;  %v386_v62 = vld [vmem:[#allocation5 + $0x130] sm:$0xff]  ;;  %v387_v63 = vld [vmem:[#allocation5 + $0x138] sm:$0xff] }
  0x6a   : > { %v388_v0 = vld [vmem:[#allocation5 + $0x140] sm:$0xff]  ;;  %v389_v1 = vld [vmem:[#allocation5 + $0x148] sm:$0xff]  ;;  %v390_v2 = vld [vmem:[#allocation5 + $0x150] sm:$0xff] }
  0x6b   : > { %4350 = vmatpush3.bf16.msra.mxu0 %v4347_v15  ;;  %v391_v3 = vld [vmem:[#allocation5 + $0x158] sm:$0xff]  ;;  %v392_v4 = vld [vmem:[#allocation5 + $0x160] sm:$0xff]  ;;  %v393_v5 = vld [vmem:[#allocation5 + $0x168] sm:$0xff] }
  0x6c   : > { %4352 = vmatprep.subr.bf16.mxu0 %v4351_v18  ;;  %v394_v6 = vld [vmem:[#allocation5 + $0x170] sm:$0xff]  ;;  %v395_v7 = vld [vmem:[#allocation5 + $0x178] sm:$0xff]  ;;  %v701_v11 = vld [vmem:[%s5685_s3] sm:$0xff] }
  0x6d   : > { %v3609_v8 = vld [vmem:[%s5685_s3 + $0x10] sm:$0xff]  ;;  %v3610_v9 = vld [vmem:[%s5685_s3 + $0x18] sm:$0xff]  ;;  %v702_v12 = vld [vmem:[%s5685_s3 + $0x8] sm:$0xff] }
  0x6e   : > { %v4363_v10 = vpack.c.bf16 %v3610_v9, %v3609_v8  ;;  %v4869_v13 = vpack.c.bf16 %v702_v12, %v701_v11  ;;  %v4875_v14 = vld [vmem:[%s5683_s1 + $0x8] sm:$0xff]  ;;  %v3661_v15 = vld [vmem:[%s5686_s4] ss:$0 sm:$0xff]  ;;  %v4893_v20 = vld [vmem:[%s5683_s1 + $0x10] sm:$0xff] }
  0x6f   : > { %4354 = vmatpush3.bf16.msra.mxu0 %v4351_v18  ;;  %1311 = vrot.lane.b32.xlu0 %v3661_v15, %s4631_s30  ;;  %v4888_v19 = vld [vmem:[%s5683_s1] sm:$0xff]  ;;  %v346_v11 = vld [vmem:[%s5683_s1 + $0x70] sm:$0xff]  ;;  %v347_v17 = vld [vmem:[%s5683_s1 + $0x78] sm:$0xff] }
  0x70   : > { %4356 = vmatprep.subr.bf16.mxu0 %v4355_v22  ;;  %4364 = vmatprep.subr.bf16.mxu1 %v4363_v10  ;;  %v4904_v23 = vld [vmem:[%s5683_s1 + $0x20] sm:$0xff] }
  0x71   : > { %4366 = vmatpush3.bf16.msra.mxu1 %v4363_v10  ;;  %1713 = vperm.xlu1 %4476, %v4875_v14  }
  0x72   : > { %4368 = vmatprep.subr.bf16.mxu1 %v4869_v13 }
  0x73   : > { %4358 = vmatpush3.bf16.msra.mxu0 %v4355_v22  ;;  %1708 = vperm.xlu0 %4475, %v4888_v19  }
  0x74   : > { %4360 = vmatprep.subr.bf16.mxu0 %v4359_v24 }
  0x75   : > { %1718 = vperm.xlu1 %4476, %v4893_v20  }
  0x77   : > { %4362 = vmatpush3.bf16.msra.mxu0 %v4359_v24  ;;  %v4909_v24 = vld [vmem:[%s5683_s1 + $0x18] sm:$0xff]  ;;  %1728 = vperm.xlu0 %4475, %v4904_v23  }
  0x79   : > { %1723 = vperm.xlu1 %4476, %v4909_v24  }
  0x7a   : > { %4090 = vmatmul.mubr.f32.vlgmr.msra.gmra.mrb[0].mxu0 %v349_v25 }
  0x7b   : > { %4092 = vmatprep.mubr.f32.mxu0 %v350_v26 }
  0x7e   : > { %4093 = vmatmul.mubr.f32.gmra.mrb[2].mxu0 %v351_v27  ;;  %v4920_v27 = vld [vmem:[%s5683_s1 + $0x30] sm:$0xff] }
  0x7f   : > { %4095 = vmatprep.mubr.f32.mxu0 %v352_v28  ;;  %v4925_v28 = vld [vmem:[%s5683_s1 + $0x28] sm:$0xff]  ;;  %1738 = vperm.xlu0 %4475, %v4920_v27  }
  0x80   : > { %1733 = vperm.xlu1 %4476, %v4925_v28  }
  0x82   : > { %4096 = vmatmul.mubr.f32.gmra.mrb[4].mxu0 %v353_v29 }
  0x83   : > { %4098 = vmatprep.mubr.f32.mxu0 %v354_v30  ;;  %v1803_v30 = vadd.f32 15.0, %v4875_v14 }
  0x85   : > { %1825 = vperm.xlu0 %4475, %v1803_v30  }
  0x86   : > { %4099 = vmatmul.mubr.f32.gmra.mrb[6].mxu0 %v355_v31 }
  0x87   : > { %4101 = vmatprep.mubr.f32.mxu0 %v356_v32  ;;  %v1802_v32 = vadd.f32 15.0, %v4888_v19 }
  0x89   : > { %1820 = vperm.xlu1 %4476, %v1802_v32  }
  0x8a   : > { %4102 = vmatmul.mubr.f32.gmra.mrb[8].mxu0 %v357_v33 }
  0x8b   : > { %4104 = vmatprep.mubr.f32.mxu0 %v358_v34  ;;  %v1805_v34 = vadd.f32 15.0, %v4909_v24 }
  0x8d   : > { %1835 = vperm.xlu0 %4475, %v1805_v34   ;;  %v1817_v34 = vadd.f32 15.0, %v347_v17 }
  0x8e   : > { %4105 = vmatmul.mubr.f32.gmra.mrb[10].mxu0 %v359_v35 }
  0x8f   : > { %4107 = vmatprep.mubr.f32.mxu0 %v360_v36  ;;  %v1804_v36 = vadd.f32 15.0, %v4893_v20 }
  0x91   : > { %1830 = vperm.xlu1 %4476, %v1804_v36  }
  0x92   : > { %4108 = vmatmul.mubr.f32.gmra.mrb[12].mxu0 %v361_v37 }
  0x93   : > { %4110 = vmatprep.mubr.f32.mxu0 %v362_v38  ;;  %v1807_v38 = vadd.f32 15.0, %v4925_v28 }
  0x95   : > { %1845 = vperm.xlu0 %4475, %v1807_v38  }
  0x96   : > { %4111 = vmatmul.mubr.f32.gmra.mrb[14].mxu0 %v363_v39 }
  0x97   : > { %4113 = vmatprep.mubr.f32.mxu0 %v364_v40  ;;  %v1806_v40 = vadd.f32 15.0, %v4904_v23 }
  0x99   : > { %1840 = vperm.xlu1 %4476, %v1806_v40  }
  0x9a   : > { %4114 = vmatmul.mubr.f32.gmra.mrb[16].mxu0 %v365_v41 }
  0x9b   : > { %4116 = vmatprep.mubr.f32.mxu0 %v366_v42  ;;  %v1808_v42 = vadd.f32 15.0, %v4920_v27 }
  0x9d   : > { %1850 = vperm.xlu0 %4475, %v1808_v42  }
  0x9e   : > { %4117 = vmatmul.mubr.f32.gmra.mrb[18].mxu0 %v367_v43 }
  0x9f   : > { %4119 = vmatprep.mubr.f32.mxu0 %v368_v44  ;;  %v4955_v44 = vld [vmem:[%s5683_s1 + $0x38] sm:$0xff] }
  0xa0   : > { %1743 = vperm.xlu1 %4476, %v4955_v44  }
  0xa2   : > { %4120 = vmatmul.mubr.f32.gmra.mrb[20].mxu0 %v369_v45 }
  0xa3   : > { %4122 = vmatprep.mubr.f32.mxu0 %v370_v46 }
  0xa6   : > { %4123 = vmatmul.mubr.f32.gmra.mrb[22].mxu0 %v371_v47  ;;  %v1809_v47 = vadd.f32 15.0, %v4955_v44 }
  0xa7   : > { %4125 = vmatprep.mubr.f32.mxu0 %v372_v48  ;;  %v4966_v48 = vld [vmem:[%s5683_s1 + $0x40] sm:$0xff] }
  0xa8   : > { %1748 = vperm.xlu0 %4475, %v4966_v48   ;;  %1855 = vperm.xlu1 %4476, %v1809_v47  }
  0xaa   : > { %4126 = vmatmul.mubr.f32.gmra.mrb[24].mxu0 %v373_v49  ;;  %v3643_v49 = vld [vmem:[%s5685_s3 + $0x20] sm:$0xff] }
  0xab   : > { %4128 = vmatprep.mubr.f32.mxu0 %v374_v50  ;;  %v3644_v50 = vld [vmem:[%s5685_s3 + $0x28] sm:$0xff] }
  0xae   : > { %4129 = vmatmul.mubr.f32.gmra.mrb[26].mxu0 %v375_v51 }
  0xaf   : > { %4131 = vmatprep.mubr.f32.mxu0 %v376_v52  ;;  %v1810_v52 = vadd.f32 15.0, %v4966_v48 }
  0xb1   : > { %1860 = vperm.xlu0 %4475, %v1810_v52  }
  0xb2   : > { %4132 = vmatmul.mubr.f32.gmra.mrb[28].mxu0 %v377_v53 }
  0xb3   : > { %4134 = vmatprep.mubr.f32.mxu0 %v378_v54  ;;  %v4976_v54 = vpack.c.bf16 %v3644_v50, %v3643_v49 }
  0xb6   : > { %4135 = vmatmul.mubr.f32.gmra.mrb[30].mxu0 %v379_v55  ;;  %v4982_v55 = vld [vmem:[%s5683_s1 + $0x48] sm:$0xff] }
  0xb7   : > { %4137 = vmatprep.mubr.f32.mxu0 %v380_v56  ;;  %1753 = vperm.xlu1 %4476, %v4982_v55  }
  0xba   : > { %4138 = vmatmul.mubr.f32.gmra.mrb[32].mxu0 %v381_v57 }
  0xbb   : > { %4140 = vmatprep.mubr.f32.mxu0 %v382_v58  ;;  %v1811_v58 = vadd.f32 15.0, %v4982_v55 }
  0xbd   : > { %1865 = vperm.xlu1 %4476, %v1811_v58  }
  0xbe   : > { %4141 = vmatmul.mubr.f32.gmra.mrb[34].mxu0 %v383_v59  ;;  %v4992_v59 = vld [vmem:[%s5683_s1 + $0x50] sm:$0xff] }
  0xbf   : > { %4143 = vmatprep.mubr.f32.mxu0 %v384_v60  ;;  %1758 = vperm.xlu0 %4475, %v4992_v59  }
  0xc2   : > { %4144 = vmatmul.mubr.f32.gmra.mrb[36].mxu0 %v385_v61  ;;  %v1812_v61 = vadd.f32 15.0, %v4992_v59 }
  0xc3   : > { %4146 = vmatprep.mubr.f32.mxu0 %v386_v62 }
  0xc4   : > { %1870 = vperm.xlu0 %4475, %v1812_v61  }
  0xc6   : > { %4147 = vmatmul.mubr.f32.gmra.mrb[38].mxu0 %v387_v63  ;;  %v5002_v63 = vld [vmem:[%s5683_s1 + $0x58] sm:$0xff] }
  0xc7   : > { %4149 = vmatprep.mubr.f32.mxu0 %v388_v0  ;;  %1763 = vperm.xlu1 %4476, %v5002_v63  }
  0xca   : > { %4150 = vmatmul.mubr.f32.gmra.mrb[40].mxu0 %v389_v1 }
  0xcb   : > { %4152 = vmatprep.mubr.f32.mxu0 %v390_v2  ;;  %v1813_v2 = vadd.f32 15.0, %v5002_v63 }
  0xcd   : > { %1875 = vperm.xlu1 %4476, %v1813_v2  }
  0xce   : > { %4153 = vmatmul.mubr.f32.gmra.mrb[42].mxu0 %v391_v3  ;;  %v344_v3 = vld [vmem:[%s5683_s1 + $0x60] sm:$0xff] }
  0xcf   : > { %4155 = vmatprep.mubr.f32.mxu0 %v392_v4  ;;  %1768 = vperm.xlu0 %4475, %v344_v3  }
  0xd2   : > { %4156 = vmatmul.mubr.f32.gmra.mrb[44].mxu0 %v393_v5  ;;  %v1814_v5 = vadd.f32 15.0, %v344_v3 }
  0xd3   : > { %4158 = vmatprep.mubr.f32.mxu0 %v394_v6 }
  0xd4   : > { %1880 = vperm.xlu0 %4475, %v1814_v5  }
  0xd6   : > { %4159 = vmatmul.mubr.f32.gmra.mrb[46].mxu0 %v395_v7  ;;  %v345_v7 = vld [vmem:[%s5683_s1 + $0x68] sm:$0xff] }
  0xd7   : > { %1773 = vperm.xlu1 %4476, %v345_v7   ;;  %v1815_v10 = vadd.f32 15.0, %v345_v7 }
  0xd8   : > { %1778 = vperm.xlu0 %4475, %v346_v11  }
  0xdb   : > { %1885 = vperm.xlu1 %4476, %v1815_v10  }
  0xdf   : > { %1783 = vperm.xlu1 %4476, %v347_v17  }
  0xe3   : > { %1895 = vperm.xlu1 %4476, %v1817_v34  }
  0xf0   : > { %v5117_v5 = vpop.permute.xlu1 %1713 }
  0xf4   : > { %v5127_v10 = vpop.permute.xlu1 %1718 }
 0x14d   : > { %v4880_v16 = vpop.f32.mrb[0].mxu0 }
 0x14e   : > { %v4882_v18 = vpop.f32.mrb[1].mxu0 }
 0x151   : > { %v4895_v21 = vpop.f32.mrb[2].mxu0 }
 0x152   : > { %v4898_v22 = vpop.f32.mrb[3].mxu0 }
 0x155   : > { %v4911_v25 = vpop.f32.mrb[4].mxu0 }
 0x156   : > { %v4914_v26 = vpop.f32.mrb[5].mxu0 }
 0x159   : > { %v4927_v29 = vpop.f32.mrb[6].mxu0 }
 0x15a   : > { %v4931_v31 = vpop.f32.mrb[7].mxu0 }
 0x15d   : > { %v4935_v33 = vpop.f32.mrb[8].mxu0 }
 0x15e   : > { %v4938_v35 = vpop.f32.mrb[9].mxu0 }
 0x161   : > { %v4941_v37 = vpop.f32.mrb[10].mxu0 }
 0x162   : > { %v4944_v39 = vpop.f32.mrb[11].mxu0 }
 0x165   : > { %v4947_v41 = vpop.f32.mrb[12].mxu0 }
 0x166   : > { %v4950_v43 = vpop.f32.mrb[13].mxu0 }
 0x169   : > { %v4957_v45 = vpop.f32.mrb[14].mxu0 }
 0x16a   : > { %v4959_v46 = vpop.f32.mrb[15].mxu0 }
 0x16d   : > { %v4115_v51 = vpop.f32.mrb[16].mxu0 }
 0x16e   : > { %v542_v53 = vpop.f32.mrb[17].mxu0 }
 0x16f   : > { %4165 = vmatprep.mubr.msk.f32.mxu1 %vm706_vm0, %v542_v53 }
 0x170   : > { %4166 = vmatmul.mubr.msk.f32.vlgmr.msra.gmra.mrb[0].mxu1 %vm706_vm0, %v4115_v51 }
 0x171   : > { %4370 = vmatpush3.bf16.msra.mxu1 %v4869_v13  ;;  %v4118_v56 = vpop.f32.mrb[18].mxu0  ;;  %v1816_v13 = vadd.f32 15.0, %v346_v11 }
 0x172   : > { %v552_v57 = vpop.f32.mrb[19].mxu0  ;;  %4372 = vmatprep.subr.bf16.mxu1 %v4976_v54 }
 0x173   : > { %4168 = vmatprep.mubr.msk.f32.mxu1 %vm706_vm0, %v552_v57  ;;  %1890 = vperm.xlu0 %4475, %v1816_v13  }
 0x174   : > { %4169 = vmatmul.mubr.msk.f32.gmra.mrb[2].mxu1 %vm706_vm0, %v4118_v56 }
 0x175   : > { %v4121_v60 = vpop.f32.mrb[20].mxu0 }
 0x176   : > { %v562_v62 = vpop.f32.mrb[21].mxu0 }
 0x177   : > { %4171 = vmatprep.mubr.msk.f32.mxu1 %vm706_vm0, %v562_v62 }
 0x178   : > { %4172 = vmatmul.mubr.msk.f32.gmra.mrb[4].mxu1 %vm706_vm0, %v4121_v60 }
 0x179   : > { %v4124_v0 = vpop.f32.mrb[22].mxu0 }
 0x17a   : > { %v572_v1 = vpop.f32.mrb[23].mxu0 }
 0x17b   : > { %4174 = vmatprep.mubr.msk.f32.mxu1 %vm706_vm0, %v572_v1 }
 0x17c   : > { %4175 = vmatmul.mubr.msk.f32.gmra.mrb[6].mxu1 %vm706_vm0, %v4124_v0 }
 0x17d   : > { %v4127_v4 = vpop.f32.mrb[24].mxu0 }
 0x17e   : > { %v582_v6 = vpop.f32.mrb[25].mxu0 }
 0x17f   : > { %4177 = vmatprep.mubr.msk.f32.mxu1 %vm706_vm0, %v582_v6 }
 0x180   : > { %4178 = vmatmul.mubr.msk.f32.gmra.mrb[8].mxu1 %vm706_vm0, %v4127_v4 }
 0x181   : > { %v4130_v8 = vpop.f32.mrb[26].mxu0 }
 0x182   : > { %v592_v9 = vpop.f32.mrb[27].mxu0 }
 0x183   : > { %4180 = vmatprep.mubr.msk.f32.mxu1 %vm706_vm0, %v592_v9 }
 0x184   : > { %4181 = vmatmul.mubr.msk.f32.gmra.mrb[10].mxu1 %vm706_vm0, %v4130_v8 }
 0x185   : > { %v4133_v12 = vpop.f32.mrb[28].mxu0 }
 0x186   : > { %v602_v15 = vpop.f32.mrb[29].mxu0 }
 0x187   : > { %4183 = vmatprep.mubr.msk.f32.mxu1 %vm706_vm0, %v602_v15 }
 0x188   : > { %4184 = vmatmul.mubr.msk.f32.gmra.mrb[12].mxu1 %vm706_vm0, %v4133_v12 }
 0x189   : > { %v4136_v30 = vpop.f32.mrb[30].mxu0 }
 0x18a   : > { %v612_v32 = vpop.f32.mrb[31].mxu0 }
 0x18b   : > { %4186 = vmatprep.mubr.msk.f32.mxu1 %vm706_vm0, %v612_v32 }
 0x18c   : > { %4187 = vmatmul.mubr.msk.f32.gmra.mrb[14].mxu1 %vm706_vm0, %v4136_v30 }
 0x18d   : > { %4193 = vmatprep.mubr.msk.f32.mxu1 %vm706_vm0, %v4882_v18  ;;  %v4139_v36 = vpop.f32.mrb[32].mxu0 }
 0x18e   : > { %v622_v38 = vpop.f32.mrb[33].mxu0 }
 0x190   : > { %4194 = vmatmul.mubr.msk.f32.vlgmr.msra.gmra.mrb[0].mxu1 %vm706_vm0, %v4880_v16 }
 0x191   : > { %4374 = vmatpush3.bf16.msra.mxu1 %v4976_v54  ;;  %4196 = vmatprep.mubr.msk.f32.mxu1 %vm706_vm0, %v4898_v22  ;;  %v4142_v40 = vpop.f32.mrb[34].mxu0 }
 0x192   : > { %v632_v42 = vpop.f32.mrb[35].mxu0 }
 0x194   : > { %4197 = vmatmul.mubr.msk.f32.gmra.mrb[2].mxu1 %vm706_vm0, %v4895_v21 }
 0x195   : > { %4199 = vmatprep.mubr.msk.f32.mxu1 %vm706_vm0, %v4914_v26  ;;  %v4145_v18 = vpop.f32.mrb[36].mxu0 }
 0x196   : > { %v642_v47 = vpop.f32.mrb[37].mxu0 }
 0x198   : > { %4200 = vmatmul.mubr.msk.f32.gmra.mrb[4].mxu1 %vm706_vm0, %v4911_v25 }
 0x199   : > { %4202 = vmatprep.mubr.msk.f32.mxu1 %vm706_vm0, %v4931_v31  ;;  %v4148_v16 = vpop.f32.mrb[38].mxu0 }
 0x19a   : > { %v652_v49 = vpop.f32.mrb[39].mxu0 }
 0x19c   : > { %4203 = vmatmul.mubr.msk.f32.gmra.mrb[6].mxu1 %vm706_vm0, %v4927_v29 }
 0x19d   : > { %4205 = vmatprep.mubr.msk.f32.mxu1 %vm706_vm0, %v4938_v35  ;;  %v4151_v21 = vpop.f32.mrb[40].mxu0 }
 0x19e   : > { %v662_v22 = vpop.f32.mrb[41].mxu0 }
 0x1a0   : > { %4206 = vmatmul.mubr.msk.f32.gmra.mrb[8].mxu1 %vm706_vm0, %v4935_v33 }
 0x1a1   : > { %4208 = vmatprep.mubr.msk.f32.mxu1 %vm706_vm0, %v4944_v39  ;;  %v4154_v25 = vpop.f32.mrb[42].mxu0  ;;  %v4478_v39 = vld [vmem:[%s5687_s5 + $0x8] sm:$0xff]  }
 0x1a2   : > { %v672_v26 = vpop.f32.mrb[43].mxu0  ;;  %4263 = vmatprep.subr.bf16.mxu0 %v4478_v39 }
 0x1a3   : > { %4264 = vmatpush3.bf16.msra.mxu0 %v4478_v39 }
 0x1a4   : > { %4209 = vmatmul.mubr.msk.f32.gmra.mrb[10].mxu1 %vm706_vm0, %v4941_v37  ;;  %v4477_v37 = vld [vmem:[%s5687_s5] sm:$0xff]  }
 0x1a5   : > { %4211 = vmatprep.mubr.msk.f32.mxu1 %vm706_vm0, %v4950_v43  ;;  %v4157_v29 = vpop.f32.mrb[44].mxu0  ;;  %4245 = vmatprep.subr.bf16.mxu1 %v4477_v37  ;;  %v5087_v43 = vpop.permute.xlu0 %1311 }
 0x1a6   : > { %v682_v31 = vpop.f32.mrb[45].mxu0 }
 0x1a8   : > { %4212 = vmatmul.mubr.msk.f32.gmra.mrb[12].mxu1 %vm706_vm0, %v4947_v41  ;;  %v4479_v41 = vld [vmem:[%s5687_s5 + $0x10] sm:$0xff]  }
 0x1a9   : > { %4214 = vmatprep.mubr.msk.f32.mxu1 %vm706_vm0, %v4959_v46  ;;  %v4160_v33 = vpop.f32.mrb[46].mxu0  ;;  %v5145_v32 = vpop.permute.xlu0 %1708 }
 0x1aa   : > { %v692_v35 = vpop.f32.mrb[47].mxu0 }
 0x1ac   : > { %4215 = vmatmul.mubr.msk.f32.gmra.mrb[14].mxu1 %vm706_vm0, %v4957_v45 }
 0x1ad   : > { %4221 = vmatprep.mubr.msk.f32.mxu1 %vm706_vm0, %v622_v38 }
 0x1b0   : > { %4222 = vmatmul.mubr.msk.f32.vlgmr.msra.gmra.mrb[0].mxu1 %vm706_vm0, %v4139_v36  ;;  %v5150_v36 = vpop.permute.xlu1 %1723 }
 0x1b1   : > { %4224 = vmatprep.mubr.msk.f32.mxu1 %vm706_vm0, %v632_v42  ;;  %4246 = vmatpush3.bf16.msra.mxu1 %v4477_v37 }
 0x1b2   : > { %4281 = vmatprep.subr.bf16.mxu1 %v4479_v41 }
 0x1b4   : > { %4225 = vmatmul.mubr.msk.f32.gmra.mrb[2].mxu1 %vm706_vm0, %v4142_v40  ;;  %v5160_v40 = vpop.permute.xlu0 %1728  ;;  %v5163_v42 = vpop.permute.xlu1 %1733 }
 0x1b5   : > { %4227 = vmatprep.mubr.msk.f32.mxu1 %vm706_vm0, %v642_v47 }
 0x1b8   : > { %4228 = vmatmul.mubr.msk.f32.gmra.mrb[4].mxu1 %vm706_vm0, %v4145_v18 }
 0x1b9   : > { %4230 = vmatprep.mubr.msk.f32.mxu1 %vm706_vm0, %v652_v49  ;;  %v5175_v49 = vpop.permute.xlu1 %1820 }
 0x1bc   : > { %4231 = vmatmul.mubr.msk.f32.gmra.mrb[6].mxu1 %vm706_vm0, %v4148_v16  ;;  %v5172_v16 = vpop.permute.xlu0 %1738 }
 0x1bd   : > { %4233 = vmatprep.mubr.msk.f32.mxu1 %vm706_vm0, %v662_v22  ;;  %v5182_v22 = vpop.permute.xlu1 %1830 }
 0x1c0   : > { %4234 = vmatmul.mubr.msk.f32.gmra.mrb[8].mxu1 %vm706_vm0, %v4151_v21  ;;  %v5179_v21 = vpop.permute.xlu0 %1825 }
 0x1c1   : > { %4236 = vmatprep.mubr.msk.f32.mxu1 %vm706_vm0, %v672_v26 }
 0x1c4   : > { %4237 = vmatmul.mubr.msk.f32.gmra.mrb[10].mxu1 %vm706_vm0, %v4154_v25 }
 0x1c5   : > { %4239 = vmatprep.mubr.msk.f32.mxu1 %vm706_vm0, %v682_v31  ;;  %v5193_v31 = vpop.permute.xlu1 %1840 }
 0x1c8   : > { %4240 = vmatmul.mubr.msk.f32.gmra.mrb[12].mxu1 %vm706_vm0, %v4157_v29  ;;  %v5191_v29 = vpop.permute.xlu0 %1835 }
 0x1c9   : > { %4242 = vmatprep.mubr.msk.f32.mxu1 %vm706_vm0, %v692_v35  ;;  %v5202_v35 = vpop.permute.xlu1 %1743 }
 0x1cc   : > { %4243 = vmatmul.mubr.msk.f32.gmra.mrb[14].mxu1 %vm706_vm0, %v4160_v33  ;;  %v5199_v33 = vpop.permute.xlu0 %1845 }
 0x283   : > { %v4223_v45 = vpop.f32.mrb[0].mxu1 }
 0x284   : > { %v1315_v46 = vadd.f32 %v4223_v45, %v5087_v43  ;;  %v1210_v50 = vpop.f32.mrb[1].mxu1 }
 0x285   : > { %v1314_v51 = vadd.f32 %v5087_v43, %v1210_v50  ;;  %v5091_v52 = vpack.c.bf16 %v4223_v45, %v1210_v50  ;;  %v5213_v45 = vpop.permute.xlu1 %1855 }
 0x286   : > { %2452 = vrot.lane.b32.xlu0 %v1315_v46, %s4632_s17 }
 0x287   : > { %4265 = vmatprep.mubr.msk.bf16.mxu0 %vm706_vm0, %v5091_v52  ;;  %2450 = vrot.lane.b32.xlu1 %v1314_v51, %s4632_s17  ;;  %v4226_v53 = vpop.f32.mrb[2].mxu1 }
 0x288   : > { %4247 = vmatprep.mubr.msk.bf16.mxu1 %vm706_vm0, %v5091_v52  ;;  %v1220_v54 = vpop.f32.mrb[3].mxu1  ;;  %v1317_v62 = vadd.f32 %v4226_v53, %v5087_v43 }
 0x289   : > { %v5099_v56 = vpack.c.bf16 %v4226_v53, %v1220_v54  ;;  %v1316_v1 = vadd.f32 %v5087_v43, %v1220_v54  ;;  %v5220_v50 = vpop.permute.xlu1 %1753 }
 0x28a   : > { %2028 = vrot.lane.b32.xlu0 %v1315_v46, %s4633_s20 }
 0x28b   : > { %2026 = vrot.lane.b32.xlu1 %v1314_v51, %s4633_s20  ;;  %v4229_v57 = vpop.f32.mrb[4].mxu1  ;;  %4248 = vmatmul.mubr.msk.bf16.vlgmr.msra.gmra.mrb[16].mxu1 %vm706_vm0, %v5099_v56 }
 0x28c   : > { %4266 = vmatmul.mubr.msk.bf16.vlgmr.msra.gmra.mrb[48].mxu0 %vm706_vm0, %v5099_v56  ;;  %v1230_v58 = vpop.f32.mrb[5].mxu1  ;;  %4282 = vmatpush3.bf16.msra.mxu1 %v4479_v41  ;;  %v1319_v12 = vadd.f32 %v4229_v57, %v5087_v43  ;;  %v5211_v41 = vpop.permute.xlu0 %1850 }
 0x28d   : > { %v1332_v60 = vpack.c.bf16 %v4229_v57, %v1230_v58  ;;  %v1318_v15 = vadd.f32 %v5087_v43, %v1230_v58  ;;  %v5231_v54 = vpop.permute.xlu1 %1865 }
 0x28e   : > { %2876 = vrot.lane.b32.xlu0 %v1315_v46, %s4634_s21 }
 0x28f   : > { %2874 = vrot.lane.b32.xlu1 %v1314_v51, %s4634_s21  ;;  %v4232_v61 = vpop.f32.mrb[6].mxu1  ;;  %4251 = vmatprep.mubr.msk.bf16.mxu1 %vm706_vm0, %v1332_v60 }
 0x290   : > { %4269 = vmatprep.mubr.msk.bf16.mxu0 %vm706_vm0, %v1332_v60  ;;  %v1240_v0 = vpop.f32.mrb[7].mxu1  ;;  %v1321_v18 = vadd.f32 %v4232_v61, %v5087_v43  ;;  %v5217_v46 = vpop.permute.xlu0 %1748 }
 0x291   : > { %v1333_v2 = vpack.c.bf16 %v4232_v61, %v1240_v0  ;;  %v1320_v47 = vadd.f32 %v5087_v43, %v1240_v0  ;;  %v5238_v57 = vpop.permute.xlu1 %1763 }
 0x292   : > { %2456 = vrot.lane.b32.xlu0 %v1317_v62, %s4632_s17 }
 0x293   : > { %2454 = vrot.lane.b32.xlu1 %v1316_v1, %s4632_s17  ;;  %v4235_v3 = vpop.f32.mrb[8].mxu1  ;;  %4252 = vmatmul.mubr.msk.bf16.gmra.mrb[20].mxu1 %vm706_vm0, %v1333_v2 }
 0x294   : > { %4270 = vmatmul.mubr.msk.bf16.gmra.mrb[52].mxu0 %vm706_vm0, %v1333_v2  ;;  %v1250_v4 = vpop.f32.mrb[9].mxu1  ;;  %v1323_v25 = vadd.f32 %v4235_v3, %v5087_v43  ;;  %v5229_v53 = vpop.permute.xlu0 %1860 }
 0x295   : > { %v1334_v6 = vpack.c.bf16 %v4235_v3, %v1250_v4  ;;  %v1322_v26 = vadd.f32 %v5087_v43, %v1250_v4 }
 0x296   : > { %2032 = vrot.lane.b32.xlu0 %v1317_v62, %s4633_s20 }
 0x297   : > { %2030 = vrot.lane.b32.xlu1 %v1316_v1, %s4633_s20  ;;  %v5121_v7 = vpop.f32.mrb[10].mxu1  ;;  %4255 = vmatprep.mubr.msk.bf16.mxu1 %vm706_vm0, %v1334_v6 }
 0x298   : > { %4273 = vmatprep.mubr.msk.bf16.mxu0 %vm706_vm0, %v1334_v6  ;;  %v1260_v8 = vpop.f32.mrb[11].mxu1  ;;  %v1325_v37 = vadd.f32 %v5121_v7, %v5087_v43 }
 0x299   : > { %v1335_v9 = vpack.c.bf16 %v5121_v7, %v1260_v8  ;;  %v1324_v39 = vadd.f32 %v5087_v43, %v1260_v8  ;;  %v1962_v7 = vmul.f32 0.13333334, %v4888_v19  ;;  %v1965_v19 = vmul.f32 0.13333334, %v4909_v24 }
 0x29a   : > { %2880 = vrot.lane.b32.xlu0 %v1317_v62, %s4634_s21  ;;  %v5249_v62 = vpop.permute.xlu1 %1875 }
 0x29b   : > { %2878 = vrot.lane.b32.xlu1 %v1316_v1, %s4634_s21  ;;  %v5130_v11 = vpop.f32.mrb[12].mxu1  ;;  %4256 = vmatmul.mubr.msk.bf16.gmra.mrb[24].mxu1 %vm706_vm0, %v1335_v9 }
 0x29c   : > { %4274 = vmatmul.mubr.msk.bf16.gmra.mrb[56].mxu0 %vm706_vm0, %v1335_v9  ;;  %v5135_v13 = vpop.f32.mrb[13].mxu1  ;;  %v1327_v51 = vadd.f32 %v5130_v11, %v5087_v43 }
 0x29d   : > { %v1336_v17 = vpack.c.bf16 %v5130_v11, %v5135_v13 }
 0x29e   : > { %2460 = vrot.lane.b32.xlu0 %v1319_v12, %s4632_s17  ;;  %v5256_v1 = vpop.permute.xlu1 %1773 }
 0x29f   : > { %2458 = vrot.lane.b32.xlu1 %v1318_v15, %s4632_s17  ;;  %v5142_v30 = vpop.f32.mrb[14].mxu1  ;;  %4259 = vmatprep.mubr.msk.bf16.mxu1 %vm706_vm0, %v1336_v17 }
 0x2a0   : > { %4277 = vmatprep.mubr.msk.bf16.mxu0 %vm706_vm0, %v1336_v17  ;;  %v5148_v34 = vpop.f32.mrb[15].mxu1  ;;  %v1329_v58 = vadd.f32 %v5142_v30, %v5087_v43 }
 0x2a1   : > { %v1337_v38 = vpack.c.bf16 %v5142_v30, %v5148_v34 }
 0x2a2   : > { %2036 = vrot.lane.b32.xlu0 %v1319_v12, %s4633_s20 }
 0x2a3   : > { %2034 = vrot.lane.b32.xlu1 %v1318_v15, %s4633_s20  ;;  %4260 = vmatmul.mubr.msk.bf16.gmra.mrb[28].mxu1 %vm706_vm0, %v1337_v38 }
 0x2a4   : > { %4278 = vmatmul.mubr.msk.bf16.gmra.mrb[60].mxu0 %vm706_vm0, %v1337_v38  ;;  %4283 = vmatprep.mubr.msk.bf16.mxu1 %vm706_vm0, %v5091_v52  ;;  %v1326_v52 = vadd.f32 %v5087_v43, %v5135_v13 }
 0x2a6   : > { %2884 = vrot.lane.b32.xlu0 %v1319_v12, %s4634_s21  ;;  %v3709_v12 = vadd.f32 -1.0, %v1962_v7 }
 0x2a7   : > { %2882 = vrot.lane.b32.xlu1 %v1318_v15, %s4634_s21 }
 0x2aa   : > { %2464 = vrot.lane.b32.xlu0 %v1321_v18, %s4632_s17 }
 0x2ab   : > { %2462 = vrot.lane.b32.xlu1 %v1320_v47, %s4632_s17  ;;  %4284 = vmatmul.mubr.msk.bf16.vlgmr.msra.gmra.mrb[32].mxu1 %vm706_vm0, %v5099_v56  ;;  %v5235_v56 = vpop.permute.xlu0 %1758 }
 0x2ac   : > { %4287 = vmatprep.mubr.msk.bf16.mxu1 %vm706_vm0, %v1332_v60  ;;  %v1328_v60 = vadd.f32 %v5087_v43, %v5148_v34 }
 0x2ae   : > { %2040 = vrot.lane.b32.xlu0 %v1321_v18, %s4633_s20 }
 0x2af   : > { %2038 = vrot.lane.b32.xlu1 %v1320_v47, %s4633_s20  ;;  %v5247_v61 = vpop.permute.xlu0 %1870 }
 0x2b2   : > { %2888 = vrot.lane.b32.xlu0 %v1321_v18, %s4634_s21 }
 0x2b3   : > { %2886 = vrot.lane.b32.xlu1 %v1320_v47, %s4634_s21  ;;  %4288 = vmatmul.mubr.msk.bf16.gmra.mrb[36].mxu1 %vm706_vm0, %v1333_v2  ;;  %v5253_v0 = vpop.permute.xlu0 %1768  ;;  %v5261_v2 = vpop.permute.xlu1 %1885 }
 0x2b4   : > { %4291 = vmatprep.mubr.msk.bf16.mxu1 %vm706_vm0, %v1334_v6  ;;  %5708 = vst [vmem:[#allocation11_spill] sm:$0xff] %v5261_v2  ;;  %v1963_v6 = vmul.f32 0.13333334, %v4875_v14 }
 0x2b6   : > { %2468 = vrot.lane.b32.xlu0 %v1323_v25, %s4632_s17  ;;  %v3710_v11 = vadd.f32 -1.0, %v1963_v6 }
 0x2b7   : > { %2466 = vrot.lane.b32.xlu1 %v1322_v26, %s4632_s17  ;;  %v5259_v43 = vpop.permute.xlu0 %1880  ;;  %v5265_v4 = vpop.permute.xlu1 %1783 }
 0x2b8   : > { %5710 = vst [vmem:[#allocation13_spill] sm:$0xff] %v5265_v4  ;;  %v1995_v30 = vadd.f32 -0.13333334, %v3710_v11 }
 0x2ba   : > { %2044 = vrot.lane.b32.xlu0 %v1323_v25, %s4633_s20 }
 0x2bb   : > { %2042 = vrot.lane.b32.xlu1 %v1322_v26, %s4633_s20  ;;  %4292 = vmatmul.mubr.msk.bf16.gmra.mrb[40].mxu1 %vm706_vm0, %v1335_v9  ;;  %v5263_v3 = vpop.permute.xlu0 %1778  ;;  %v5271_v9 = vpop.permute.xlu1 %1895 }
 0x2bc   : > { %4295 = vmatprep.mubr.msk.bf16.mxu1 %vm706_vm0, %v1336_v17  ;;  %5709 = vst [vmem:[#allocation12_spill] sm:$0xff] %v5263_v3  ;;  %5712 = vst [vmem:[#allocation15_spill] sm:$0xff] %v5271_v9 }
 0x2be   : > { %2892 = vrot.lane.b32.xlu0 %v1323_v25, %s4634_s21 }
 0x2bf   : > { %2890 = vrot.lane.b32.xlu1 %v1322_v26, %s4634_s21  ;;  %v5269_v8 = vpop.permute.xlu0 %1890 }
 0x2c0   : > { %5711 = vst [vmem:[#allocation14_spill] sm:$0xff] %v5269_v8 }
 0x2c2   : > { %2472 = vrot.lane.b32.xlu0 %v1325_v37, %s4632_s17 }
 0x2c3   : > { %2470 = vrot.lane.b32.xlu1 %v1324_v39, %s4632_s17  ;;  %4296 = vmatmul.mubr.msk.bf16.gmra.mrb[44].mxu1 %vm706_vm0, %v1337_v38  ;;  %v1994_v38 = vadd.f32 -0.13333334, %v3709_v12 }
 0x2c6   : > { %2048 = vrot.lane.b32.xlu0 %v1325_v37, %s4633_s20 }
 0x2c7   : > { %2046 = vrot.lane.b32.xlu1 %v1324_v39, %s4633_s20 }
 0x2ca   : > { %2896 = vrot.lane.b32.xlu0 %v1325_v37, %s4634_s21 }
 0x2cb   : > { %2894 = vrot.lane.b32.xlu1 %v1324_v39, %s4634_s21  ;;  %v2859_v39 = vadd.f32 0.13333334, %v3710_v11 }
 0x2ce   : > { %2476 = vrot.lane.b32.xlu0 %v1327_v51, %s4632_s17 }
 0x2cf   : > { %2474 = vrot.lane.b32.xlu1 %v1326_v52, %s4632_s17 }
 0x2d2   : > { %2052 = vrot.lane.b32.xlu0 %v1327_v51, %s4633_s20 }
 0x2d3   : > { %2050 = vrot.lane.b32.xlu1 %v1326_v52, %s4633_s20 }
 0x2d6   : > { %2900 = vrot.lane.b32.xlu0 %v1327_v51, %s4634_s21 }
 0x2d7   : > { %2898 = vrot.lane.b32.xlu1 %v1326_v52, %s4634_s21 }
 0x2da   : > { %2480 = vrot.lane.b32.xlu0 %v1329_v58, %s4632_s17 }
 0x2db   : > { %2478 = vrot.lane.b32.xlu1 %v1328_v60, %s4632_s17 }
 0x2de   : > { %2056 = vrot.lane.b32.xlu0 %v1329_v58, %s4633_s20 }
 0x2df   : > { %2054 = vrot.lane.b32.xlu1 %v1328_v60, %s4633_s20 }
 0x2e2   : > { %2904 = vrot.lane.b32.xlu0 %v1329_v58, %s4634_s21  ;;  %v2858_v58 = vadd.f32 0.13333334, %v3709_v12 }
 0x2e3   : > { %2902 = vrot.lane.b32.xlu1 %v1328_v60, %s4634_s21  ;;  %v1964_v60 = vmul.f32 0.13333334, %v4893_v20  ;;  %s5599_s21 = scalar_lea.vmem [#allocation7], %s3606_s11  ;;  %s3831_s11 = sshll.u32 %s4701_s28, 11 }
 0x2e4   : > { %s5632_s15 = scalar_lea.hbm %s5689_s7, %s3831_s11  ;;  %s3500_s28 = scalar_lea.sflag [#allocation4], %s4825_s22 }
 0x2e5   : > { %v3711_v3 = vadd.f32 -1.0, %v1964_v60 }
 0x2f8   : > { %v2453_v13 = vpop.permute.xlu0 %2452 }
 0x2f9   : > { %v2499_v15 = vadd.f32 %v3710_v11, %v2453_v13  ;;  %v2451_v17 = vpop.permute.xlu1 %2450 }
 0x2fa   : > { %v2498_v34 = vadd.f32 %v3709_v12, %v2451_v17 }
 0x2fb   : > { %v3758_v18 = vclamps-f32 %v2499_v15, 1.0 }
 0x2fc   : > { %v3757_v47 = vclamps-f32 %v2498_v34, 1.0  ;;  %v2029_v25 = vpop.permute.xlu0 %2028 }
 0x2fd   : > { %v2547_v26 = vadd.f32 1.0, %v3758_v18  ;;  %v2075_v37 = vadd.f32 %v2029_v25, %v1995_v30  ;;  %v2027_v14 = vpop.permute.xlu1 %2026  ;;  %v3712_v18 = vadd.f32 -1.0, %v1965_v19 }
 0x2fe   : > { %v2546_v51 = vadd.f32 1.0, %v3757_v47  ;;  %v2074_v52 = vadd.f32 %v2027_v14, %v1994_v38 }
 0x2ff   : > { %v2563_v6 = vmul.f32 16.0, %v2547_v26  ;;  %v3726_v7 = vclamps-f32 %v2075_v37, 1.0 }
 0x300   : > { %v2562_v13 = vmul.f32 16.0, %v2546_v51  ;;  %v3725_v9 = vclamps-f32 %v2074_v52, 1.0  ;;  %v2877_v17 = vpop.permute.xlu0 %2876 }
 0x301   : > { %v3774_v4 = vadd.f32 -1.0, %v2563_v6  ;;  %v2123_v15 = vadd.f32 1.0, %v3726_v7  ;;  %v2923_v34 = vadd.f32 %v2877_v17, %v2859_v39  ;;  %v2875_v8 = vpop.permute.xlu1 %2874  ;;  %v1997_v39 = vadd.f32 -0.13333334, %v3712_v18 }
 0x302   : > { %v3773_v30 = vadd.f32 -1.0, %v2562_v13  ;;  %v2122_v25 = vadd.f32 1.0, %v3725_v9  ;;  %v2922_v11 = vadd.f32 %v2875_v8, %v2858_v58  ;;  %v1996_v8 = vadd.f32 -0.13333334, %v3711_v3 }
 0x303   : > { %v2139_v24 = vmul.f32 16.0, %v2123_v15  ;;  %v3790_v47 = vclamps-f32 %v2923_v34, 1.0  ;;  %v2595_v38 = vmul.f32 0.5, %v3774_v4  ;;  %v2861_v7 = vadd.f32 0.13333334, %v3712_v18 }
 0x304   : > { %v2138_v12 = vmul.f32 16.0, %v2122_v25  ;;  %v3789_v14 = vclamps-f32 %v2922_v11, 1.0  ;;  %v2457_v20 = vpop.permute.xlu0 %2456  ;;  %v2594_v26 = vmul.f32 0.5, %v3773_v30  ;;  %v2860_v30 = vadd.f32 0.13333334, %v3711_v3 }
 0x305   : > { %v3742_v37 = vadd.f32 -1.0, %v2139_v24  ;;  %v2971_v51 = vadd.f32 1.0, %v3790_v47  ;;  %v2501_v52 = vadd.f32 %v3712_v18, %v2457_v20  ;;  %v2455_v2 = vpop.permute.xlu1 %2454  ;;  %2628 = vrot.lane.b32.xlu0 %v2595_v38, %s4635_s23  ;;  %v1966_v18 = vmul.f32 0.13333334, %v4904_v23 }
 0x306   : > { %v3741_v19 = vadd.f32 -1.0, %v2138_v12  ;;  %v2970_v6 = vadd.f32 1.0, %v3789_v14  ;;  %v2500_v9 = vadd.f32 %v3711_v3, %v2455_v2  ;;  %2626 = vrot.lane.b32.xlu1 %v2594_v26, %s4635_s23  ;;  %v1967_v2 = vmul.f32 0.13333334, %v4925_v28 }
 0x307   : > { %v2987_v58 = vmul.f32 16.0, %v2971_v51  ;;  %v3760_v4 = vclamps-f32 %v2501_v52, 1.0  ;;  %v2171_v60 = vmul.f32 0.5, %v3742_v37  ;;  %v3713_v23 = vadd.f32 -1.0, %v1966_v18 }
 0x308   : > { %v2986_v13 = vmul.f32 16.0, %v2970_v6  ;;  %v3759_v17 = vclamps-f32 %v2500_v9, 1.0  ;;  %v2033_v15 = vpop.permute.xlu0 %2032  ;;  %v2170_v34 = vmul.f32 0.5, %v3741_v19  ;;  %v3714_v28 = vadd.f32 -1.0, %v1967_v2 }
 0x309   : > { %v3806_v25 = vadd.f32 -1.0, %v2987_v58  ;;  %v2549_v11 = vadd.f32 1.0, %v3760_v4  ;;  %v2077_v24 = vadd.f32 %v2033_v15, %v1997_v39  ;;  %v2031_v47 = vpop.permute.xlu1 %2030  ;;  %2204 = vrot.lane.b32.xlu0 %v2171_v60, %s4635_s23  ;;  %v1998_v18 = vadd.f32 -0.13333334, %v3713_v23 }
 0x30a   : > { %v3805_v38 = vadd.f32 -1.0, %v2986_v13  ;;  %v2548_v12 = vadd.f32 1.0, %v3759_v17  ;;  %v2076_v14 = vadd.f32 %v2031_v47, %v1996_v8  ;;  %2202 = vrot.lane.b32.xlu1 %v2170_v34, %s4635_s23  ;;  %v1999_v2 = vadd.f32 -0.13333334, %v3714_v28 }
 0x30b   : > { %v2565_v20 = vmul.f32 16.0, %v2549_v11  ;;  %v3728_v26 = vclamps-f32 %v2077_v24, 1.0  ;;  %v3019_v37 = vmul.f32 0.5, %v3806_v25 }
 0x30c   : > { %v2564_v51 = vmul.f32 16.0, %v2548_v12  ;;  %v3727_v3 = vclamps-f32 %v2076_v14, 1.0  ;;  %v2881_v52 = vpop.permute.xlu0 %2880  ;;  %v3018_v19 = vmul.f32 0.5, %v3805_v38 }
 0x30d   : > { %v3776_v39 = vadd.f32 -1.0, %v2565_v20  ;;  %v2125_v6 = vadd.f32 1.0, %v3728_v26  ;;  %v2925_v9 = vadd.f32 %v2881_v52, %v2861_v7  ;;  %v2879_v58 = vpop.permute.xlu1 %2878  ;;  %3052 = vrot.lane.b32.xlu0 %v3019_v37, %s4635_s23 }
 0x30e   : > { %v3775_v4 = vadd.f32 -1.0, %v2564_v51  ;;  %v2124_v8 = vadd.f32 1.0, %v3727_v3  ;;  %v2924_v60 = vadd.f32 %v2879_v58, %v2860_v30  ;;  %3050 = vrot.lane.b32.xlu1 %v3018_v19, %s4635_s23  ;;  %v2863_v3 = vadd.f32 0.13333334, %v3714_v28 }
 0x30f   : > { %v2141_v13 = vmul.f32 16.0, %v2125_v6  ;;  %v3792_v17 = vclamps-f32 %v2925_v9, 1.0  ;;  %v2597_v15 = vmul.f32 0.5, %v3776_v39  ;;  %v2862_v9 = vadd.f32 0.13333334, %v3713_v23 }
 0x310   : > { %v2140_v34 = vmul.f32 16.0, %v2124_v8  ;;  %v3791_v25 = vclamps-f32 %v2924_v60, 1.0  ;;  %v2461_v11 = vpop.permute.xlu0 %2460  ;;  %v2596_v24 = vmul.f32 0.5, %v3775_v4 }
 0x311   : > { %v3744_v47 = vadd.f32 -1.0, %v2141_v13  ;;  %v2973_v38 = vadd.f32 1.0, %v3792_v17  ;;  %v2503_v7 = vadd.f32 %v3714_v28, %v2461_v11  ;;  %v2459_v12 = vpop.permute.xlu1 %2458  ;;  %2632 = vrot.lane.b32.xlu0 %v2597_v15, %s4635_s23  ;;  %v1969_v13 = vmul.f32 0.13333334, %v4955_v44 }
 0x312   : > { %v3743_v14 = vadd.f32 -1.0, %v2140_v34  ;;  %v2972_v20 = vadd.f32 1.0, %v3791_v25  ;;  %v2502_v30 = vadd.f32 %v3713_v23, %v2459_v12  ;;  %2630 = vrot.lane.b32.xlu1 %v2596_v24, %s4635_s23  ;;  %v1968_v28 = vmul.f32 0.13333334, %v4920_v27 }
 0x313   : > { %v2989_v26 = vmul.f32 16.0, %v2973_v38  ;;  %v3762_v37 = vclamps-f32 %v2503_v7, 1.0  ;;  %v2173_v51 = vmul.f32 0.5, %v3744_v47  ;;  %v3716_v44 = vadd.f32 -1.0, %v1969_v13 }
 0x314   : > { %v2988_v52 = vmul.f32 16.0, %v2972_v20  ;;  %v3761_v19 = vclamps-f32 %v2502_v30, 1.0  ;;  %v2037_v39 = vpop.permute.xlu0 %2036  ;;  %v2172_v6 = vmul.f32 0.5, %v3743_v14  ;;  %v3715_v27 = vadd.f32 -1.0, %v1968_v28 }
 0x315   : > { %v3808_v58 = vadd.f32 -1.0, %v2989_v26  ;;  %v2551_v4 = vadd.f32 1.0, %v3762_v37  ;;  %v2079_v8 = vadd.f32 %v2037_v39, %v1999_v2  ;;  %v2035_v60 = vpop.permute.xlu1 %2034  ;;  %2208 = vrot.lane.b32.xlu0 %v2173_v51, %s4635_s23  ;;  %v2001_v13 = vadd.f32 -0.13333334, %v3716_v44 }
 0x316   : > { %v3807_v17 = vadd.f32 -1.0, %v2988_v52  ;;  %v2550_v15 = vadd.f32 1.0, %v3761_v19  ;;  %v2078_v34 = vadd.f32 %v2035_v60, %v1998_v18  ;;  %2206 = vrot.lane.b32.xlu1 %v2172_v6, %s4635_s23 }
 0x317   : > { %v2567_v25 = vmul.f32 16.0, %v2551_v4  ;;  %v3730_v11 = vclamps-f32 %v2079_v8, 1.0  ;;  %v3021_v24 = vmul.f32 0.5, %v3808_v58 }
 0x318   : > { %v2566_v47 = vmul.f32 16.0, %v2550_v15  ;;  %v3729_v23 = vclamps-f32 %v2078_v34, 1.0  ;;  %v2885_v38 = vpop.permute.xlu0 %2884  ;;  %v3020_v7 = vmul.f32 0.5, %v3807_v17  ;;  %v2000_v34 = vadd.f32 -0.13333334, %v3715_v27 }
 0x319   : > { %v3778_v12 = vadd.f32 -1.0, %v2567_v25  ;;  %v2127_v2 = vadd.f32 1.0, %v3730_v11  ;;  %v2927_v14 = vadd.f32 %v2885_v38, %v2863_v3  ;;  %v2883_v20 = vpop.permute.xlu1 %2882  ;;  %3056 = vrot.lane.b32.xlu0 %v3021_v24, %s4635_s23  ;;  %v2865_v24 = vadd.f32 0.13333334, %v3716_v44 }
 0x31a   : > { %v3777_v30 = vadd.f32 -1.0, %v2566_v47  ;;  %v2126_v18 = vadd.f32 1.0, %v3729_v23  ;;  %v2926_v26 = vadd.f32 %v2883_v20, %v2862_v9  ;;  %3054 = vrot.lane.b32.xlu1 %v3020_v7, %s4635_s23 }
 0x31b   : > { %v2143_v37 = vmul.f32 16.0, %v2127_v2  ;;  %v3794_v51 = vclamps-f32 %v2927_v14, 1.0  ;;  %v2599_v52 = vmul.f32 0.5, %v3778_v12  ;;  %v2864_v12 = vadd.f32 0.13333334, %v3715_v27 }
 0x31c   : > { %v2142_v19 = vmul.f32 16.0, %v2126_v18  ;;  %v3793_v39 = vclamps-f32 %v2926_v26, 1.0  ;;  %v2465_v6 = vpop.permute.xlu0 %2464  ;;  %v2598_v58 = vmul.f32 0.5, %v3777_v30  ;;  %v1971_v18 = vmul.f32 0.13333334, %v4982_v55 }
 0x31d   : > { %v3746_v4 = vadd.f32 -1.0, %v2143_v37  ;;  %v2975_v8 = vadd.f32 1.0, %v3794_v51  ;;  %v2505_v3 = vadd.f32 %v3716_v44, %v2465_v6  ;;  %v2463_v60 = vpop.permute.xlu1 %2462  ;;  %2636 = vrot.lane.b32.xlu0 %v2599_v52, %s4635_s23  ;;  %v1970_v44 = vmul.f32 0.13333334, %v4966_v48 }
 0x31e   : > { %v3745_v17 = vadd.f32 -1.0, %v2142_v19  ;;  %v2974_v15 = vadd.f32 1.0, %v3793_v39  ;;  %v2504_v9 = vadd.f32 %v3715_v27, %v2463_v60  ;;  %2634 = vrot.lane.b32.xlu1 %v2598_v58, %s4635_s23  ;;  %v3718_v55 = vadd.f32 -1.0, %v1971_v18 }
 0x31f   : > { %v2991_v28 = vmul.f32 16.0, %v2975_v8  ;;  %v3764_v25 = vclamps-f32 %v2505_v3, 1.0  ;;  %v2175_v11 = vmul.f32 0.5, %v3746_v4  ;;  %v3717_v48 = vadd.f32 -1.0, %v1970_v44 }
 0x320   : > { %v2990_v47 = vmul.f32 16.0, %v2974_v15  ;;  %v3763_v23 = vclamps-f32 %v2504_v9, 1.0  ;;  %v2041_v38 = vpop.permute.xlu0 %2040  ;;  %v2174_v7 = vmul.f32 0.5, %v3745_v17 }
 0x321   : > { %v3810_v2 = vadd.f32 -1.0, %v2991_v28  ;;  %v2553_v14 = vadd.f32 1.0, %v3764_v25  ;;  %v2081_v20 = vadd.f32 %v2041_v38, %v2001_v13  ;;  %v2039_v30 = vpop.permute.xlu1 %2038  ;;  %2212 = vrot.lane.b32.xlu0 %v2175_v11, %s4635_s23 }
 0x322   : > { %v3809_v26 = vadd.f32 -1.0, %v2990_v47  ;;  %v2552_v37 = vadd.f32 1.0, %v3763_v23  ;;  %v2080_v51 = vadd.f32 %v2039_v30, %v2000_v34  ;;  %2210 = vrot.lane.b32.xlu1 %v2174_v7, %s4635_s23 }
 0x323   : > { %v2569_v52 = vmul.f32 16.0, %v2553_v14  ;;  %v3732_v19 = vclamps-f32 %v2081_v20, 1.0  ;;  %v3023_v39 = vmul.f32 0.5, %v3810_v2  ;;  %v2003_v20 = vadd.f32 -0.13333334, %v3718_v55 }
 0x324   : > { %v3022_v6 = vmul.f32 0.5, %v3809_v26  ;;  %v2568_v27 = vmul.f32 16.0, %v2552_v37  ;;  %v3731_v58 = vclamps-f32 %v2080_v51, 1.0  ;;  %v2889_v4 = vpop.permute.xlu0 %2888  ;;  %v2002_v26 = vadd.f32 -0.13333334, %v3717_v48 }
 0x325   : > { %v3780_v8 = vadd.f32 -1.0, %v2569_v52  ;;  %v2129_v3 = vadd.f32 1.0, %v3732_v19  ;;  %v2929_v60 = vadd.f32 %v2889_v4, %v2865_v24  ;;  %v2887_v13 = vpop.permute.xlu1 %2886  ;;  %3060 = vrot.lane.b32.xlu0 %v3023_v39, %s4635_s23  ;;  %v2867_v52 = vadd.f32 0.13333334, %v3718_v55 }
 0x326   : > { %v3779_v17 = vadd.f32 -1.0, %v2568_v27  ;;  %v2128_v15 = vadd.f32 1.0, %v3731_v58  ;;  %v2928_v9 = vadd.f32 %v2887_v13, %v2864_v12  ;;  %3058 = vrot.lane.b32.xlu1 %v3022_v6, %s4635_s23  ;;  %v2866_v58 = vadd.f32 0.13333334, %v3717_v48 }
 0x327   : > { %v2601_v34 = vmul.f32 0.5, %v3780_v8  ;;  %v2145_v28 = vmul.f32 16.0, %v2129_v3  ;;  %v3796_v25 = vclamps-f32 %v2929_v60, 1.0  ;;  %v1973_v13 = vmul.f32 0.13333334, %v5002_v63 }
 0x328   : > { %v2600_v11 = vmul.f32 0.5, %v3779_v17  ;;  %v2144_v47 = vmul.f32 16.0, %v2128_v15  ;;  %v3795_v23 = vclamps-f32 %v2928_v9, 1.0  ;;  %v2469_v38 = vpop.permute.xlu0 %2468 }
 0x329   : > { %v3748_v7 = vadd.f32 -1.0, %v2145_v28  ;;  %v2977_v2 = vadd.f32 1.0, %v3796_v25  ;;  %v2507_v24 = vadd.f32 %v3718_v55, %v2469_v38  ;;  %v2467_v14 = vpop.permute.xlu1 %2466  ;;  %2640 = vrot.lane.b32.xlu0 %v2601_v34, %s4635_s23  ;;  %v1972_v55 = vmul.f32 0.13333334, %v4992_v59 }
 0x32a   : > { %v3747_v30 = vadd.f32 -1.0, %v2144_v47  ;;  %v2976_v18 = vadd.f32 1.0, %v3795_v23  ;;  %v2506_v12 = vadd.f32 %v3717_v48, %v2467_v14  ;;  %2638 = vrot.lane.b32.xlu1 %v2600_v11, %s4635_s23  ;;  %v3720_v63 = vadd.f32 -1.0, %v1973_v13 }
 0x32b   : > { %v2177_v37 = vmul.f32 0.5, %v3748_v7  ;;  %v2993_v51 = vmul.f32 16.0, %v2977_v2  ;;  %v3766_v44 = vclamps-f32 %v2507_v24, 1.0  ;;  %v3719_v59 = vadd.f32 -1.0, %v1972_v55 }
 0x32c   : > { %v2176_v19 = vmul.f32 0.5, %v3747_v30  ;;  %v2992_v39 = vmul.f32 16.0, %v2976_v18  ;;  %v3765_v6 = vclamps-f32 %v2506_v12, 1.0  ;;  %v2045_v27 = vpop.permute.xlu0 %2044 }
 0x32d   : > { %v3812_v4 = vadd.f32 -1.0, %v2993_v51  ;;  %v2555_v8 = vadd.f32 1.0, %v3766_v44  ;;  %v2083_v3 = vadd.f32 %v2045_v27, %v2003_v20  ;;  %v2043_v60 = vpop.permute.xlu1 %2042  ;;  %2216 = vrot.lane.b32.xlu0 %v2177_v37, %s4635_s23 }
 0x32e   : > { %v3811_v17 = vadd.f32 -1.0, %v2992_v39  ;;  %v2554_v15 = vadd.f32 1.0, %v3765_v6  ;;  %v2082_v9 = vadd.f32 %v2043_v60, %v2002_v26  ;;  %2214 = vrot.lane.b32.xlu1 %v2176_v19, %s4635_s23  ;;  %v2004_v60 = vadd.f32 -0.13333334, %v3719_v59 }
 0x32f   : > { %v3025_v34 = vmul.f32 0.5, %v3812_v4  ;;  %v2571_v28 = vmul.f32 16.0, %v2555_v8  ;;  %v3734_v25 = vclamps-f32 %v2083_v3, 1.0  ;;  %v2005_v4 = vadd.f32 -0.13333334, %v3720_v63 }
 0x330   : > { %v3024_v11 = vmul.f32 0.5, %v3811_v17  ;;  %v2570_v48 = vmul.f32 16.0, %v2554_v15  ;;  %v3733_v47 = vclamps-f32 %v2082_v9, 1.0  ;;  %v2893_v23 = vpop.permute.xlu0 %2892  ;;  %v2869_v9 = vadd.f32 0.13333334, %v3720_v63 }
 0x331   : > { %v3782_v38 = vadd.f32 -1.0, %v2571_v28  ;;  %v2131_v7 = vadd.f32 1.0, %v3734_v25  ;;  %v2931_v2 = vadd.f32 %v2893_v23, %v2867_v52  ;;  %v2891_v24 = vpop.permute.xlu1 %2890  ;;  %3064 = vrot.lane.b32.xlu0 %v3025_v34, %s4635_s23 }
 0x332   : > { %v3781_v14 = vadd.f32 -1.0, %v2570_v48  ;;  %v2130_v20 = vadd.f32 1.0, %v3733_v47  ;;  %v2930_v30 = vadd.f32 %v2891_v24, %v2866_v58  ;;  %3062 = vrot.lane.b32.xlu1 %v3024_v11, %s4635_s23  ;;  %v2868_v11 = vadd.f32 0.13333334, %v3719_v59 }
 0x333   : > { %v2603_v18 = vmul.f32 0.5, %v3782_v38  ;;  %v2147_v12 = vmul.f32 16.0, %v2131_v7  ;;  %v3798_v26 = vclamps-f32 %v2931_v2, 1.0  ;;  %v5313_v7 = vld [vmem:[%s5683_s1 + $0x68] sm:$0xff] }
 0x334   : > { %v2602_v37 = vmul.f32 0.5, %v3781_v14  ;;  %v2146_v51 = vmul.f32 16.0, %v2130_v20  ;;  %v3797_v44 = vclamps-f32 %v2930_v30, 1.0  ;;  %v2473_v19 = vpop.permute.xlu0 %2472  ;;  %v1975_v2 = vmul.f32 0.13333334, %v5313_v7  ;;  %v5320_v20 = vld [vmem:[%s5683_s1 + $0x60] sm:$0xff] }
 0x335   : > { %v3750_v39 = vadd.f32 -1.0, %v2147_v12  ;;  %v2979_v6 = vadd.f32 1.0, %v3798_v26  ;;  %v2509_v52 = vadd.f32 %v3720_v63, %v2473_v19  ;;  %v2471_v27 = vpop.permute.xlu1 %2470  ;;  %2644 = vrot.lane.b32.xlu0 %v2603_v18, %s4635_s23  ;;  %v1974_v30 = vmul.f32 0.13333334, %v5320_v20 }
 0x336   : > { %v3749_v8 = vadd.f32 -1.0, %v2146_v51  ;;  %v2978_v3 = vadd.f32 1.0, %v3797_v44  ;;  %v2508_v58 = vadd.f32 %v3719_v59, %v2471_v27  ;;  %2642 = vrot.lane.b32.xlu1 %v2602_v37, %s4635_s23  ;;  %v3722_v27 = vadd.f32 -1.0, %v1975_v2 }
 0x337   : > { %v2179_v13 = vmul.f32 0.5, %v3750_v39  ;;  %v2995_v17 = vmul.f32 16.0, %v2979_v6  ;;  %v3768_v15 = vclamps-f32 %v2509_v52, 1.0 }
 0x338   : > { %v2178_v55 = vmul.f32 0.5, %v3749_v8  ;;  %v2994_v34 = vmul.f32 16.0, %v2978_v3  ;;  %v3767_v28 = vclamps-f32 %v2508_v58, 1.0  ;;  %v2049_v25 = vpop.permute.xlu0 %2048  ;;  %v3721_v58 = vadd.f32 -1.0, %v1974_v30 }
 0x339   : > { %v3814_v48 = vadd.f32 -1.0, %v2995_v17  ;;  %v2557_v47 = vadd.f32 1.0, %v3768_v15  ;;  %v2085_v23 = vadd.f32 %v2049_v25, %v2005_v4  ;;  %v2047_v38 = vpop.permute.xlu1 %2046  ;;  %2220 = vrot.lane.b32.xlu0 %v2179_v13, %s4635_s23 }
 0x33a   : > { %v3813_v24 = vadd.f32 -1.0, %v2994_v34  ;;  %v2556_v63 = vadd.f32 1.0, %v3767_v28  ;;  %v2084_v14 = vadd.f32 %v2047_v38, %v2004_v60  ;;  %2218 = vrot.lane.b32.xlu1 %v2178_v55, %s4635_s23 }
 0x33b   : > { %v3027_v59 = vmul.f32 0.5, %v3814_v48  ;;  %v2573_v18 = vmul.f32 16.0, %v2557_v47  ;;  %v3736_v12 = vclamps-f32 %v2085_v23, 1.0  ;;  %v2007_v23 = vadd.f32 -0.13333334, %v3722_v27 }
 0x33c   : > { %v3026_v26 = vmul.f32 0.5, %v3813_v24  ;;  %v2572_v37 = vmul.f32 16.0, %v2556_v63  ;;  %v3735_v51 = vclamps-f32 %v2084_v14, 1.0  ;;  %v2897_v44 = vpop.permute.xlu0 %2896  ;;  %v2006_v24 = vadd.f32 -0.13333334, %v3721_v58 }
 0x33d   : > { %v3784_v19 = vadd.f32 -1.0, %v2573_v18  ;;  %v2133_v39 = vadd.f32 1.0, %v3736_v12  ;;  %v2933_v6 = vadd.f32 %v2897_v44, %v2869_v9  ;;  %v2895_v52 = vpop.permute.xlu1 %2894  ;;  %3068 = vrot.lane.b32.xlu0 %v3027_v59, %s4635_s23  ;;  %v2871_v59 = vadd.f32 0.13333334, %v3722_v27 }
 0x33e   : > { %v3783_v4 = vadd.f32 -1.0, %v2572_v37  ;;  %v2132_v8 = vadd.f32 1.0, %v3735_v51  ;;  %v2932_v3 = vadd.f32 %v2895_v52, %v2868_v11  ;;  %3066 = vrot.lane.b32.xlu1 %v3026_v26, %s4635_s23  ;;  %v2870_v51 = vadd.f32 0.13333334, %v3721_v58  ;;  %v5331_v52 = vld [vmem:[%s5683_s1 + $0x78] sm:$0xff] }
 0x33f   : > { %v2605_v60 = vmul.f32 0.5, %v3784_v19  ;;  %v2149_v13 = vmul.f32 16.0, %v2133_v39  ;;  %v3800_v17 = vclamps-f32 %v2933_v6, 1.0 }
 0x340   : > { %v2604_v15 = vmul.f32 0.5, %v3783_v4  ;;  %v2148_v55 = vmul.f32 16.0, %v2132_v8  ;;  %v3799_v34 = vclamps-f32 %v2932_v3, 1.0  ;;  %v2477_v28 = vpop.permute.xlu0 %2476  ;;  %v1977_v4 = vmul.f32 0.13333334, %v5331_v52 }
 0x341   : > { %v3752_v25 = vadd.f32 -1.0, %v2149_v13  ;;  %v2981_v48 = vadd.f32 1.0, %v3800_v17  ;;  %v2511_v9 = vadd.f32 %v3722_v27, %v2477_v28  ;;  %v2475_v47 = vpop.permute.xlu1 %2474  ;;  %2648 = vrot.lane.b32.xlu0 %v2605_v60, %s4635_s23 }
 0x342   : > { %v3751_v38 = vadd.f32 -1.0, %v2148_v55  ;;  %v2980_v2 = vadd.f32 1.0, %v3799_v34  ;;  %v2510_v11 = vadd.f32 %v3721_v58, %v2475_v47  ;;  %2646 = vrot.lane.b32.xlu1 %v2604_v15, %s4635_s23  ;;  %v5338_v58 = vld [vmem:[%s5683_s1 + $0x70] sm:$0xff] }
 0x343   : > { %v2181_v63 = vmul.f32 0.5, %v3752_v25  ;;  %v2997_v14 = vmul.f32 16.0, %v2981_v48  ;;  %v3770_v30 = vclamps-f32 %v2511_v9, 1.0  ;;  %v1976_v60 = vmul.f32 0.13333334, %v5338_v58 }
 0x344   : > { %v2180_v18 = vmul.f32 0.5, %v3751_v38  ;;  %v2996_v12 = vmul.f32 16.0, %v2980_v2  ;;  %v3769_v26 = vclamps-f32 %v2510_v11, 1.0  ;;  %v2053_v37 = vpop.permute.xlu0 %2052  ;;  %v3724_v38 = vadd.f32 -1.0, %v1977_v4 }
 0x345   : > { %v3816_v44 = vadd.f32 -1.0, %v2997_v14  ;;  %v2559_v19 = vadd.f32 1.0, %v3770_v30  ;;  %v2087_v39 = vadd.f32 %v2053_v37, %v2007_v23  ;;  %v2051_v6 = vpop.permute.xlu1 %2050  ;;  %2224 = vrot.lane.b32.xlu0 %v2181_v63, %s4635_s23  ;;  %v3723_v63 = vadd.f32 -1.0, %v1976_v60 }
 0x346   : > { %v3815_v8 = vadd.f32 -1.0, %v2996_v12  ;;  %v2558_v27 = vadd.f32 1.0, %v3769_v26  ;;  %v2086_v3 = vadd.f32 %v2051_v6, %v2006_v24  ;;  %2222 = vrot.lane.b32.xlu1 %v2180_v18, %s4635_s23  ;;  %v2009_v4 = vadd.f32 -0.13333334, %v3724_v38 }
 0x347   : > { %v3029_v13 = vmul.f32 0.5, %v3816_v44  ;;  %v2575_v17 = vmul.f32 16.0, %v2559_v19  ;;  %v3738_v15 = vclamps-f32 %v2087_v39, 1.0 }
 0x348   : > { %v3028_v55 = vmul.f32 0.5, %v3815_v8  ;;  %v2574_v34 = vmul.f32 16.0, %v2558_v27  ;;  %v3737_v28 = vclamps-f32 %v2086_v3, 1.0  ;;  %v2901_v25 = vpop.permute.xlu0 %2900  ;;  %v2008_v3 = vadd.f32 -0.13333334, %v3723_v63 }
 0x349   : > { %v3786_v48 = vadd.f32 -1.0, %v2575_v17  ;;  %v2135_v9 = vadd.f32 1.0, %v3738_v15  ;;  %v2935_v47 = vadd.f32 %v2901_v25, %v2871_v59  ;;  %v2899_v23 = vpop.permute.xlu1 %2898  ;;  %3072 = vrot.lane.b32.xlu0 %v3029_v13, %s4635_s23 }
 0x34a   : > { %v3785_v2 = vadd.f32 -1.0, %v2574_v34  ;;  %v2134_v11 = vadd.f32 1.0, %v3737_v28  ;;  %v2934_v24 = vadd.f32 %v2899_v23, %v2870_v51  ;;  %3070 = vrot.lane.b32.xlu1 %v3028_v55, %s4635_s23  ;;  %v2873_v23 = vadd.f32 0.13333334, %v3724_v38 }
 0x34b   : > { %v2607_v14 = vmul.f32 0.5, %v3786_v48  ;;  %v2151_v30 = vmul.f32 16.0, %v2135_v9  ;;  %v3802_v18 = vclamps-f32 %v2935_v47, 1.0 }
 0x34c   : > { %v2606_v12 = vmul.f32 0.5, %v3785_v2  ;;  %v2150_v26 = vmul.f32 16.0, %v2134_v11  ;;  %v3801_v37 = vclamps-f32 %v2934_v24, 1.0  ;;  %v2481_v44 = vpop.permute.xlu0 %2480 }
 0x34d   : > { %v3754_v19 = vadd.f32 -1.0, %v2151_v30  ;;  %v2983_v39 = vadd.f32 1.0, %v3802_v18  ;;  %v2513_v59 = vadd.f32 %v3724_v38, %v2481_v44  ;;  %2652 = vrot.lane.b32.xlu0 %v2607_v14, %s4635_s23  ;;  %v2479_v6 = vpop.permute.xlu1 %2478  ;;  %v2872_v14 = vadd.f32 0.13333334, %v3723_v63 }
 0x34e   : > { %v3753_v8 = vadd.f32 -1.0, %v2150_v26  ;;  %v2982_v27 = vadd.f32 1.0, %v3801_v37  ;;  %v2512_v51 = vadd.f32 %v3723_v63, %v2479_v6  ;;  %2650 = vrot.lane.b32.xlu1 %v2606_v12, %s4635_s23 }
 0x34f   : > { %v2183_v60 = vmul.f32 0.5, %v3754_v19  ;;  %v2999_v13 = vmul.f32 16.0, %v2983_v39  ;;  %v3772_v17 = vclamps-f32 %v2513_v59, 1.0 }
 0x350   : > { %v2182_v15 = vmul.f32 0.5, %v3753_v8  ;;  %v2998_v55 = vmul.f32 16.0, %v2982_v27  ;;  %v3771_v34 = vclamps-f32 %v2512_v51, 1.0  ;;  %v2057_v28 = vpop.permute.xlu0 %2056 }
 0x351   : > { %v3818_v25 = vadd.f32 -1.0, %v2999_v13  ;;  %v2561_v48 = vadd.f32 1.0, %v3772_v17  ;;  %v2089_v9 = vadd.f32 %v2057_v28, %v2009_v4  ;;  %2228 = vrot.lane.b32.xlu0 %v2183_v60, %s4635_s23  ;;  %v2055_v47 = vpop.permute.xlu1 %2054 }
 0x352   : > { %v3817_v2 = vadd.f32 -1.0, %v2998_v55  ;;  %v2560_v11 = vadd.f32 1.0, %v3771_v34  ;;  %v2088_v24 = vadd.f32 %v2055_v47, %v2008_v3  ;;  %2226 = vrot.lane.b32.xlu1 %v2182_v15, %s4635_s23 }
 0x353   : > { %v3031_v30 = vmul.f32 0.5, %v3818_v25  ;;  %v2577_v18 = vmul.f32 16.0, %v2561_v48  ;;  %v3740_v12 = vclamps-f32 %v2089_v9, 1.0 }
 0x354   : > { %v3030_v26 = vmul.f32 0.5, %v3817_v2  ;;  %v2576_v37 = vmul.f32 16.0, %v2560_v11  ;;  %v3739_v44 = vclamps-f32 %v2088_v24, 1.0  ;;  %v2905_v19 = vpop.permute.xlu0 %2904 }
 0x355   : > { %v3788_v39 = vadd.f32 -1.0, %v2577_v18  ;;  %v2137_v59 = vadd.f32 1.0, %v3740_v12  ;;  %v2937_v6 = vadd.f32 %v2905_v19, %v2873_v23  ;;  %3076 = vrot.lane.b32.xlu0 %v3031_v30, %s4635_s23  ;;  %v2903_v4 = vpop.permute.xlu1 %2902 }
 0x356   : > { %v3787_v38 = vadd.f32 -1.0, %v2576_v37  ;;  %v2136_v8 = vadd.f32 1.0, %v3739_v44  ;;  %v2936_v27 = vadd.f32 %v2903_v4, %v2872_v14  ;;  %3074 = vrot.lane.b32.xlu1 %v3030_v26, %s4635_s23 }
 0x357   : > { %v2609_v51 = vmul.f32 0.5, %v3788_v39  ;;  %v2153_v63 = vmul.f32 16.0, %v2137_v59  ;;  %v3804_v3 = vclamps-f32 %v2937_v6, 1.0 }
 0x358   : > { %v2608_v60 = vmul.f32 0.5, %v3787_v38  ;;  %v2152_v13 = vmul.f32 16.0, %v2136_v8  ;;  %v3803_v17 = vclamps-f32 %v2936_v27, 1.0 }
 0x359   : > { %v3756_v15 = vadd.f32 -1.0, %v2153_v63  ;;  %v2985_v55 = vadd.f32 1.0, %v3804_v3  ;;  %2656 = vrot.lane.b32.xlu0 %v2609_v51, %s4635_s23 }
 0x35a   : > { %v3755_v34 = vadd.f32 -1.0, %v2152_v13  ;;  %v2984_v28 = vadd.f32 1.0, %v3803_v17  ;;  %2654 = vrot.lane.b32.xlu1 %v2608_v60, %s4635_s23 }
 0x35b   : > { %v2185_v25 = vmul.f32 0.5, %v3756_v15  ;;  %v3001_v48 = vmul.f32 16.0, %v2985_v55 }
 0x35c   : > { %v2184_v9 = vmul.f32 0.5, %v3755_v34  ;;  %v3000_v47 = vmul.f32 16.0, %v2984_v28 }
 0x35d   : > { %v3820_v23 = vadd.f32 -1.0, %v3001_v48  ;;  %2232 = vrot.lane.b32.xlu0 %v2185_v25, %s4635_s23 }
 0x35e   : > { %v3819_v2 = vadd.f32 -1.0, %v3000_v47  ;;  %v4249_v11 = vpop.f32.mrb[16].mxu1  ;;  %2230 = vrot.lane.b32.xlu1 %v2184_v9, %s4635_s23 }
 0x35f   : > { %v3033_v24 = vmul.f32 0.5, %v3820_v23  ;;  %v4267_v14 = vpop.f32.mrb[48].mxu0  ;;  %v1404_v30 = vpop.f32.mrb[17].mxu1 }
 0x360   : > { %v3032_v18 = vmul.f32 0.5, %v3819_v2  ;;  %v1518_v12 = vpop.f32.mrb[49].mxu0  ;;  %v4250_v26 = vpop.f32.mrb[18].mxu1 }
 0x361   : > { %v1468_v37 = vpack.c.bf16 %v4250_v26, %v4249_v11  ;;  %v4268_v44 = vpop.f32.mrb[50].mxu0  ;;  %3080 = vrot.lane.b32.xlu0 %v3033_v24, %s4635_s23  ;;  %v1407_v19 = vpop.f32.mrb[19].mxu1 }
 0x362   : > { %v1582_v39 = vpack.c.bf16 %v4268_v44, %v4267_v14  ;;  %v1521_v59 = vpop.f32.mrb[51].mxu0  ;;  %v1467_v6 = vpack.c.bf16 %v1407_v19, %v1404_v30  ;;  %3078 = vrot.lane.b32.xlu1 %v3032_v18, %s4635_s23  ;;  %v4484_v44 = vld [vmem:[%s5683_s1 + $0x8] sm:$0xff]  ;;  %s3514_s23 = sshll.u32 %s5599_s21, 4  ;;  %s5634_s23 = int_to_ptr.vmem [resolvable:$true] %s3514_s23 }
 0x363   : > { %v1581_v4 = vpack.c.bf16 %v1521_v59, %v1518_v12  ;;  %s4554_s30 = scalar_lea.vmem %s5634_s23, 2048  ;;  %p4561_p10 = scmp.lt.s32.totalorder %s5634_s23, %s4559_s10 }
 0x364   : > { %p4555_p4 = scmp.ne.s32.totalorder %s5634_s23, %s4554_s30  ;;  %p4562_p13 = scmp.lt.s32.totalorder %s4560_s16, %s4554_s30 }
 0x365   : > { %3977 = vmatprep.subr.bf16.mxu0 %v1581_v4 }
 0x366   : > { %3978 = vmatpush3.bf16.msra.mxu0 %v1467_v6  ;;  %v4253_v38 = vpop.f32.mrb[20].mxu1  ;;  %p4556_p6 = pnand %p4555_p4, %p4774_p12  ;;  %p4563_p3 = por %p4562_p13, %p4561_p10 }
 0x367   : > { %v4271_v8 = vpop.f32.mrb[52].mxu0  ;;  %3979 = vmatprep.subr.bf16.mxu0 %v1582_v39  ;;  %v1420_v27 = vpop.f32.mrb[21].mxu1 }
 0x368   : > { %v1534_v51 = vpop.f32.mrb[53].mxu0  ;;  %v4254_v63 = vpop.f32.mrb[22].mxu1  ;;  %p4557_p8 = pneg %p4556_p6 }
 0x369   : > { %v1470_v3 = vpack.c.bf16 %v4254_v63, %v4253_v38  ;;  %v4272_v60 = vpop.f32.mrb[54].mxu0  ;;  %v1423_v13 = vpop.f32.mrb[23].mxu1 }
 0x36a   : > { %v1584_v17 = vpack.c.bf16 %v4272_v60, %v4271_v8  ;;  %v1469_v15 = vpack.c.bf16 %v1423_v13, %v1420_v27  ;;  %v1537_v55 = vpop.f32.mrb[55].mxu0  ;;  %3980 = vmatpush3.bf16.msra.mxu0 %v1468_v37  ;;  %p4564_p7 = pnand %p4563_p3, %p4557_p8 }
 0x36b   : > { %v1583_v34 = vpack.c.bf16 %v1537_v55, %v1534_v51 }
 0x36d   : > { %3981 = vmatprep.subr.bf16.mxu0 %v1583_v34 }
 0x36e   : > { %3982 = vmatpush3.bf16.msra.mxu0 %v1469_v15  ;;  %v4257_v28 = vpop.f32.mrb[24].mxu1 }
 0x36f   : > { %v4275_v25 = vpop.f32.mrb[56].mxu0  ;;  %3983 = vmatprep.subr.bf16.mxu0 %v1584_v17  ;;  %v1436_v48 = vpop.f32.mrb[25].mxu1 }
 0x370   : > { %v1550_v9 = vpop.f32.mrb[57].mxu0  ;;  %v4258_v47 = vpop.f32.mrb[26].mxu1 }
 0x371   : > { %v1472_v23 = vpack.c.bf16 %v4258_v47, %v4257_v28  ;;  %v4276_v2 = vpop.f32.mrb[58].mxu0  ;;  %v1439_v11 = vpop.f32.mrb[27].mxu1 }
 0x372   : > { %v1586_v24 = vpack.c.bf16 %v4276_v2, %v4275_v25  ;;  %v1471_v14 = vpack.c.bf16 %v1439_v11, %v1436_v48  ;;  %v1553_v30 = vpop.f32.mrb[59].mxu0  ;;  %3984 = vmatpush3.bf16.msra.mxu0 %v1470_v3  ;;  %v4485_v11 = vld [vmem:[%s5683_s1] sm:$0xff] }
 0x373   : > { %v1585_v18 = vpack.c.bf16 %v1553_v30, %v1550_v9 }
 0x375   : > { %3985 = vmatprep.subr.bf16.mxu0 %v1585_v18  ;;  %v4486_v18 = vld [vmem:[%s5683_s1 + $0x18] sm:$0xff] }
 0x376   : > { %3986 = vmatpush3.bf16.msra.mxu0 %v1471_v14  ;;  %v4261_v12 = vpop.f32.mrb[28].mxu1 }
 0x377   : > { %v4279_v26 = vpop.f32.mrb[60].mxu0  ;;  %3987 = vmatprep.subr.bf16.mxu0 %v1586_v24  ;;  %v2629_v37 = vpop.permute.xlu0 %2628 }
 0x378   : > { %v2675_v19 = vadd.f32 %v4484_v44, %v2629_v37  ;;  %v1452_v39 = vpop.f32.mrb[29].mxu1  ;;  %v1566_v59 = vpop.f32.mrb[61].mxu0 }
 0x379   : > { %v4262_v6 = vpop.f32.mrb[30].mxu1  ;;  %v4280_v4 = vpop.f32.mrb[62].mxu0 }
 0x37a   : > { %v1474_v38 = vpack.c.bf16 %v4262_v6, %v4261_v12  ;;  %v1588_v8 = vpack.c.bf16 %v4280_v4, %v4279_v26  ;;  %v2627_v27 = vpop.permute.xlu1 %2626  ;;  %v1455_v51 = vpop.f32.mrb[31].mxu1  ;;  %3988 = vmatpush3.bf16.msra.mxu0 %v1472_v23  ;;  %2697 = vperm.xlu0 %4475, %v2675_v19  }
 0x37b   : > { %v1473_v63 = vpack.c.bf16 %v1455_v51, %v1452_v39  ;;  %v1569_v3 = vpop.f32.mrb[63].mxu0  ;;  %v2205_v60 = vpop.permute.xlu0 %2204  ;;  %v2674_v30 = vadd.f32 %v4485_v11, %v2627_v27 }
 0x37c   : > { %v1587_v13 = vpack.c.bf16 %v1569_v3, %v1566_v59  ;;  %v2251_v17 = vadd.f32 %v4484_v44, %v2205_v60 }
 0x37e   : > { %3989 = vmatprep.subr.bf16.mxu0 %v1587_v13  ;;  %v2203_v15 = vpop.permute.xlu1 %2202  ;;  %2273 = vperm.xlu0 %4475, %v2251_v17   ;;  %v4285_v55 = vpop.f32.mrb[32].mxu1  ;;  %v4487_v13 = vld [vmem:[%s5683_s1 + $0x10] sm:$0xff] }
 0x37f   : > { %3990 = vmatpush3.bf16.msra.mxu0 %v1473_v63  ;;  %v3053_v34 = vpop.permute.xlu0 %3052  ;;  %v1632_v28 = vpop.f32.mrb[33].mxu1  ;;  %v2250_v39 = vadd.f32 %v4485_v11, %v2203_v15 }
 0x380   : > { %3991 = vmatprep.subr.bf16.mxu0 %v1588_v8  ;;  %v3099_v25 = vadd.f32 %v4484_v44, %v3053_v34  ;;  %v4286_v48 = vpop.f32.mrb[34].mxu1 }
 0x381   : > { %v1696_v9 = vpack.c.bf16 %v4286_v48, %v4285_v55  ;;  %v1635_v47 = vpop.f32.mrb[35].mxu1 }
 0x382   : > { %v3051_v2 = vpop.permute.xlu1 %3050  ;;  %v1695_v23 = vpack.c.bf16 %v1635_v47, %v1632_v28  ;;  %3121 = vperm.xlu1 %4476, %v3099_v25   ;;  %v4488_v25 = vld [vmem:[%s5683_s1 + $0x28] sm:$0xff] }
 0x383   : > { %v3098_v24 = vadd.f32 %v4485_v11, %v3051_v2  ;;  %3992 = vmatpush3.bf16.msra.mxu0 %v1474_v38  ;;  %v2633_v14 = vpop.permute.xlu0 %2632 }
 0x384   : > { %4299 = vmatprep.subr.bf16.mxu1 %v1695_v23  ;;  %v2677_v12 = vadd.f32 %v4486_v18, %v2633_v14 }
 0x385   : > { %3116 = vperm.xlu0 %4475, %v3098_v24   ;;  %4300 = vmatpush3.bf16.msra.mxu1 %v1695_v23 }
 0x386   : > { %v2631_v26 = vpop.permute.xlu1 %2630  ;;  %v4289_v37 = vpop.f32.mrb[36].mxu1  ;;  %4301 = vmatprep.subr.bf16.mxu1 %v1696_v9  ;;  %2692 = vperm.xlu1 %4476, %v2674_v30  }
 0x387   : > { %v2209_v44 = vpop.permute.xlu0 %2208  ;;  %v1648_v19 = vpop.f32.mrb[37].mxu1  ;;  %v2676_v34 = vadd.f32 %v4487_v13, %v2631_v26 }
 0x388   : > { %v4290_v59 = vpop.f32.mrb[38].mxu1  ;;  %v2253_v6 = vadd.f32 %v4486_v18, %v2209_v44 }
 0x389   : > { %2707 = vperm.xlu0 %4475, %v2677_v12   ;;  %v1698_v4 = vpack.c.bf16 %v4290_v59, %v4289_v37  ;;  %v1651_v38 = vpop.f32.mrb[39].mxu1  ;;  %4302 = vmatpush3.bf16.msra.mxu1 %v1696_v9 }
 0x38a   : > { %v2207_v8 = vpop.permute.xlu1 %2206  ;;  %v1697_v27 = vpack.c.bf16 %v1651_v38, %v1648_v19  ;;  %2268 = vperm.xlu1 %4476, %v2250_v39  }
 0x38b   : > { %v3057_v51 = vpop.permute.xlu0 %3056  ;;  %v2252_v24 = vadd.f32 %v4487_v13, %v2207_v8 }
 0x38c   : > { %v3101_v63 = vadd.f32 %v4486_v18, %v3057_v51  ;;  %4303 = vmatprep.subr.bf16.mxu1 %v1697_v27  ;;  %v4490_v51 = vld [vmem:[%s5683_s1 + $0x38] sm:$0xff] }
 0x38d   : > { %2283 = vperm.xlu0 %4475, %v2253_v6   ;;  %4304 = vmatpush3.bf16.msra.mxu1 %v1697_v27 }
 0x38e   : > { %v3055_v3 = vpop.permute.xlu1 %3054  ;;  %v4293_v60 = vpop.f32.mrb[40].mxu1  ;;  %4305 = vmatprep.subr.bf16.mxu1 %v1698_v4  ;;  %3131 = vperm.xlu1 %4476, %v3101_v63  }
 0x38f   : > { %v3100_v17 = vadd.f32 %v4487_v13, %v3055_v3  ;;  %v2637_v15 = vpop.permute.xlu0 %2636  ;;  %v1664_v55 = vpop.f32.mrb[41].mxu1 }
 0x390   : > { %v4294_v28 = vpop.f32.mrb[42].mxu1  ;;  %v2679_v48 = vadd.f32 %v4488_v25, %v2637_v15 }
 0x391   : > { %3126 = vperm.xlu0 %4475, %v3100_v17   ;;  %v1700_v9 = vpack.c.bf16 %v4294_v28, %v4293_v60  ;;  %v1667_v47 = vpop.f32.mrb[43].mxu1  ;;  %4306 = vmatpush3.bf16.msra.mxu1 %v1698_v4  ;;  %v4489_v4 = vld [vmem:[%s5683_s1 + $0x20] sm:$0xff] }
 0x392   : > { %v2635_v2 = vpop.permute.xlu1 %2634  ;;  %v1699_v23 = vpack.c.bf16 %v1667_v47, %v1664_v55  ;;  %2702 = vperm.xlu1 %4476, %v2676_v34  }
 0x393   : > { %v2213_v11 = vpop.permute.xlu0 %2212  ;;  %v2678_v27 = vadd.f32 %v4489_v4, %v2635_v2 }
 0x394   : > { %4307 = vmatprep.subr.bf16.mxu1 %v1699_v23  ;;  %v2255_v14 = vadd.f32 %v4488_v25, %v2213_v11 }
 0x395   : > { %2717 = vperm.xlu0 %4475, %v2679_v48   ;;  %4308 = vmatpush3.bf16.msra.mxu1 %v1699_v23  ;;  %v4492_v23 = vld [vmem:[%s5683_s1 + $0x40] sm:$0xff] }
 0x396   : > { %v2211_v30 = vpop.permute.xlu1 %2210  ;;  %v4297_v18 = vpop.f32.mrb[44].mxu1  ;;  %4309 = vmatprep.subr.bf16.mxu1 %v1700_v9  ;;  %2278 = vperm.xlu1 %4476, %v2252_v24  }
 0x397   : > { %v3061_v12 = vpop.permute.xlu0 %3060  ;;  %v1680_v26 = vpop.f32.mrb[45].mxu1  ;;  %v2254_v13 = vadd.f32 %v4489_v4, %v2211_v30 }
 0x398   : > { %v3103_v37 = vadd.f32 %v4488_v25, %v3061_v12  ;;  %v4298_v44 = vpop.f32.mrb[46].mxu1  ;;  %v4491_v25 = vld [vmem:[%s5683_s1 + $0x30] sm:$0xff] }
 0x399   : > { %2293 = vperm.xlu0 %4475, %v2255_v14   ;;  %v1702_v19 = vpack.c.bf16 %v4298_v44, %v4297_v18  ;;  %v1683_v39 = vpop.f32.mrb[47].mxu1  ;;  %4310 = vmatpush3.bf16.msra.mxu1 %v1700_v9 }
 0x39a   : > { %v3059_v59 = vpop.permute.xlu1 %3058  ;;  %v1701_v6 = vpack.c.bf16 %v1683_v39, %v1680_v26  ;;  %3141 = vperm.xlu1 %4476, %v3103_v37   ;;  %v4493_v26 = vld [vmem:[%s5683_s1 + $0x48] sm:$0xff] }
 0x39b   : > { %v3102_v38 = vadd.f32 %v4489_v4, %v3059_v59  ;;  %v2641_v8 = vpop.permute.xlu0 %2640  ;;  %v4494_v4 = vld [vmem:[%s5683_s1 + $0x50] sm:$0xff] }
 0x39c   : > { %4311 = vmatprep.subr.bf16.mxu1 %v1701_v6  ;;  %v2681_v63 = vadd.f32 %v4490_v51, %v2641_v8 }
 0x39d   : > { %3136 = vperm.xlu0 %4475, %v3102_v38   ;;  %4312 = vmatpush3.bf16.msra.mxu1 %v1701_v6 }
 0x39e   : > { %v2639_v3 = vpop.permute.xlu1 %2638  ;;  %4313 = vmatprep.subr.bf16.mxu1 %v1702_v19  ;;  %2712 = vperm.xlu1 %4476, %v2678_v27  }
 0x39f   : > { %v2217_v60 = vpop.permute.xlu0 %2216  ;;  %v2680_v47 = vadd.f32 %v4491_v25, %v2639_v3 }
 0x3a0   : > { %v2257_v17 = vadd.f32 %v4490_v51, %v2217_v60  ;;  %v4495_v60 = vld [vmem:[%s5683_s1 + $0x58] sm:$0xff] }
 0x3a1   : > { %2727 = vperm.xlu0 %4475, %v2681_v63   ;;  %4314 = vmatpush3.bf16.msra.mxu1 %v1702_v19 }
 0x3a2   : > { %v2215_v15 = vpop.permute.xlu1 %2214  ;;  %2288 = vperm.xlu1 %4476, %v2254_v13  }
 0x3a3   : > { %v3065_v55 = vpop.permute.xlu0 %3064  ;;  %v2256_v14 = vadd.f32 %v4491_v25, %v2215_v15 }
 0x3a4   : > { %v3105_v34 = vadd.f32 %v4490_v51, %v3065_v55 }
 0x3a5   : > { %2303 = vperm.xlu0 %4475, %v2257_v17  }
 0x3a6   : > { %v3063_v28 = vpop.permute.xlu1 %3062  ;;  %3151 = vperm.xlu1 %4476, %v3105_v34  }
 0x3a7   : > { %v3104_v48 = vadd.f32 %v4491_v25, %v3063_v28  ;;  %v2645_v9 = vpop.permute.xlu0 %2644 }
 0x3a8   : > { %v2683_v37 = vadd.f32 %v4493_v26, %v2645_v9 }
 0x3a9   : > { %3146 = vperm.xlu0 %4475, %v3104_v48  }
 0x3aa   : > { %v2643_v2 = vpop.permute.xlu1 %2642  ;;  %2722 = vperm.xlu1 %4476, %v2680_v47  }
 0x3ab   : > { %v2682_v11 = vadd.f32 %v4492_v23, %v2643_v2  ;;  %v2221_v24 = vpop.permute.xlu0 %2220 }
 0x3ac   : > { %v2259_v59 = vadd.f32 %v4493_v26, %v2221_v24 }
 0x3ad   : > { %2732 = vperm.xlu0 %4475, %v2682_v11  }
 0x3ae   : > { %v2219_v30 = vpop.permute.xlu1 %2218  ;;  %2298 = vperm.xlu1 %4476, %v2256_v14  }
 0x3af   : > { %v2258_v18 = vadd.f32 %v4492_v23, %v2219_v30  ;;  %v3069_v12 = vpop.permute.xlu0 %3068 }
 0x3b0   : > { %v3107_v27 = vadd.f32 %v4493_v26, %v3069_v12 }
 0x3b1   : > { %2308 = vperm.xlu0 %4475, %v2258_v18  }
 0x3b2   : > { %v3067_v44 = vpop.permute.xlu1 %3066  ;;  %2737 = vperm.xlu1 %4476, %v2683_v37  }
 0x3b3   : > { %v3106_v19 = vadd.f32 %v4492_v23, %v3067_v44  ;;  %v2649_v39 = vpop.permute.xlu0 %2648 }
 0x3b4   : > { %v2685_v13 = vadd.f32 %v4495_v60, %v2649_v39 }
 0x3b5   : > { %3156 = vperm.xlu0 %4475, %v3106_v19  }
 0x3b6   : > { %v2647_v6 = vpop.permute.xlu1 %2646  ;;  %2313 = vperm.xlu1 %4476, %v2259_v59  }
 0x3b7   : > { %v2684_v38 = vadd.f32 %v4494_v4, %v2647_v6  ;;  %v2225_v8 = vpop.permute.xlu0 %2224 }
 0x3b8   : > { %v2261_v34 = vadd.f32 %v4495_v60, %v2225_v8  ;;  %v1703_v8 = vlaneseq }
 0x3b9   : > { %2742 = vperm.xlu0 %4475, %v2684_v38  }
 0x3ba   : > { %v2223_v51 = vpop.permute.xlu1 %2222  ;;  %3161 = vperm.xlu1 %4476, %v3107_v27   ;;  %v1704_v27 = vand.u32 127, %v1703_v8 }
 0x3bb   : > { %v2260_v63 = vadd.f32 %v4494_v4, %v2223_v51  ;;  %v3073_v3 = vpop.permute.xlu0 %3072 }
 0x3bc   : > { %v3109_v9 = vadd.f32 %v4495_v60, %v3073_v3 }
 0x3bd   : > { %2318 = vperm.xlu0 %4475, %v2260_v63   ;;  %v5403_v63 = vcvt.s32.f32 %v1704_v27 }
 0x3be   : > { %v3071_v17 = vpop.permute.xlu1 %3070  ;;  %2747 = vperm.xlu1 %4476, %v2685_v13  }
 0x3bf   : > { %v3108_v15 = vadd.f32 %v4494_v4, %v3071_v17  ;;  %v2653_v55 = vpop.permute.xlu0 %2652  ;;  %vm1787_vm1 = vcmp.ge.f32.partialorder %v5403_v63, %v5117_v5  ;;  %vm1899_vm2 = vcmp.le.f32.partialorder %v5403_v63, %v5179_v21  ;;  %vm1786_vm3 = vcmp.ge.f32.partialorder %v5403_v63, %v5145_v32 }
 0x3c0   : > { %v2687_v11 = vadd.f32 %v5313_v7, %v2653_v55  ;;  %vm1898_vm4 = vcmp.le.f32.partialorder %v5403_v63, %v5175_v49  ;;  %vm1915_vm5 = vmand %vm1787_vm1, %vm1899_vm2  ;;  %vm1788_vm7 = vcmp.ge.f32.partialorder %v5403_v63, %v5127_v10  ;;  %vm1789_vm8 = vcmp.ge.f32.partialorder %v5403_v63, %v5150_v36 }
 0x3c1   : > { %3166 = vperm.xlu0 %4475, %v3108_v15   ;;  %vm1914_vm6 = vmand %vm1786_vm3, %vm1898_vm4  ;;  %vm1901_vm9 = vcmp.le.f32.partialorder %v5403_v63, %v5191_v29  ;;  %vm1900_vm10 = vcmp.le.f32.partialorder %v5403_v63, %v5182_v22  ;;  %vm1791_vm13 = vcmp.ge.f32.partialorder %v5403_v63, %v5163_v42  ;;  %vm1790_vm14 = vcmp.ge.f32.partialorder %v5403_v63, %v5160_v40 }
 0x3c2   : > { %v2651_v28 = vpop.permute.xlu1 %2650  ;;  %2323 = vperm.xlu1 %4476, %v2261_v34   ;;  %vm1917_vm11 = vmand %vm1789_vm8, %vm1901_vm9  ;;  %vm1903_vm15 = vcmp.le.f32.partialorder %v5403_v63, %v5199_v33  ;;  %vm1902_vm0 = vcmp.le.f32.partialorder %v5403_v63, %v5193_v31  ;;  %vm1792_vm3 = vcmp.ge.f32.partialorder %v5403_v63, %v5172_v16  ;;  %vm1793_vm4 = vcmp.ge.f32.partialorder %v5403_v63, %v5202_v35 }
 0x3c3   : > { %v2686_v25 = vadd.f32 %v5320_v20, %v2651_v28  ;;  %v2229_v48 = vpop.permute.xlu0 %2228  ;;  %vm1916_vm12 = vmand %vm1788_vm7, %vm1900_vm10  ;;  %vm1794_vm9 = vcmp.ge.f32.partialorder %v5403_v63, %v5217_v46  ;;  %vm1906_vm10 = vcmp.le.f32.partialorder %v5403_v63, %v5229_v53 }
 0x3c4   : > { %v2263_v30 = vadd.f32 %v5313_v7, %v2229_v48  ;;  %vm1919_vm1 = vmand %vm1791_vm13, %vm1903_vm15  ;;  %vm1796_vm15 = vcmp.ge.f32.partialorder %v5403_v63, %v5235_v56 }
 0x3c5   : > { %2752 = vperm.xlu0 %4475, %v2686_v25   ;;  %vm1918_vm2 = vmand %vm1790_vm14, %vm1902_vm0  ;;  %vm1908_vm0 = vcmp.le.f32.partialorder %v5403_v63, %v5247_v61 }
 0x3c6   : > { %v2227_v47 = vpop.permute.xlu1 %2226  ;;  %3171 = vperm.xlu1 %4476, %v3109_v9   ;;  %vm1922_vm13 = vmand %vm1794_vm9, %vm1906_vm10 }
 0x3c7   : > { %v2262_v2 = vadd.f32 %v5320_v20, %v2227_v47  ;;  %v3077_v23 = vpop.permute.xlu0 %3076 }
 0x3c8   : > { %v3111_v37 = vadd.f32 %v5313_v7, %v3077_v23 }
 0x3c9   : > { %2328 = vperm.xlu0 %4475, %v2262_v2  }
 0x3ca   : > { %v3075_v24 = vpop.permute.xlu1 %3074  ;;  %2757 = vperm.xlu1 %4476, %v2687_v11  }
 0x3cb   : > { %v3110_v14 = vadd.f32 %v5320_v20, %v3075_v24  ;;  %v2657_v18 = vpop.permute.xlu0 %2656 }
 0x3cc   : > { %v2689_v59 = vadd.f32 %v5331_v52, %v2657_v18 }
 0x3cd   : > { %3176 = vperm.xlu0 %4475, %v3110_v14  }
 0x3ce   : > { %v2655_v12 = vpop.permute.xlu1 %2654  ;;  %2333 = vperm.xlu1 %4476, %v2263_v30  }
 0x3cf   : > { %v2688_v26 = vadd.f32 %v5338_v58, %v2655_v12  ;;  %v2233_v19 = vpop.permute.xlu0 %2232  ;;  %v4636_v12 = vmov 0.0  }
 0x3d0   : > { %v2265_v4 = vadd.f32 %v5331_v52, %v2233_v19  ;;  %v3694_v32 = vsel %vm1915_vm5, 1.0, %v4636_v12  ;;  %v3693_v19 = vsel %vm1914_vm6, 1.0, %v4636_v12  ;;  %v3696_v36 = vsel %vm1917_vm11, 1.0, %v4636_v12 }
 0x3d1   : > { %2762 = vperm.xlu0 %4475, %v2688_v26   ;;  %v3695_v22 = vsel %vm1916_vm12, 1.0, %v4636_v12  ;;  %v3698_v42 = vsel %vm1919_vm1, 1.0, %v4636_v12  ;;  %v3697_v31 = vsel %vm1918_vm2, 1.0, %v4636_v12  ;;  %vm1905_vm5 = vcmp.le.f32.partialorder %v5403_v63, %v5213_v45 }
 0x3d2   : > { %v2231_v44 = vpop.permute.xlu1 %2230  ;;  %3181 = vperm.xlu1 %4476, %v3111_v37   ;;  %vm1904_vm6 = vcmp.le.f32.partialorder %v5403_v63, %v5211_v41  ;;  %vm1921_vm7 = vmand %vm1793_vm4, %vm1905_vm5  ;;  %vm1795_vm11 = vcmp.ge.f32.partialorder %v5403_v63, %v5220_v50  ;;  %vm1907_vm12 = vcmp.le.f32.partialorder %v5403_v63, %v5231_v54  ;;  %v3701_v53 = vsel %vm1922_vm13, 1.0, %v4636_v12 }
 0x3d3   : > { %v2264_v39 = vadd.f32 %v5338_v58, %v2231_v44  ;;  %v3081_v38 = vpop.permute.xlu0 %3080  ;;  %vm1920_vm8 = vmand %vm1792_vm3, %vm1904_vm6  ;;  %v3700_v45 = vsel %vm1921_vm7, 1.0, %v4636_v12  ;;  %vm1797_vm1 = vcmp.ge.f32.partialorder %v5403_v63, %v5238_v57  ;;  %vm1909_vm2 = vcmp.le.f32.partialorder %v5403_v63, %v5249_v62 }
 0x3d4   : > { %v3113_v7 = vadd.f32 %v5331_v52, %v3081_v38  ;;  %vm1923_vm14 = vmand %vm1795_vm11, %vm1907_vm12  ;;  %vm1798_vm5 = vcmp.ge.f32.partialorder %v5403_v63, %v5253_v0  ;;  %vm1910_vm6 = vcmp.le.f32.partialorder %v5403_v63, %v5259_v43  ;;  %vm1799_vm7 = vcmp.ge.f32.partialorder %v5403_v63, %v5256_v1 }
 0x3d5   : > { %2338 = vperm.xlu0 %4475, %v2264_v39   ;;  %vm1924_vm3 = vmand %vm1796_vm15, %vm1908_vm0 }
 0x3d6   : > { %v3079_v20 = vpop.permute.xlu1 %3078  ;;  %2767 = vperm.xlu1 %4476, %v2689_v59   ;;  %vm1925_vm4 = vmand %vm1797_vm1, %vm1909_vm2 }
 0x3d7   : > { %v3112_v6 = vadd.f32 %v5338_v58, %v3079_v20  ;;  %vm1926_vm9 = vmand %vm1798_vm5, %vm1910_vm6 }
 0x3d9   : > { %3186 = vperm.xlu0 %4475, %v3112_v6  }
 0x3da   : > { %2343 = vperm.xlu1 %4476, %v2265_v4  }
 0x3de   : > { %3191 = vperm.xlu1 %4476, %v3113_v7  }
 0x3f9   : > { %v2698_v51 = vpop.permute.xlu0 %2697 }
 0x3fa   : > { %v2771_v3 = vsub.f32 %v2698_v51, %v5403_v63 }
 0x3fc   : > { %v2787_v13 = vand.u32 2147483647, %v2771_v3 }
 0x3fd   : > { %v2274_v60 = vpop.permute.xlu0 %2273 }
 0x3fe   : > { %v2347_v17 = vsub.f32 %v2274_v60, %v5403_v63  ;;  %v2803_v34 = vsub.f32 1.0, %v2787_v13 }
 0x400   : > { %v2363_v28 = vand.u32 2147483647, %v2347_v17  ;;  %v2819_v11 = vmax.f32 %v2803_v34, 0.0 }
 0x401   : > { %v3122_v58 = vpop.permute.xlu1 %3121 }
 0x402   : > { %v3195_v15 = vsub.f32 %v3122_v58, %v5403_v63  ;;  %v2379_v24 = vsub.f32 1.0, %v2363_v28  ;;  %v2835_v6 = vmul.f32 %v3694_v32, %v2819_v11 }
 0x404   : > { %v3211_v52 = vand.u32 2147483647, %v3195_v15  ;;  %v3117_v55 = vpop.permute.xlu0 %3116  ;;  %v2395_v4 = vmax.f32 %v2379_v24, 0.0 }
 0x405   : > { %v3194_v25 = vsub.f32 %v3117_v55, %v5403_v63  ;;  %v2693_v48 = vpop.permute.xlu1 %2692 }
 0x406   : > { %v3227_v9 = vsub.f32 1.0, %v3211_v52  ;;  %v2770_v47 = vsub.f32 %v2693_v48, %v5403_v63  ;;  %v2411_v55 = vmul.f32 %v3694_v32, %v2395_v4 }
 0x407   : > { %v3210_v5 = vand.u32 2147483647, %v3194_v25 }
 0x408   : > { %v3243_v2 = vmax.f32 %v3227_v9, 0.0  ;;  %v2786_v21 = vand.u32 2147483647, %v2770_v47  ;;  %v2708_v23 = vpop.permute.xlu0 %2707 }
 0x409   : > { %v3226_v14 = vsub.f32 1.0, %v3210_v5  ;;  %v2773_v30 = vsub.f32 %v2708_v23, %v5403_v63  ;;  %v2269_v18 = vpop.permute.xlu1 %2268 }
 0x40a   : > { %v2802_v26 = vsub.f32 1.0, %v2786_v21  ;;  %v2346_v49 = vsub.f32 %v2269_v18, %v5403_v63  ;;  %v3259_v37 = vmul.f32 %v3694_v32, %v3243_v2 }
 0x40b   : > { %v3242_v44 = vmax.f32 %v3226_v14, 0.0  ;;  %v2789_v7 = vand.u32 2147483647, %v2773_v30 }
 0x40c   : > { %v2818_v39 = vmax.f32 %v2802_v26, 0.0  ;;  %v2362_v59 = vand.u32 2147483647, %v2346_v49  ;;  %v2284_v20 = vpop.permute.xlu0 %2283 }
 0x40d   : > { %v3258_v38 = vmul.f32 %v3693_v19, %v3242_v44  ;;  %v3132_v8 = vpop.permute.xlu1 %3131  ;;  %v2349_v3 = vsub.f32 %v2284_v20, %v5403_v63  ;;  %v2805_v34 = vsub.f32 1.0, %v2789_v7 }
 0x40e   : > { %v2834_v27 = vmul.f32 %v3693_v19, %v2818_v39  ;;  %v2378_v51 = vsub.f32 1.0, %v2362_v59  ;;  %v3197_v60 = vsub.f32 %v3132_v8, %v5403_v63 }
 0x40f   : > { %v3274_v13 = vpack.c.bf16 %v3259_v37, %v3258_v38  ;;  %v2365_v9 = vand.u32 2147483647, %v2349_v3  ;;  %v2821_v14 = vmax.f32 %v2805_v34, 0.0 }
 0x410   : > { %v2394_v17 = vmax.f32 %v2378_v51, 0.0  ;;  %v3213_v58 = vand.u32 2147483647, %v3197_v60  ;;  %v3127_v15 = vpop.permute.xlu0 %3126  ;;  %v2850_v52 = vpack.c.bf16 %v2835_v6, %v2834_v27 }
 0x411   : > { %v3196_v28 = vsub.f32 %v3127_v15, %v5403_v63  ;;  %4315 = vmatprep.mubr.bf16.mxu1 %v3274_v13  ;;  %v2703_v25 = vpop.permute.xlu1 %2702  ;;  %v2381_v32 = vsub.f32 1.0, %v2365_v9  ;;  %v2837_v59 = vmul.f32 %v3696_v36, %v2821_v14 }
 0x412   : > { %v2410_v48 = vmul.f32 %v3693_v19, %v2394_v17  ;;  %v3229_v47 = vsub.f32 1.0, %v3213_v58  ;;  %v2772_v5 = vsub.f32 %v2703_v25, %v5403_v63  ;;  %3321 = vmatprep.mubr.bf16.mxu0 %v2850_v52 }
 0x413   : > { %v3212_v2 = vand.u32 2147483647, %v3196_v28  ;;  %v2397_v7 = vmax.f32 %v2381_v32, 0.0 }
 0x414   : > { %v2426_v21 = vpack.c.bf16 %v2411_v55, %v2410_v48  ;;  %v3245_v23 = vmax.f32 %v3229_v47, 0.0  ;;  %v2788_v11 = vand.u32 2147483647, %v2772_v5  ;;  %v2718_v24 = vpop.permute.xlu0 %2717 }
 0x415   : > { %v3228_v30 = vsub.f32 1.0, %v3212_v2  ;;  %v2775_v29 = vsub.f32 %v2718_v24, %v5403_v63  ;;  %v2279_v18 = vpop.permute.xlu1 %2278  ;;  %v2413_v28 = vmul.f32 %v3696_v36, %v2397_v7 }
 0x416   : > { %v2804_v26 = vsub.f32 1.0, %v2788_v11  ;;  %v2348_v49 = vsub.f32 %v2279_v18, %v5403_v63  ;;  %3322 = vmatmul.mubr.bf16.vlgmr.msra.gmra.mrb[64].mxu0 %v2426_v21  ;;  %v3261_v37 = vmul.f32 %v3696_v36, %v3245_v23 }
 0x417   : > { %v3244_v44 = vmax.f32 %v3228_v30, 0.0  ;;  %v2791_v6 = vand.u32 2147483647, %v2775_v29 }
 0x418   : > { %v2820_v19 = vmax.f32 %v2804_v26, 0.0  ;;  %v2364_v39 = vand.u32 2147483647, %v2348_v49  ;;  %v2294_v10 = vpop.permute.xlu0 %2293 }
 0x419   : > { %v3260_v20 = vmul.f32 %v3695_v22, %v3244_v44  ;;  %v2351_v4 = vsub.f32 %v2294_v10, %v5403_v63  ;;  %v3142_v38 = vpop.permute.xlu1 %3141  ;;  %v2807_v15 = vsub.f32 1.0, %v2791_v6 }
 0x41a   : > { %v2836_v8 = vmul.f32 %v3695_v22, %v2820_v19  ;;  %v2380_v27 = vsub.f32 1.0, %v2364_v39  ;;  %v3199_v51 = vsub.f32 %v3142_v38, %v5403_v63 }
 0x41b   : > { %v3275_v3 = vpack.c.bf16 %v3261_v37, %v3260_v20  ;;  %v2367_v52 = vand.u32 2147483647, %v2351_v4  ;;  %v2823_v11 = vmax.f32 %v2807_v15, 0.0 }
 0x41c   : > { %v2396_v60 = vmax.f32 %v2380_v27, 0.0  ;;  %v3215_v13 = vand.u32 2147483647, %v3199_v51  ;;  %v3137_v17 = vpop.permute.xlu0 %3136  ;;  %v2851_v58 = vpack.c.bf16 %v2837_v59, %v2836_v8 }
 0x41d   : > { %v3198_v55 = vsub.f32 %v3137_v17, %v5403_v63  ;;  %4316 = vmatmul.mubr.bf16.vlgmr.msra.gmra.mrb[48].mxu1 %v3275_v3  ;;  %v2713_v34 = vpop.permute.xlu1 %2712  ;;  %v2383_v24 = vsub.f32 1.0, %v2367_v52  ;;  %v2839_v37 = vmul.f32 %v3698_v42, %v2823_v11 }
 0x41e   : > { %v2412_v25 = vmul.f32 %v3695_v22, %v2396_v60  ;;  %v3231_v48 = vsub.f32 1.0, %v3215_v13  ;;  %v2774_v9 = vsub.f32 %v2713_v34, %v5403_v63  ;;  %3329 = vmatprep.mubr.bf16.mxu0 %v2851_v58 }
 0x41f   : > { %v3214_v47 = vand.u32 2147483647, %v3198_v55  ;;  %v2399_v44 = vmax.f32 %v2383_v24, 0.0 }
 0x420   : > { %v3247_v5 = vmax.f32 %v3231_v48, 0.0  ;;  %v2790_v2 = vand.u32 2147483647, %v2774_v9  ;;  %v2728_v21 = vpop.permute.xlu0 %2727  ;;  %v2427_v23 = vpack.c.bf16 %v2413_v28, %v2412_v25 }
 0x421   : > { %v3230_v14 = vsub.f32 1.0, %v3214_v47  ;;  %v2777_v33 = vsub.f32 %v2728_v21, %v5403_v63  ;;  %v2289_v30 = vpop.permute.xlu1 %2288  ;;  %v2415_v51 = vmul.f32 %v3698_v42, %v2399_v44 }
 0x422   : > { %v2806_v29 = vsub.f32 1.0, %v2790_v2  ;;  %v2350_v18 = vsub.f32 %v2289_v30, %v5403_v63  ;;  %3330 = vmatmul.mubr.bf16.gmra.mrb[68].mxu0 %v2427_v23  ;;  %v3263_v36 = vmul.f32 %v3698_v42, %v3247_v5  ;;  %v3699_v23 = vsel %vm1920_vm8, 1.0, %v4636_v12 }
 0x423   : > { %v3246_v32 = vmax.f32 %v3230_v14, 0.0  ;;  %v2793_v19 = vand.u32 2147483647, %v2777_v33 }
 0x424   : > { %v2822_v26 = vmax.f32 %v2806_v29, 0.0  ;;  %v2366_v49 = vand.u32 2147483647, %v2350_v18  ;;  %v2304_v40 = vpop.permute.xlu0 %2303 }
 0x425   : > { %v3262_v22 = vmul.f32 %v3697_v31, %v3246_v32  ;;  %v3152_v39 = vpop.permute.xlu1 %3151  ;;  %v2353_v20 = vsub.f32 %v2304_v40, %v5403_v63  ;;  %v2809_v3 = vsub.f32 1.0, %v2793_v19 }
 0x426   : > { %v2838_v10 = vmul.f32 %v3697_v31, %v2822_v26  ;;  %v2382_v59 = vsub.f32 1.0, %v2366_v49  ;;  %v3201_v6 = vsub.f32 %v3152_v39, %v5403_v63 }
 0x427   : > { %v3276_v4 = vpack.c.bf16 %v3263_v36, %v3262_v22  ;;  %v2369_v58 = vand.u32 2147483647, %v2353_v20  ;;  %v2825_v48 = vmax.f32 %v2809_v3, 0.0 }
 0x428   : > { %v2398_v38 = vmax.f32 %v2382_v59, 0.0  ;;  %v3217_v7 = vand.u32 2147483647, %v3201_v6  ;;  %v3147_v8 = vpop.permute.xlu0 %3146  ;;  %v2852_v27 = vpack.c.bf16 %v2839_v37, %v2838_v10 }
 0x429   : > { %v3200_v60 = vsub.f32 %v3147_v8, %v5403_v63  ;;  %4319 = vmatprep.mubr.bf16.mxu1 %v3276_v4  ;;  %v2723_v13 = vpop.permute.xlu1 %2722  ;;  %v2385_v2 = vsub.f32 1.0, %v2369_v58  ;;  %v2841_v42 = vmul.f32 %v3700_v45, %v2825_v48 }
 0x42a   : > { %v2414_v17 = vmul.f32 %v3697_v31, %v2398_v38  ;;  %v3233_v15 = vsub.f32 1.0, %v3217_v7  ;;  %v2776_v52 = vsub.f32 %v2723_v13, %v5403_v63  ;;  %3337 = vmatprep.mubr.bf16.mxu0 %v2852_v27 }
 0x42b   : > { %v3216_v41 = vand.u32 2147483647, %v3200_v60  ;;  %v2401_v31 = vmax.f32 %v2385_v2, 0.0  ;;  %v3702_v60 = vsel %vm1923_vm14, 1.0, %v4636_v12 }
 0x42c   : > { %v3249_v55 = vmax.f32 %v3233_v15, 0.0  ;;  %v2792_v34 = vand.u32 2147483647, %v2776_v52  ;;  %v2733_v28 = vpop.permute.xlu0 %2732  ;;  %v2428_v25 = vpack.c.bf16 %v2415_v51, %v2414_v17 }
 0x42d   : > { %v3232_v9 = vsub.f32 1.0, %v3216_v41  ;;  %v2778_v47 = vsub.f32 %v2733_v28, %v5403_v63  ;;  %v2299_v5 = vpop.permute.xlu1 %2298  ;;  %v2417_v54 = vmul.f32 %v3700_v45, %v2401_v31 }
 0x42e   : > { %v2808_v21 = vsub.f32 1.0, %v2792_v34  ;;  %v2352_v35 = vsub.f32 %v2299_v5, %v5403_v63  ;;  %3338 = vmatmul.mubr.bf16.gmra.mrb[72].mxu0 %v2428_v25  ;;  %v3265_v16 = vmul.f32 %v3700_v45, %v3249_v55 }
 0x42f   : > { %v3248_v11 = vmax.f32 %v3232_v9, 0.0  ;;  %v2794_v24 = vand.u32 2147483647, %v2778_v47 }
 0x430   : > { %v2824_v14 = vmax.f32 %v2808_v21, 0.0  ;;  %v2368_v33 = vand.u32 2147483647, %v2352_v35  ;;  %v2309_v30 = vpop.permute.xlu0 %2308 }
 0x431   : > { %v3264_v29 = vmul.f32 %v3699_v23, %v3248_v11  ;;  %v2810_v18 = vsub.f32 1.0, %v2794_v24  ;;  %v2354_v36 = vsub.f32 %v2309_v30, %v5403_v63  ;;  %v2738_v32 = vpop.permute.xlu1 %2737 }
 0x432   : > { %v2840_v26 = vmul.f32 %v3699_v23, %v2824_v14  ;;  %v2384_v49 = vsub.f32 1.0, %v2368_v33  ;;  %v2779_v40 = vsub.f32 %v2738_v32, %v5403_v63 }
 0x433   : > { %v2370_v37 = vand.u32 2147483647, %v2354_v36  ;;  %v3277_v44 = vpack.c.bf16 %v3265_v16, %v3264_v29  ;;  %v2826_v59 = vmax.f32 %v2810_v18, 0.0 }
 0x434   : > { %v2400_v22 = vmax.f32 %v2384_v49, 0.0  ;;  %v2795_v19 = vand.u32 2147483647, %v2779_v40  ;;  %v3157_v39 = vpop.permute.xlu0 %3156  ;;  %v2853_v10 = vpack.c.bf16 %v2841_v42, %v2840_v26  ;;  %v3703_v40 = vsel %vm1924_vm3, 1.0, %v4636_v12 }
 0x435   : > { %v2386_v20 = vsub.f32 1.0, %v2370_v37  ;;  %v3202_v50 = vsub.f32 %v3157_v39, %v5403_v63  ;;  %4320 = vmatmul.mubr.bf16.gmra.mrb[52].mxu1 %v3277_v44  ;;  %v2314_v6 = vpop.permute.xlu1 %2313  ;;  %v2842_v13 = vmul.f32 %v3701_v53, %v2826_v59 }
 0x436   : > { %v2416_v4 = vmul.f32 %v3699_v23, %v2400_v22  ;;  %v2811_v38 = vsub.f32 1.0, %v2795_v19  ;;  %v2355_v7 = vsub.f32 %v2314_v6, %v5403_v63  ;;  %3345 = vmatprep.mubr.bf16.mxu0 %v2853_v10  ;;  %v3704_v22 = vsel %vm1925_vm4, 1.0, %v4636_v12 }
 0x437   : > { %v3218_v8 = vand.u32 2147483647, %v3202_v50  ;;  %v2402_v17 = vmax.f32 %v2386_v20, 0.0 }
 0x438   : > { %v2827_v27 = vmax.f32 %v2811_v38, 0.0  ;;  %v2371_v51 = vand.u32 2147483647, %v2355_v7  ;;  %v2743_v46 = vpop.permute.xlu0 %2742  ;;  %v2429_v3 = vpack.c.bf16 %v2417_v54, %v2416_v4 }
 0x439   : > { %v2780_v58 = vsub.f32 %v2743_v46, %v5403_v63  ;;  %v3162_v15 = vpop.permute.xlu1 %3161  ;;  %v3234_v41 = vsub.f32 1.0, %v3218_v8  ;;  %v2418_v5 = vmul.f32 %v3701_v53, %v2402_v17 }
 0x43a   : > { %v2843_v52 = vmul.f32 %v3702_v60, %v2827_v27  ;;  %v2387_v55 = vsub.f32 1.0, %v2371_v51  ;;  %v3203_v34 = vsub.f32 %v3162_v15, %v5403_v63  ;;  %3346 = vmatmul.mubr.bf16.gmra.mrb[76].mxu0 %v2429_v3  ;;  %v5713_v15 = vld [vmem:[#allocation11_spill] sm:$0xff] }
 0x43b   : > { %v2796_v28 = vand.u32 2147483647, %v2780_v58  ;;  %v3250_v35 = vmax.f32 %v3234_v41, 0.0  ;;  %vm1911_vm8 = vcmp.le.f32.partialorder %v5403_v63, %v5713_v15 }
 0x43c   : > { %v2403_v25 = vmax.f32 %v2387_v55, 0.0  ;;  %v3219_v48 = vand.u32 2147483647, %v3203_v34  ;;  %v2319_v9 = vpop.permute.xlu0 %2318  ;;  %v2854_v47 = vpack.c.bf16 %v2843_v52, %v2842_v13  ;;  %vm1927_vm10 = vmand %vm1799_vm7, %vm1911_vm8 }
 0x43d   : > { %v2812_v45 = vsub.f32 1.0, %v2796_v28  ;;  %v2356_v2 = vsub.f32 %v2319_v9, %v5403_v63  ;;  %v2748_v21 = vpop.permute.xlu1 %2747  ;;  %v3266_v32 = vmul.f32 %v3701_v53, %v3250_v35  ;;  %v3705_v35 = vsel %vm1926_vm9, 1.0, %v4636_v12 }
 0x43e   : > { %v2419_v23 = vmul.f32 %v3702_v60, %v2403_v25  ;;  %v3235_v16 = vsub.f32 1.0, %v3219_v48  ;;  %v2781_v11 = vsub.f32 %v2748_v21, %v5403_v63  ;;  %3353 = vmatprep.mubr.bf16.mxu0 %v2854_v47 }
 0x43f   : > { %v2372_v24 = vand.u32 2147483647, %v2356_v2  ;;  %v2828_v29 = vmax.f32 %v2812_v45, 0.0 }
 0x440   : > { %v3251_v14 = vmax.f32 %v3235_v16, 0.0  ;;  %v2797_v33 = vand.u32 2147483647, %v2781_v11  ;;  %v3167_v30 = vpop.permute.xlu0 %3166  ;;  %v2430_v42 = vpack.c.bf16 %v2419_v23, %v2418_v5  ;;  %v3706_v11 = vsel %vm1927_vm10, 1.0, %v4636_v12 }
 0x441   : > { %v2388_v18 = vsub.f32 1.0, %v2372_v24  ;;  %v3204_v36 = vsub.f32 %v3167_v30, %v5403_v63  ;;  %v2324_v57 = vpop.permute.xlu1 %2323  ;;  %v2844_v19 = vmul.f32 %v3703_v40, %v2828_v29 }
 0x442   : > { %v3267_v62 = vmul.f32 %v3702_v60, %v3251_v14  ;;  %v2813_v31 = vsub.f32 1.0, %v2797_v33  ;;  %v2357_v26 = vsub.f32 %v2324_v57, %v5403_v63  ;;  %3354 = vmatmul.mubr.bf16.gmra.mrb[80].mxu0 %v2430_v42 }
 0x443   : > { %v3220_v49 = vand.u32 2147483647, %v3204_v36  ;;  %v2404_v39 = vmax.f32 %v2388_v18, 0.0 }
 0x444   : > { %v2829_v61 = vmax.f32 %v2813_v31, 0.0  ;;  %v2373_v37 = vand.u32 2147483647, %v2357_v26  ;;  %v2753_v44 = vpop.permute.xlu0 %2752  ;;  %v3278_v56 = vpack.c.bf16 %v3267_v62, %v3266_v32  ;;  %v5714_v32 = vld [vmem:[#allocation12_spill] sm:$0xff] }
 0x445   : > { %v2782_v10 = vsub.f32 %v2753_v44, %v5403_v63  ;;  %v3172_v59 = vpop.permute.xlu1 %3171  ;;  %v3236_v50 = vsub.f32 1.0, %v3220_v49  ;;  %v2420_v27 = vmul.f32 %v3703_v40, %v2404_v39  ;;  %vm1800_vm11 = vcmp.ge.f32.partialorder %v5403_v63, %v5714_v32 }
 0x446   : > { %v2845_v20 = vmul.f32 %v3704_v22, %v2829_v61  ;;  %v2389_v6 = vsub.f32 1.0, %v2373_v37  ;;  %v3205_v54 = vsub.f32 %v3172_v59, %v5403_v63  ;;  %4323 = vmatprep.mubr.bf16.mxu1 %v3278_v56  ;;  %v5716_v59 = vld [vmem:[#allocation13_spill] sm:$0xff] }
 0x447   : > { %v2798_v4 = vand.u32 2147483647, %v2782_v10  ;;  %v3252_v60 = vmax.f32 %v3236_v50, 0.0  ;;  %vm1801_vm13 = vcmp.ge.f32.partialorder %v5403_v63, %v5716_v59 }
 0x448   : > { %v2405_v38 = vmax.f32 %v2389_v6, 0.0  ;;  %v3221_v7 = vand.u32 2147483647, %v3205_v54  ;;  %v2329_v8 = vpop.permute.xlu0 %2328  ;;  %v2855_v53 = vpack.c.bf16 %v2845_v20, %v2844_v19  ;;  %v5717_v20 = vld [vmem:[#allocation15_spill] sm:$0xff] }
 0x449   : > { %v2814_v51 = vsub.f32 1.0, %v2798_v4  ;;  %v2358_v46 = vsub.f32 %v2329_v8, %v5403_v63  ;;  %v2758_v3 = vpop.permute.xlu1 %2757  ;;  %v3268_v47 = vmul.f32 %v3703_v40, %v3252_v60  ;;  %v5715_v40 = vld [vmem:[#allocation14_spill] sm:$0xff]  ;;  %vm1913_vm14 = vcmp.le.f32.partialorder %v5403_v63, %v5717_v20 }
 0x44a   : > { %v2421_v13 = vmul.f32 %v3704_v22, %v2405_v38  ;;  %v3237_v17 = vsub.f32 1.0, %v3221_v7  ;;  %v2783_v58 = vsub.f32 %v2758_v3, %v5403_v63  ;;  %3361 = vmatprep.mubr.bf16.mxu0 %v2855_v53  ;;  %vm1912_vm12 = vcmp.le.f32.partialorder %v5403_v63, %v5715_v40  ;;  %vm1929_vm0 = vmand %vm1801_vm13, %vm1913_vm14 }
 0x44b   : > { %v2374_v52 = vand.u32 2147483647, %v2358_v46  ;;  %v2830_v25 = vmax.f32 %v2814_v51, 0.0  ;;  %vm1928_vm15 = vmand %vm1800_vm11, %vm1912_vm12 }
 0x44c   : > { %v3253_v41 = vmax.f32 %v3237_v17, 0.0  ;;  %v2799_v55 = vand.u32 2147483647, %v2783_v58  ;;  %v3177_v34 = vpop.permute.xlu0 %3176  ;;  %v2431_v28 = vpack.c.bf16 %v2421_v13, %v2420_v27  ;;  %v3707_v17 = vsel %vm1928_vm15, 1.0, %v4636_v12 }
 0x44d   : > { %v2390_v48 = vsub.f32 1.0, %v2374_v52  ;;  %v3206_v9 = vsub.f32 %v3177_v34, %v5403_v63  ;;  %v2334_v1 = vpop.permute.xlu1 %2333  ;;  %v2846_v24 = vmul.f32 %v3705_v35, %v2830_v25 }
 0x44e   : > { %v3269_v5 = vmul.f32 %v3704_v22, %v3253_v41  ;;  %v2815_v45 = vsub.f32 1.0, %v2799_v55  ;;  %v2359_v2 = vsub.f32 %v2334_v1, %v5403_v63  ;;  %3362 = vmatmul.mubr.bf16.gmra.mrb[84].mxu0 %v2431_v28  ;;  %v3708_v41 = vsel %vm1929_vm0, 1.0, %v4636_v12 }
 0x44f   : > { %v3222_v21 = vand.u32 2147483647, %v3206_v9  ;;  %v2406_v14 = vmax.f32 %v2390_v48, 0.0 }
 0x450   : > { %v2831_v43 = vmax.f32 %v2815_v45, 0.0  ;;  %v2375_v23 = vand.u32 2147483647, %v2359_v2  ;;  %v2763_v16 = vpop.permute.xlu0 %2762  ;;  %v3279_v0 = vpack.c.bf16 %v3269_v5, %v3268_v47 }
 0x451   : > { %v2784_v33 = vsub.f32 %v2763_v16, %v5403_v63  ;;  %v3182_v30 = vpop.permute.xlu1 %3181  ;;  %v3238_v29 = vsub.f32 1.0, %v3222_v21  ;;  %v2422_v61 = vmul.f32 %v3705_v35, %v2406_v14 }
 0x452   : > { %v2847_v42 = vmul.f32 %v3706_v11, %v2831_v43  ;;  %v2391_v18 = vsub.f32 1.0, %v2375_v23  ;;  %v3207_v36 = vsub.f32 %v3182_v30, %v5403_v63  ;;  %4324 = vmatmul.mubr.bf16.gmra.mrb[56].mxu1 %v3279_v0  ;;  %v5593_v30 = vld [vmem:[%s5688_s6] ss:$0 sm:$0xff] }
 0x453   : > { %v2800_v57 = vand.u32 2147483647, %v2784_v33  ;;  %v3254_v22 = vmax.f32 %v3238_v29, 0.0 }
 0x454   : > { %v2407_v62 = vmax.f32 %v2391_v18, 0.0  ;;  %v3223_v31 = vand.u32 2147483647, %v3207_v36  ;;  %v2339_v26 = vpop.permute.xlu0 %2338  ;;  %v2856_v49 = vpack.c.bf16 %v2847_v42, %v2846_v24 }
 0x455   : > { %v2816_v37 = vsub.f32 1.0, %v2800_v57  ;;  %v2360_v44 = vsub.f32 %v2339_v26, %v5403_v63  ;;  %v2768_v56 = vpop.permute.xlu1 %2767  ;;  %v3270_v51 = vmul.f32 %v3705_v35, %v3254_v22 }
 0x456   : > { %v2423_v19 = vmul.f32 %v3706_v11, %v2407_v62  ;;  %v3239_v39 = vsub.f32 1.0, %v3223_v31  ;;  %v2785_v10 = vsub.f32 %v2768_v56, %v5403_v63  ;;  %3369 = vmatprep.mubr.bf16.mxu0 %v2856_v49 }
 0x457   : > { %v2376_v50 = vand.u32 2147483647, %v2360_v44  ;;  %v2832_v7 = vmax.f32 %v2816_v37, 0.0 }
 0x458   : > { %v3255_v6 = vmax.f32 %v3239_v39, 0.0  ;;  %v2801_v54 = vand.u32 2147483647, %v2785_v10  ;;  %v3187_v4 = vpop.permute.xlu0 %3186  ;;  %v2432_v38 = vpack.c.bf16 %v2423_v19, %v2422_v61 }
 0x459   : > { %v2392_v8 = vsub.f32 1.0, %v2376_v50  ;;  %v3208_v53 = vsub.f32 %v3187_v4, %v5403_v63  ;;  %v2344_v27 = vpop.permute.xlu1 %2343  ;;  %v2848_v55 = vmul.f32 %v3707_v17, %v2832_v7 }
 0x45a   : > { %v3271_v46 = vmul.f32 %v3706_v11, %v3255_v6  ;;  %v2817_v3 = vsub.f32 1.0, %v2801_v54  ;;  %v2361_v60 = vsub.f32 %v2344_v27, %v5403_v63  ;;  %3370 = vmatmul.mubr.bf16.gmra.mrb[88].mxu0 %v2432_v38 }
 0x45b   : > { %v3224_v13 = vand.u32 2147483647, %v3208_v53  ;;  %v2408_v34 = vmax.f32 %v2392_v8, 0.0 }
 0x45c   : > { %v2833_v58 = vmax.f32 %v2817_v3, 0.0  ;;  %v2377_v15 = vand.u32 2147483647, %v2361_v60  ;;  %v3280_v52 = vpack.c.bf16 %v3271_v46, %v3270_v51 }
 0x45d   : > { %v3192_v28 = vpop.permute.xlu1 %3191  ;;  %v3240_v48 = vsub.f32 1.0, %v3224_v13  ;;  %v2424_v2 = vmul.f32 %v3707_v17, %v2408_v34 }
 0x45e   : > { %v2849_v25 = vmul.f32 %v3708_v41, %v2833_v58  ;;  %v2393_v9 = vsub.f32 1.0, %v2377_v15  ;;  %v3209_v1 = vsub.f32 %v3192_v28, %v5403_v63  ;;  %4327 = vmatprep.mubr.bf16.mxu1 %v3280_v52 }
 0x45f   : > { %v3256_v21 = vmax.f32 %v3240_v48, 0.0 }
 0x460   : > { %v2409_v47 = vmax.f32 %v2393_v9, 0.0  ;;  %v3225_v5 = vand.u32 2147483647, %v3209_v1  ;;  %v2857_v45 = vpack.c.bf16 %v2849_v25, %v2848_v55 }
 0x461   : > { %v3272_v12 = vmul.f32 %v3707_v17, %v3256_v21 }
 0x462   : > { %v2425_v35 = vmul.f32 %v3708_v41, %v2409_v47  ;;  %v3241_v43 = vsub.f32 1.0, %v3225_v5  ;;  %3377 = vmatprep.mubr.bf16.mxu0 %v2857_v45 }
 0x464   : > { %v3257_v23 = vmax.f32 %v3241_v43, 0.0  ;;  %v2433_v16 = vpack.c.bf16 %v2425_v35, %v2424_v2 }
 0x466   : > { %v3273_v0 = vmul.f32 %v3708_v41, %v3257_v23  ;;  %3378 = vmatmul.mubr.bf16.gmra.mrb[92].mxu0 %v2433_v16 }
 0x468   : > { %v3281_v11 = vpack.c.bf16 %v3273_v0, %v3272_v12 }
 0x46a   : > { %4328 = vmatmul.mubr.bf16.gmra.mrb[60].mxu1 %v3281_v11 }
 0x4e9   : > { %v3993_v24 = vpop.f32.mrb[64].mxu0 }
 0x4ea   : > { %v3994_v14 = vpop.f32.mrb[65].mxu0 }
 0x4eb   : > { %v3995_v63 = vadd.f32 %v3994_v14, %v3993_v24  ;;  %v3996_v33 = vpop.f32.mrb[66].mxu0 }
 0x4ec   : > { %v3997_v42 = vpop.f32.mrb[67].mxu0 }
 0x4ed   : > { %v3998_v29 = vadd.f32 %v3997_v42, %v3996_v33  ;;  %v3324_v18 = vadd.f32 %v3995_v63, %v5593_v30 }
 0x4ef   : > { %v3327_v57 = vadd.f32 %v3998_v29, %v5593_v30 }
 0x4f0   : > { %v4317_v36 = vpop.f32.mrb[48].mxu1 }
 0x4f1   : > { %v3420_v32 = vpop.f32.mrb[49].mxu1 }
 0x4f2   : > { %v3421_v62 = vadd.f32 %v3420_v32, %v3324_v18  ;;  %v4318_v31 = vpop.f32.mrb[50].mxu1 }
 0x4f3   : > { %v3423_v26 = vpop.f32.mrb[51].mxu1 }
 0x4f4   : > { %3483 = vst [vmem:[%s5599_s21] sm:$0xff] %v3421_v62  ;;  %v3424_v49 = vadd.f32 %v3423_v26, %v3327_v57 }
 0x4f5   : > { %v3999_v40 = vpop.f32.mrb[68].mxu0 }
 0x4f6   : > { %3484 = vst [vmem:[%s5599_s21 + $0x8] sm:$0xff] %v3424_v49  ;;  %v4000_v61 = vpop.f32.mrb[69].mxu0 }
 0x4f7   : > { %v4001_v37 = vadd.f32 %v4000_v61, %v3999_v40  ;;  %v4002_v44 = vpop.f32.mrb[70].mxu0 }
 0x4f8   : > { %v4003_v56 = vpop.f32.mrb[71].mxu0 }
 0x4f9   : > { %v3332_v22 = vadd.f32 %v4001_v37, %v5593_v30  ;;  %v4004_v19 = vadd.f32 %v4003_v56, %v4002_v44 }
 0x4fb   : > { %v3429_v39 = vadd.f32 %v4317_v36, %v3332_v22  ;;  %v3335_v10 = vadd.f32 %v4004_v19, %v5593_v30 }
 0x4fd   : > { %3485 = vst [vmem:[%s5599_s21 + $0x10] sm:$0xff] %v3429_v39  ;;  %v3432_v59 = vadd.f32 %v4318_v31, %v3335_v10 }
 0x4ff   : > { %3486 = vst [vmem:[%s5599_s21 + $0x18] sm:$0xff] %v3432_v59 }
 0x501   : > { %v4005_v20 = vpop.f32.mrb[72].mxu0 }
 0x502   : > { %v4006_v50 = vpop.f32.mrb[73].mxu0 }
 0x503   : > { %v4007_v6 = vadd.f32 %v4006_v50, %v4005_v20  ;;  %v4008_v54 = vpop.f32.mrb[74].mxu0 }
 0x504   : > { %v4009_v4 = vpop.f32.mrb[75].mxu0 }
 0x505   : > { %v4010_v38 = vadd.f32 %v4009_v4, %v4008_v54  ;;  %v3340_v7 = vadd.f32 %v4007_v6, %v5593_v30 }
 0x507   : > { %v3343_v53 = vadd.f32 %v4010_v38, %v5593_v30 }
 0x508   : > { %v4321_v8 = vpop.f32.mrb[52].mxu1 }
 0x509   : > { %v3436_v27 = vpop.f32.mrb[53].mxu1 }
 0x50a   : > { %v3437_v51 = vadd.f32 %v3436_v27, %v3340_v7  ;;  %v4322_v46 = vpop.f32.mrb[54].mxu1 }
 0x50b   : > { %v3439_v3 = vpop.f32.mrb[55].mxu1 }
 0x50c   : > { %3487 = vst [vmem:[%s5599_s21 + $0x20] sm:$0xff] %v3437_v51  ;;  %v3440_v60 = vadd.f32 %v3439_v3, %v3343_v53 }
 0x50d   : > { %v4011_v13 = vpop.f32.mrb[76].mxu0 }
 0x50e   : > { %3488 = vst [vmem:[%s5599_s21 + $0x28] sm:$0xff] %v3440_v60  ;;  %v4012_v17 = vpop.f32.mrb[77].mxu0 }
 0x50f   : > { %v4013_v58 = vadd.f32 %v4012_v17, %v4011_v13  ;;  %v4014_v15 = vpop.f32.mrb[78].mxu0 }
 0x510   : > { %v4015_v52 = vpop.f32.mrb[79].mxu0 }
 0x511   : > { %v3348_v41 = vadd.f32 %v4013_v58, %v5593_v30  ;;  %v4016_v55 = vadd.f32 %v4015_v52, %v4014_v15 }
 0x513   : > { %v3445_v34 = vadd.f32 %v4321_v8, %v3348_v41  ;;  %v3351_v28 = vadd.f32 %v4016_v55, %v5593_v30 }
 0x515   : > { %3489 = vst [vmem:[%s5599_s21 + $0x30] sm:$0xff] %v3445_v34  ;;  %v3448_v25 = vadd.f32 %v4322_v46, %v3351_v28  ;;  %v4017_v48 = vpop.f32.mrb[80].mxu0 }
 0x516   : > { %v4018_v9 = vpop.f32.mrb[81].mxu0 }
 0x517   : > { %3490 = vst [vmem:[%s5599_s21 + $0x38] sm:$0xff] %v3448_v25  ;;  %v4019_v1 = vadd.f32 %v4018_v9, %v4017_v48  ;;  %v4020_v47 = vpop.f32.mrb[82].mxu0 }
 0x518   : > { %v4021_v5 = vpop.f32.mrb[83].mxu0 }
 0x519   : > { %v4022_v45 = vadd.f32 %v4021_v5, %v4020_v47  ;;  %v3356_v11 = vadd.f32 %v4019_v1, %v5593_v30 }
 0x51b   : > { %v3359_v29 = vadd.f32 %v4022_v45, %v5593_v30 }
 0x521   : > { %v4023_v2 = vpop.f32.mrb[84].mxu0 }
 0x522   : > { %v4024_v21 = vpop.f32.mrb[85].mxu0 }
 0x523   : > { %v4025_v35 = vadd.f32 %v4024_v21, %v4023_v2  ;;  %v4026_v43 = vpop.f32.mrb[86].mxu0 }
 0x524   : > { %v4027_v23 = vpop.f32.mrb[87].mxu0 }
 0x525   : > { %v4028_v16 = vadd.f32 %v4027_v23, %v4026_v43  ;;  %v3364_v12 = vadd.f32 %v4025_v35, %v5593_v30  ;;  %v4325_v0 = vpop.f32.mrb[56].mxu1 }
 0x526   : > { %v3452_v24 = vpop.f32.mrb[57].mxu1 }
 0x527   : > { %v3461_v14 = vadd.f32 %v4325_v0, %v3364_v12  ;;  %v3453_v63 = vadd.f32 %v3452_v24, %v3356_v11  ;;  %v3367_v33 = vadd.f32 %v4028_v16, %v5593_v30  ;;  %v4326_v42 = vpop.f32.mrb[58].mxu1 }
 0x528   : > { %v3455_v18 = vpop.f32.mrb[59].mxu1 }
 0x529   : > { %3493 = vst [vmem:[%s5599_s21 + $0x50] sm:$0xff] %v3461_v14  ;;  %3491 = vst [vmem:[%s5599_s21 + $0x40] sm:$0xff] %v3453_v63  ;;  %v3464_v36 = vadd.f32 %v4326_v42, %v3367_v33  ;;  %v3456_v57 = vadd.f32 %v3455_v18, %v3359_v29 }
 0x52b   : > { %3494 = vst [vmem:[%s5599_s21 + $0x58] sm:$0xff] %v3464_v36  ;;  %3492 = vst [vmem:[%s5599_s21 + $0x48] sm:$0xff] %v3456_v57 }
 0x52d   : > { %v4029_v32 = vpop.f32.mrb[88].mxu0 }
 0x52e   : > { %v4030_v62 = vpop.f32.mrb[89].mxu0 }
 0x52f   : > { %v4031_v31 = vadd.f32 %v4030_v62, %v4029_v32  ;;  %v4032_v26 = vpop.f32.mrb[90].mxu0 }
 0x530   : > { %v4033_v49 = vpop.f32.mrb[91].mxu0 }
 0x531   : > { %v4034_v40 = vadd.f32 %v4033_v49, %v4032_v26  ;;  %v3372_v59 = vadd.f32 %v4031_v31, %v5593_v30 }
 0x533   : > { %v3375_v38 = vadd.f32 %v4034_v40, %v5593_v30 }
 0x539   : > { %v4035_v61 = vpop.f32.mrb[92].mxu0 }
 0x53a   : > { %v4036_v37 = vpop.f32.mrb[93].mxu0 }
 0x53b   : > { %v4037_v44 = vadd.f32 %v4036_v37, %v4035_v61  ;;  %v4038_v56 = vpop.f32.mrb[94].mxu0 }
 0x53c   : > { %v4039_v22 = vpop.f32.mrb[95].mxu0 }
 0x53d   : > { %v4040_v19 = vadd.f32 %v4039_v22, %v4038_v56  ;;  %v3380_v39 = vadd.f32 %v4037_v44, %v5593_v30  ;;  %v4329_v10 = vpop.f32.mrb[60].mxu1 }
 0x53e   : > { %v3468_v20 = vpop.f32.mrb[61].mxu1 }
 0x53f   : > { %v3477_v50 = vadd.f32 %v4329_v10, %v3380_v39  ;;  %v3469_v6 = vadd.f32 %v3468_v20, %v3372_v59  ;;  %v3383_v54 = vadd.f32 %v4040_v19, %v5593_v30  ;;  %v4330_v4 = vpop.f32.mrb[62].mxu1 }
 0x540   : > { %v3471_v7 = vpop.f32.mrb[63].mxu1 }
 0x541   : > { %3497 = vst [vmem:[%s5599_s21 + $0x70] sm:$0xff] %v3477_v50  ;;  %3495 = vst [vmem:[%s5599_s21 + $0x60] sm:$0xff] %v3469_v6  ;;  %v3480_v8 = vadd.f32 %v4330_v4, %v3383_v54  ;;  %v3472_v53 = vadd.f32 %v3471_v7, %v3375_v38 }
 0x543   : > { %3498 = vst [vmem:[%s5599_s21 + $0x78] sm:$0xff] %v3480_v8  ;;  %3496 = vst [vmem:[%s5599_s21 + $0x68] sm:$0xff] %v3472_v53 }
 0x544   : > { %4567 = shalt.err (!%p4564_p7)
}
 0x545   : > { %s4568_s14 = scalar_lea.hbm %s5632_s15, 2048  ;;  %s4572_s21 = scalar_lea.hbm %s5689_s7, 4096 }
 0x546   : > { %p4569_p9 = scmp.ne.s32.totalorder %s5632_s15, %s4568_s14  ;;  %p4573_p5 = scmp.lt.u32.totalorder %s5632_s15, %s5689_s7 }
 0x547   : > { %p4574_p11 = scmp.lt.u32.totalorder %s4572_s21, %s4568_s14  ;;  %p4576_p4 = scmp.lt.u32.totalorder %s4568_s14, %s5632_s15 }
 0x548   : > { %p4570_p1 = pnand %p4569_p9, %p4774_p12 }
 0x549   : > { %p4575_p2 = por %p4574_p11, %p4573_p5 }
 0x54a   : > { %p4571_p0 = pneg %p4570_p1 }
 0x54b   : > { %p4577_p6 = por %p4576_p4, %p4575_p2 }
 0x54d   : > { %p4578_p8 = pnand %p4577_p6, %p4571_p0 }
 0x54f   : > { %4581 = shalt.err (!%p4578_p8)
}
 0x550   : > { %s4638_s12 = smov 128   ;;  %s4639_s30 = smov 8  }
 0x551   : > { %4413 = dma.vmem_to_hbm [thread:$0]  (%p4774_p12), %s5634_s23, 2048, %s5632_s15, %s3500_s28, %s4638_s12, %s4638_s12, %s4639_s30  }
 0x552 PF: > { %s3529_s9 = sand.u32 1, %s4612_s24   ;;  %p5718_p10 = scmp.ne.s32.totalorder %s5697_s8, 0 }
 0x553   : > { %p5719_p13 = scmp.ge.s32.totalorder %s4624_s27, 2  ;;  %s3530_s10 = scalar_lea.sflag [#allocation4], %s3529_s9 }
 0x555   : > { %p4424_p3 = pnand %p5719_p13, %p5718_p10 }
 0x557   : > { %4607 = dma.done.wait (!%p4424_p3), %s3530_s10, 2048  }
 0x558   : > { %4609 = vsyncadd (!%p4424_p3), %s3530_s10, 4294965248  ;;  %p21_p7 = scmp.ge.s32.totalorder %s4736_s13, 4   ;;  %s5720_s24 = smov %s4616_s25 }
 0x559   : > { %s5721_s25 = smov %s4620_s26  ;;  %s5722_s26 = smov %s4770_s18 }
 0x55a   : > { %s5723_s27 = smov %s4736_s13  ;;  %23 = sbr.rel (!%p21_p7) target bundleno = 6 (0x6), region = 101 }
 0x561   :  { %3535 = vsyncpa [#allocation3], 1 }
 0x562   :  { %3537 = vsyncpa [#allocation3 + $0x1], 1 }
 0x563   :  { %3538 = vsyncpa [#allocation6], 1 }
 0x564   :  { %3539 = vsyncpa [#allocation4], 1 }
 0x565   :  { %3541 = vsyncpa [#allocation4 + $0x1], 1 }

</bundles_post_ra>
